<compile_context>
chip_gen: v5e
topology: v5e:2x2
jax: 0.10.0
libtpu: 0.0.40
codegen_flags: <defaults>
</compile_context>

<pallas_src>
import math

import jax
import jax.numpy as jnp
from jax.experimental import pallas as pl
from jax.experimental.pallas import tpu as pltpu

NUM_CLASSES = 2
HIDDEN = 32

_VMEM_LIMIT = 48 * 1024 * 1024   # > v5e's 16 MiB default, < every chip's VMEM


# ------------------------------ small helpers ------------------------------

def _round_up(n, m):
    return ((n + m - 1) // m) * m


def _pick_row_tile(h, max_rows=64):
    """Multiple-of-8 divisor of h (<= max_rows, <= h//2 when possible), else h."""
    if h % 8 != 0:
        return h
    limit = min(max_rows, h // 2 if h >= 16 else h)
    best = 8
    t = 16
    while t <= limit:
        if h % t == 0:
            best = t
        t += 8
    return best


def _head_tiling(n, max_tile=32768):
    """Return (n_pad, tile): lane-padded spatial size + spatial tile size."""
    n_pad = _round_up(n, 128)
    if n_pad <= max_tile:
        return n_pad, n_pad
    n_pad = _round_up(n, 1024)
    best = 1024
    t = 1024
    while t <= max_tile:
        if n_pad % t == 0:
            best = t
        t += 1024
    if best >= 4096:
        return n_pad, best
    tile = 8192
    return _round_up(n, tile), tile


def _interp_matrix(out_size, in_size, dtype=jnp.float32):
    """Row-stochastic bilinear interpolation matrix (align_corners=True)."""
    if out_size == 1:
        src = jnp.zeros((1,), dtype=jnp.float32)
    else:
        src = (jnp.arange(out_size, dtype=jnp.float32)
               * ((in_size - 1) / (out_size - 1)))
    j = jnp.arange(in_size, dtype=jnp.float32)
    w = jnp.maximum(0.0, 1.0 - jnp.abs(src[:, None] - j[None, :]))
    return w.astype(dtype)


# ----------------------------- Pallas kernels ------------------------------

def _resize_kernel(x_ref, ah_ref, awt_ref, o_ref):
    """Bilinear-resize a row tile of all channels of one image.

    x_ref  : (1, C, H, W)    full image (resident per batch)
    ah_ref : (TH, H)         row tile of the H-interp matrix
    awt_ref: (W, w_out)      full (transposed) W-interp matrix
    o_ref  : (1, C, TH, w_out)
    """
    n_ch = x_ref.shape[1]
    th = ah_ref.shape[0]
    if th % 8 == 0 and n_ch > 1:
        # collapse the W-resize of all channels into a single MXU matmul
        t = jnp.concatenate(
            [jnp.dot(ah_ref[...], x_ref[0, c],
                     preferred_element_type=jnp.float32).astype(x_ref.dtype)
             for c in range(n_ch)], axis=0)                       # (C*TH, W)
        r = jnp.dot(t, awt_ref[...], preferred_element_type=jnp.float32)
        for c in range(n_ch):
            o_ref[0, c] = r[c * th:(c + 1) * th, :].astype(o_ref.dtype)
    else:
        for c in range(n_ch):
            t = jnp.dot(ah_ref[...], x_ref[0, c],
                        preferred_element_type=jnp.float32).astype(x_ref.dtype)
            o_ref[0, c] = jnp.dot(
                t, awt_ref[...],
                preferred_element_type=jnp.float32).astype(o_ref.dtype)


def _seg_head_kernel(x_ref, w1t_ref, b1_ref, w2t_ref, b2_ref, o_ref):
    """Stand-in segformer head; channels on sublanes, spatial on lanes.

    x_ref block: (1, 3, TILE) -> o_ref block: (1, NUM_CLASSES, TILE)
    (spatial axis on lanes => lane-dense stores)
    """
    x = x_ref[0].astype(jnp.float32)                               # (3, TILE)
    h = jnp.dot(w1t_ref[...], x, preferred_element_type=jnp.float32)
    h = jax.nn.gelu(h + b1_ref[...])                               # (H, TILE)
    o = jnp.dot(w2t_ref[...], h, preferred_element_type=jnp.float32) + b2_ref[...]
    o_ref[0] = o.astype(o_ref.dtype)                               # (2, TILE)


def _fuse_kernel(ori_ref, ls_ref, ll_ref, ahs_ref, awts_ref, ahl_ref, awtl_ref,
                 wf_ref, bf_ref, ls_out_ref, ll_out_ref, w_out_ref):
    """Fused tail for one row tile of one image:

      * bilinear resize of small / large logits back to (TH, W)
      * 6-channel concat + 1x1 conv (6->3, SMEM scalar weights) + softmax
    """
    n_cls = ori_ref.shape[1]
    th = ahs_ref.shape[0]

    def resize(l_ref, ah_ref, awt_ref):
        if th % 8 == 0 and n_cls > 1:
            t = jnp.concatenate(
                [jnp.dot(ah_ref[...], l_ref[0, c],
                         preferred_element_type=jnp.float32).astype(l_ref.dtype)
                 for c in range(n_cls)], axis=0)                 # (n_cls*TH, w_in)
            r = jnp.dot(t, awt_ref[...], preferred_element_type=jnp.float32)
            return [r[c * th:(c + 1) * th, :] for c in range(n_cls)]
        return [jnp.dot(jnp.dot(ah_ref[...], l_ref[0, c],
                                preferred_element_type=jnp.float32
                                ).astype(l_ref.dtype),
                        awt_ref[...], preferred_element_type=jnp.float32)
                for c in range(n_cls)]

    rs = resize(ls_ref, ahs_ref, awts_ref)                        # 2 x (TH, W)
    rl = resize(ll_ref, ahl_ref, awtl_ref)                        # 2 x (TH, W)
    for c in range(n_cls):
        ls_out_ref[0, c] = rs[c]
        ll_out_ref[0, c] = rl[c]

    chans = [ori_ref[0, c].astype(jnp.float32) for c in range(n_cls)] + rs + rl

    # 1x1 conv (6 -> 3): z_k = b_k + sum_c w[c,k] * chan_c   (VPU broadcast FMA)
    zs = []
    for k in range(3):
        zk = chans[0] * wf_ref[0, k] + bf_ref[k]
        for c in range(1, 6):
            zk = zk + chans[c] * wf_ref[c, k]
        zs.append(zk)

    # softmax over the 3 scale weights
    m = jnp.maximum(jnp.maximum(zs[0], zs[1]), zs[2])
    e0 = jnp.exp(zs[0] - m)
    e1 = jnp.exp(zs[1] - m)
    e2 = jnp.exp(zs[2] - m)
    denom = e0 + e1 + e2
    inv = pl.reciprocal(denom, approx=True)
    inv = inv * (2.0 - denom * inv)        # one Newton step: sum-to-1 ~ 1e-7
    w_out_ref[0, 0] = e0 * inv
    w_out_ref[0, 1] = e1 * inv
    w_out_ref[0, 2] = e2 * inv


# ------------------------------ host wrappers ------------------------------

def bilinear_resize(x, out_h, out_w, out_dtype=None):
    """x: (B, C, H, W) -> (B, C, out_h, out_w), bilinear, align_corners=True."""
    B, C, H, W = x.shape
    out_dtype = out_dtype or x.dtype
    mat_dtype = jnp.bfloat16 if x.dtype == jnp.bfloat16 else jnp.float32
    a_h = _interp_matrix(out_h, H, mat_dtype)          # (out_h, H)
    a_wt = _interp_matrix(out_w, W, mat_dtype).T       # (W, out_w)
    th = _pick_row_tile(out_h)
    return pl.pallas_call(
        _resize_kernel,
        grid=(B, out_h // th),
        in_specs=[
            pl.BlockSpec((1, C, H, W), lambda b, i: (b, 0, 0, 0)),
            pl.BlockSpec((th, H), lambda b, i: (i, 0)),
            pl.BlockSpec((W, out_w), lambda b, i: (0, 0)),
        ],
        out_specs=pl.BlockSpec((1, C, th, out_w), lambda b, i: (b, 0, i, 0)),
        out_shape=jax.ShapeDtypeStruct((B, C, out_h, out_w), out_dtype),
        compiler_params=pltpu.CompilerParams(
            dimension_semantics=("parallel", "parallel"),
            vmem_limit_bytes=_VMEM_LIMIT),
    )(x, a_h, a_wt)


def segmodel_forward(x, params, out_dtype=jnp.float32):
    """Stand-in segformer_b2: (B, 3, H, W) -> (B, NUM_CLASSES, H, W)."""
    B, C, H, W = x.shape
    n = H * W
    n_pad, tile = _head_tiling(n)
    xf = x.reshape(B, C, n)                    # pure reshape, no transpose
    if n_pad != n:
        xf = jnp.pad(xf, ((0, 0), (0, 0), (0, n_pad - n)))
    out = pl.pallas_call(
        _seg_head_kernel,
        grid=(B, n_pad // tile),
        in_specs=[
            pl.BlockSpec((1, C, tile), lambda b, t: (b, 0, t)),
            pl.BlockSpec((HIDDEN, C), lambda b, t: (0, 0)),
            pl.BlockSpec((HIDDEN, 1), lambda b, t: (0, 0)),
            pl.BlockSpec((NUM_CLASSES, HIDDEN), lambda b, t: (0, 0)),
            pl.BlockSpec((NUM_CLASSES, 1), lambda b, t: (0, 0)),
        ],
        out_specs=pl.BlockSpec((1, NUM_CLASSES, tile), lambda b, t: (b, 0, t)),
        out_shape=jax.ShapeDtypeStruct((B, NUM_CLASSES, n_pad), out_dtype),
        compiler_params=pltpu.CompilerParams(
            dimension_semantics=("parallel", "parallel")),
    )(xf, params["w1t"], params["b1"], params["w2t"], params["b2"])
    if n_pad != n:
        out = out[:, :, :n]
    return out.reshape(B, NUM_CLASSES, H, W)


def fuse_resize_softmax(logit_ori, ls_pre, ll_pre, params):
    """Resize small/large logits back to (H, W), 1x1-conv the 6-ch concat, softmax."""
    B, C2, H, W = logit_ori.shape
    _, _, h_s, w_s = ls_pre.shape
    _, _, h_l, w_l = ll_pre.shape
    mat_dtype = jnp.bfloat16 if ls_pre.dtype == jnp.bfloat16 else jnp.float32
    ah_s = _interp_matrix(H, h_s, mat_dtype)           # (H, h_s)
    awt_s = _interp_matrix(W, w_s, mat_dtype).T        # (w_s, W)
    ah_l = _interp_matrix(H, h_l, mat_dtype)           # (H, h_l)
    awt_l = _interp_matrix(W, w_l, mat_dtype).T        # (w_l, W)
    th = _pick_row_tile(H)

    out_shapes = (
        jax.ShapeDtypeStruct((B, C2, H, W), jnp.float32),   # logit_small
        jax.ShapeDtypeStruct((B, C2, H, W), jnp.float32),   # logit_large
        jax.ShapeDtypeStruct((B, 3, H, W), jnp.float32),    # level_weight_3
    )
    return pl.pallas_call(
        _fuse_kernel,
        grid=(B, H // th),
        in_specs=[
            pl.BlockSpec((1, C2, th, W), lambda b, i: (b, 0, i, 0)),
            pl.BlockSpec((1, C2, h_s, w_s), lambda b, i: (b, 0, 0, 0)),
            pl.BlockSpec((1, C2, h_l, w_l), lambda b, i: (b, 0, 0, 0)),
            pl.BlockSpec((th, h_s), lambda b, i: (i, 0)),
            pl.BlockSpec((w_s, W), lambda b, i: (0, 0)),
            pl.BlockSpec((th, h_l), lambda b, i: (i, 0)),
            pl.BlockSpec((w_l, W), lambda b, i: (0, 0)),
            pl.BlockSpec(memory_space=pltpu.MemorySpace.SMEM),   # w_fuse (6,3)
            pl.BlockSpec(memory_space=pltpu.MemorySpace.SMEM),   # b_fuse (3,)
        ],
        out_specs=(
            pl.BlockSpec((1, C2, th, W), lambda b, i: (b, 0, i, 0)),
            pl.BlockSpec((1, C2, th, W), lambda b, i: (b, 0, i, 0)),
            pl.BlockSpec((1, 3, th, W), lambda b, i: (b, 0, i, 0)),
        ),
        out_shape=out_shapes,
        compiler_params=pltpu.CompilerParams(
            dimension_semantics=("parallel", "parallel"),
            vmem_limit_bytes=_VMEM_LIMIT),
    )(logit_ori, ls_pre, ll_pre, ah_s, awt_s, ah_l, awt_l,
      params["w_fuse"], params["b_fuse"])


def three_model_forward(x, params):
    B, C, H, W = x.shape
    # F.interpolate(scale_factor, recompute_scale_factor=True) -> floor(size*s)
    h_s, w_s = int(math.floor(H * 0.7)), int(math.floor(W * 0.7))
    h_l, w_l = int(math.floor(H * 1.5)), int(math.floor(W * 1.5))

    # bf16 copy of x for the resize path: halves the resized-image intermediate
    # HBM traffic and the per-batch VMEM-resident image block.
    xb = x.astype(jnp.bfloat16)
    img_small = bilinear_resize(xb, h_s, w_s)          # (B, 3, h_s, w_s) bf16
    img_large = bilinear_resize(xb, h_l, w_l)          # (B, 3, h_l, w_l) bf16

    logit_ori = segmodel_forward(x, params, out_dtype=jnp.float32)
    ls_pre = segmodel_forward(img_small, params, out_dtype=jnp.bfloat16)
    ll_pre = segmodel_forward(img_large, params, out_dtype=jnp.bfloat16)

    logit_small, logit_large, level_weight_3 = fuse_resize_softmax(
        logit_ori, ls_pre, ll_pre, params)

    weight_ori = level_weight_3[:, 0:1, :, :]
    weight_small = level_weight_3[:, 1:2, :, :]
    weight_large = level_weight_3[:, 2:3, :, :]
    return (logit_ori, logit_small, logit_large,
            weight_ori, weight_small, weight_large)


def init_params(key):
    k1, k2, k3 = jax.random.split(key, 3)
    return {
        # stand-in segformer head, stored pre-transposed for the (C, N) layout
        "w1t": jax.random.normal(k1, (HIDDEN, 3), jnp.float32) * 0.1,
        "b1": jnp.zeros((HIDDEN, 1), jnp.float32),
        "w2t": jax.random.normal(k2, (NUM_CLASSES, HIDDEN), jnp.float32) * 0.1,
        "b2": jnp.zeros((NUM_CLASSES, 1), jnp.float32),
        # weight_level_9_3 = nn.Conv2d(6, 3, 1): weight (in=6, out=3), bias (3,)
        "w_fuse": jax.random.normal(k3, (6, 3), jnp.float32) * 0.1,
        "b_fuse": jnp.zeros((3,), jnp.float32),
    }


if __name__ == "__main__":
    key = jax.random.PRNGKey(0)
    kx, kp = jax.random.split(key)
    x = jax.random.normal(kx, (2, 3, 16, 16), dtype=jnp.float32)
    params = init_params(kp)

    forward = jax.jit(three_model_forward)
    outs = jax.block_until_ready(forward(x, params))
    (logit_ori, logit_small, logit_large,
     weight_ori, weight_small, weight_large) = outs

    assert logit_ori.shape == (2, NUM_CLASSES, 16, 16)
    assert logit_small.shape == (2, NUM_CLASSES, 16, 16)
    assert logit_large.shape == (2, NUM_CLASSES, 16, 16)
    assert weight_ori.shape == (2, 1, 16, 16)
    assert weight_small.shape == (2, 1, 16, 16)
    assert weight_large.shape == (2, 1, 16, 16)
    # softmax weights over the 3 scales sum to 1
    s = weight_ori + weight_small + weight_large
    assert bool(jnp.allclose(s, 1.0, atol=1e-5))
    assert bool(jnp.all(jnp.isfinite(logit_small)))
    assert bool(jnp.all(jnp.isfinite(logit_large)))

    print("KERNEL_OK")
</pallas_src>

<mosaic_0001>
module attributes {stable_mosaic.version = 11 : i64} {
  func.func @_seg_head_kernel(%arg0: i32, %arg1: i32, %arg2: memref<1x3x128xbf16, #tpu.memory_space<vmem>>, %arg3: memref<32x3xf32, #tpu.memory_space<vmem>>, %arg4: memref<32x1xf32, #tpu.memory_space<vmem>>, %arg5: memref<2x32xf32, #tpu.memory_space<vmem>>, %arg6: memref<2x1xf32, #tpu.memory_space<vmem>>, %arg7: memref<1x2x128xbf16, #tpu.memory_space<vmem>>) attributes {dimension_semantics = [#tpu.dimension_semantics<parallel>, #tpu.dimension_semantics<parallel>], iteration_bounds = array<i64: 2, 1>, scalar_prefetch = 0 : i64, scratch_operands = 0 : i64, tpu.core_type = #tpu.core_type<tc>, window_params = [{transform_indices = @transform_0, window_bounds = array<i64: 1, 3, 128>}, {pipeline_mode = #tpu.pipeline_mode<synchronous>, transform_indices = @transform_1, window_bounds = array<i64: 32, 3>}, {pipeline_mode = #tpu.pipeline_mode<synchronous>, transform_indices = @transform_2, window_bounds = array<i64: 32, 1>}, {pipeline_mode = #tpu.pipeline_mode<synchronous>, transform_indices = @transform_3, window_bounds = array<i64: 2, 32>}, {pipeline_mode = #tpu.pipeline_mode<synchronous>, transform_indices = @transform_4, window_bounds = array<i64: 2, 1>}, {transform_indices = @transform_5, window_bounds = array<i64: 1, 2, 128>}]} {
    %c0 = arith.constant 0 : index
    %c0_0 = arith.constant 0 : index
    %c0_1 = arith.constant 0 : index
    %0 = vector.load %arg2[%c0, %c0_0, %c0_1] : memref<1x3x128xbf16, #tpu.memory_space<vmem>>, vector<1x3x128xbf16>
    %1 = vector.shape_cast %0 : vector<1x3x128xbf16> to vector<3x128xbf16>
    %2 = arith.extf %1 : vector<3x128xbf16> to vector<3x128xf32>
    %c0_2 = arith.constant 0 : index
    %c0_3 = arith.constant 0 : index
    %3 = vector.load %arg3[%c0_2, %c0_3] : memref<32x3xf32, #tpu.memory_space<vmem>>, vector<32x3xf32>
    %cst = arith.constant dense<0.000000e+00> : vector<32x128xf32>
    %4 = tpu.matmul %3, %2, %cst {dimension_numbers = #tpu.dot_dimension_numbers<[1], [0], [0], [1], [0, 0, 1, 1], [], []>} : vector<32x3xf32>, vector<3x128xf32>, vector<32x128xf32> -> vector<32x128xf32>
    %c0_4 = arith.constant 0 : index
    %c0_5 = arith.constant 0 : index
    %5 = vector.load %arg4[%c0_4, %c0_5] : memref<32x1xf32, #tpu.memory_space<vmem>>, vector<32x1xf32>
    %6 = vector.broadcast %5 : vector<32x1xf32> to vector<32x128xf32>
    %7 = arith.addf %4, %6 : vector<32x128xf32>
    %8 = arith.mulf %7, %7 : vector<32x128xf32>
    %9 = arith.mulf %7, %8 : vector<32x128xf32>
    %cst_6 = arith.constant 4.471500e-02 : f32
    %10 = vector.broadcast %cst_6 : f32 to vector<32x128xf32>
    %11 = arith.mulf %10, %9 : vector<32x128xf32>
    %12 = arith.addf %7, %11 : vector<32x128xf32>
    %cst_7 = arith.constant 0.797884583 : f32
    %13 = vector.broadcast %cst_7 : f32 to vector<32x128xf32>
    %14 = arith.mulf %13, %12 : vector<32x128xf32>
    %15 = math.tanh %14 : vector<32x128xf32>
    %cst_8 = arith.constant 1.000000e+00 : f32
    %16 = vector.broadcast %cst_8 : f32 to vector<32x128xf32>
    %17 = arith.addf %16, %15 : vector<32x128xf32>
    %cst_9 = arith.constant 5.000000e-01 : f32
    %18 = vector.broadcast %cst_9 : f32 to vector<32x128xf32>
    %19 = arith.mulf %18, %17 : vector<32x128xf32>
    %20 = arith.mulf %7, %19 : vector<32x128xf32>
    %c0_10 = arith.constant 0 : index
    %c0_11 = arith.constant 0 : index
    %21 = vector.load %arg5[%c0_10, %c0_11] : memref<2x32xf32, #tpu.memory_space<vmem>>, vector<2x32xf32>
    %cst_12 = arith.constant dense<0.000000e+00> : vector<2x128xf32>
    %22 = tpu.matmul %21, %20, %cst_12 {dimension_numbers = #tpu.dot_dimension_numbers<[1], [0], [0], [1], [0, 0, 1, 1], [], []>} : vector<2x32xf32>, vector<32x128xf32>, vector<2x128xf32> -> vector<2x128xf32>
    %c0_13 = arith.constant 0 : index
    %c0_14 = arith.constant 0 : index
    %23 = vector.load %arg6[%c0_13, %c0_14] : memref<2x1xf32, #tpu.memory_space<vmem>>, vector<2x1xf32>
    %24 = vector.broadcast %23 : vector<2x1xf32> to vector<2x128xf32>
    %25 = arith.addf %22, %24 : vector<2x128xf32>
    %26 = arith.truncf %25 : vector<2x128xf32> to vector<2x128xbf16>
    %c0_15 = arith.constant 0 : index
    %c0_16 = arith.constant 0 : index
    %c0_17 = arith.constant 0 : index
    %27 = vector.load %arg7[%c0_15, %c0_16, %c0_17] : memref<1x2x128xbf16, #tpu.memory_space<vmem>>, vector<1x2x128xbf16>
    %28 = vector.shape_cast %27 : vector<1x2x128xbf16> to vector<2x128xbf16>
    %29 = vector.shape_cast %26 : vector<2x128xbf16> to vector<1x2x128xbf16>
    tpu.vector_store %arg7[%c0_15, %c0_16, %c0_17], %29 {strides = array<i32>} : memref<1x2x128xbf16, #tpu.memory_space<vmem>>, vector<1x2x128xbf16>,
    return
  }
  func.func @transform_0(%arg0: i32, %arg1: i32) -> (i32, i32, i32) {
    %c0_i32 = arith.constant 0 : i32
    %c0_i32_0 = arith.constant 0 : i32
    return %arg0, %c0_i32, %arg1 : i32, i32, i32
  }
  func.func @transform_1(%arg0: i32, %arg1: i32) -> (i32, i32) {
    %c0_i32 = arith.constant 0 : i32
    %c0_i32_0 = arith.constant 0 : i32
    %c0_i32_1 = arith.constant 0 : i32
    return %c0_i32, %c0_i32_0 : i32, i32
  }
  func.func @transform_2(%arg0: i32, %arg1: i32) -> (i32, i32) {
    %c0_i32 = arith.constant 0 : i32
    %c0_i32_0 = arith.constant 0 : i32
    %c0_i32_1 = arith.constant 0 : i32
    return %c0_i32, %c0_i32_0 : i32, i32
  }
  func.func @transform_3(%arg0: i32, %arg1: i32) -> (i32, i32) {
    %c0_i32 = arith.constant 0 : i32
    %c0_i32_0 = arith.constant 0 : i32
    %c0_i32_1 = arith.constant 0 : i32
    return %c0_i32, %c0_i32_0 : i32, i32
  }
  func.func @transform_4(%arg0: i32, %arg1: i32) -> (i32, i32) {
    %c0_i32 = arith.constant 0 : i32
    %c0_i32_0 = arith.constant 0 : i32
    %c0_i32_1 = arith.constant 0 : i32
    return %c0_i32, %c0_i32_0 : i32, i32
  }
  func.func @transform_5(%arg0: i32, %arg1: i32) -> (i32, i32, i32) {
    %c0_i32 = arith.constant 0 : i32
    %c0_i32_0 = arith.constant 0 : i32
    return %arg0, %c0_i32, %arg1 : i32, i32, i32
  }
}

module attributes {stable_mosaic.version = 11 : i64} {
  func.func @_seg_head_kernel(%arg0: i32, %arg1: i32, %arg2: memref<1x3x256xf32, #tpu.memory_space<vmem>>, %arg3: memref<32x3xf32, #tpu.memory_space<vmem>>, %arg4: memref<32x1xf32, #tpu.memory_space<vmem>>, %arg5: memref<2x32xf32, #tpu.memory_space<vmem>>, %arg6: memref<2x1xf32, #tpu.memory_space<vmem>>, %arg7: memref<1x2x256xf32, #tpu.memory_space<vmem>>) attributes {dimension_semantics = [#tpu.dimension_semantics<parallel>, #tpu.dimension_semantics<parallel>], iteration_bounds = array<i64: 2, 1>, scalar_prefetch = 0 : i64, scratch_operands = 0 : i64, tpu.core_type = #tpu.core_type<tc>, window_params = [{transform_indices = @transform_0, window_bounds = array<i64: 1, 3, 256>}, {pipeline_mode = #tpu.pipeline_mode<synchronous>, transform_indices = @transform_1, window_bounds = array<i64: 32, 3>}, {pipeline_mode = #tpu.pipeline_mode<synchronous>, transform_indices = @transform_2, window_bounds = array<i64: 32, 1>}, {pipeline_mode = #tpu.pipeline_mode<synchronous>, transform_indices = @transform_3, window_bounds = array<i64: 2, 32>}, {pipeline_mode = #tpu.pipeline_mode<synchronous>, transform_indices = @transform_4, window_bounds = array<i64: 2, 1>}, {transform_indices = @transform_5, window_bounds = array<i64: 1, 2, 256>}]} {
    %c0 = arith.constant 0 : index
    %c0_0 = arith.constant 0 : index
    %c0_1 = arith.constant 0 : index
    %0 = vector.load %arg2[%c0, %c0_0, %c0_1] : memref<1x3x256xf32, #tpu.memory_space<vmem>>, vector<1x3x256xf32>
    %1 = vector.shape_cast %0 : vector<1x3x256xf32> to vector<3x256xf32>
    %c0_2 = arith.constant 0 : index
    %c0_3 = arith.constant 0 : index
    %2 = vector.load %arg3[%c0_2, %c0_3] : memref<32x3xf32, #tpu.memory_space<vmem>>, vector<32x3xf32>
    %cst = arith.constant dense<0.000000e+00> : vector<32x256xf32>
    %3 = tpu.matmul %2, %1, %cst {dimension_numbers = #tpu.dot_dimension_numbers<[1], [0], [0], [1], [0, 0, 1, 1], [], []>} : vector<32x3xf32>, vector<3x256xf32>, vector<32x256xf32> -> vector<32x256xf32>
    %c0_4 = arith.constant 0 : index
    %c0_5 = arith.constant 0 : index
    %4 = vector.load %arg4[%c0_4, %c0_5] : memref<32x1xf32, #tpu.memory_space<vmem>>, vector<32x1xf32>
    %5 = vector.broadcast %4 : vector<32x1xf32> to vector<32x256xf32>
    %6 = arith.addf %3, %5 : vector<32x256xf32>
    %7 = arith.mulf %6, %6 : vector<32x256xf32>
    %8 = arith.mulf %6, %7 : vector<32x256xf32>
    %cst_6 = arith.constant 4.471500e-02 : f32
    %9 = vector.broadcast %cst_6 : f32 to vector<32x256xf32>
    %10 = arith.mulf %9, %8 : vector<32x256xf32>
    %11 = arith.addf %6, %10 : vector<32x256xf32>
    %cst_7 = arith.constant 0.797884583 : f32
    %12 = vector.broadcast %cst_7 : f32 to vector<32x256xf32>
    %13 = arith.mulf %12, %11 : vector<32x256xf32>
    %14 = math.tanh %13 : vector<32x256xf32>
    %cst_8 = arith.constant 1.000000e+00 : f32
    %15 = vector.broadcast %cst_8 : f32 to vector<32x256xf32>
    %16 = arith.addf %15, %14 : vector<32x256xf32>
    %cst_9 = arith.constant 5.000000e-01 : f32
    %17 = vector.broadcast %cst_9 : f32 to vector<32x256xf32>
    %18 = arith.mulf %17, %16 : vector<32x256xf32>
    %19 = arith.mulf %6, %18 : vector<32x256xf32>
    %c0_10 = arith.constant 0 : index
    %c0_11 = arith.constant 0 : index
    %20 = vector.load %arg5[%c0_10, %c0_11] : memref<2x32xf32, #tpu.memory_space<vmem>>, vector<2x32xf32>
    %cst_12 = arith.constant dense<0.000000e+00> : vector<2x256xf32>
    %21 = tpu.matmul %20, %19, %cst_12 {dimension_numbers = #tpu.dot_dimension_numbers<[1], [0], [0], [1], [0, 0, 1, 1], [], []>} : vector<2x32xf32>, vector<32x256xf32>, vector<2x256xf32> -> vector<2x256xf32>
    %c0_13 = arith.constant 0 : index
    %c0_14 = arith.constant 0 : index
    %22 = vector.load %arg6[%c0_13, %c0_14] : memref<2x1xf32, #tpu.memory_space<vmem>>, vector<2x1xf32>
    %23 = vector.broadcast %22 : vector<2x1xf32> to vector<2x256xf32>
    %24 = arith.addf %21, %23 : vector<2x256xf32>
    %c0_15 = arith.constant 0 : index
    %c0_16 = arith.constant 0 : index
    %c0_17 = arith.constant 0 : index
    %25 = vector.load %arg7[%c0_15, %c0_16, %c0_17] : memref<1x2x256xf32, #tpu.memory_space<vmem>>, vector<1x2x256xf32>
    %26 = vector.shape_cast %25 : vector<1x2x256xf32> to vector<2x256xf32>
    %27 = vector.shape_cast %24 : vector<2x256xf32> to vector<1x2x256xf32>
    tpu.vector_store %arg7[%c0_15, %c0_16, %c0_17], %27 {strides = array<i32>} : memref<1x2x256xf32, #tpu.memory_space<vmem>>, vector<1x2x256xf32>,
    return
  }
  func.func @transform_0(%arg0: i32, %arg1: i32) -> (i32, i32, i32) {
    %c0_i32 = arith.constant 0 : i32
    %c0_i32_0 = arith.constant 0 : i32
    return %arg0, %c0_i32, %arg1 : i32, i32, i32
  }
  func.func @transform_1(%arg0: i32, %arg1: i32) -> (i32, i32) {
    %c0_i32 = arith.constant 0 : i32
    %c0_i32_0 = arith.constant 0 : i32
    %c0_i32_1 = arith.constant 0 : i32
    return %c0_i32, %c0_i32_0 : i32, i32
  }
  func.func @transform_2(%arg0: i32, %arg1: i32) -> (i32, i32) {
    %c0_i32 = arith.constant 0 : i32
    %c0_i32_0 = arith.constant 0 : i32
    %c0_i32_1 = arith.constant 0 : i32
    return %c0_i32, %c0_i32_0 : i32, i32
  }
  func.func @transform_3(%arg0: i32, %arg1: i32) -> (i32, i32) {
    %c0_i32 = arith.constant 0 : i32
    %c0_i32_0 = arith.constant 0 : i32
    %c0_i32_1 = arith.constant 0 : i32
    return %c0_i32, %c0_i32_0 : i32, i32
  }
  func.func @transform_4(%arg0: i32, %arg1: i32) -> (i32, i32) {
    %c0_i32 = arith.constant 0 : i32
    %c0_i32_0 = arith.constant 0 : i32
    %c0_i32_1 = arith.constant 0 : i32
    return %c0_i32, %c0_i32_0 : i32, i32
  }
  func.func @transform_5(%arg0: i32, %arg1: i32) -> (i32, i32, i32) {
    %c0_i32 = arith.constant 0 : i32
    %c0_i32_0 = arith.constant 0 : i32
    return %arg0, %c0_i32, %arg1 : i32, i32, i32
  }
}

module attributes {stable_mosaic.version = 11 : i64} {
  func.func @_resize_kernel(%arg0: i32, %arg1: i32, %arg2: memref<1x3x16x16xbf16, #tpu.memory_space<vmem>>, %arg3: memref<11x16xbf16, #tpu.memory_space<vmem>>, %arg4: memref<16x11xbf16, #tpu.memory_space<vmem>>, %arg5: memref<1x3x11x11xbf16, #tpu.memory_space<vmem>>) attributes {dimension_semantics = [#tpu.dimension_semantics<parallel>, #tpu.dimension_semantics<parallel>], iteration_bounds = array<i64: 2, 1>, scalar_prefetch = 0 : i64, scratch_operands = 0 : i64, tpu.core_type = #tpu.core_type<tc>, window_params = [{transform_indices = @transform_0, window_bounds = array<i64: 1, 3, 16, 16>}, {transform_indices = @transform_1, window_bounds = array<i64: 11, 16>}, {pipeline_mode = #tpu.pipeline_mode<synchronous>, transform_indices = @transform_2, window_bounds = array<i64: 16, 11>}, {transform_indices = @transform_3, window_bounds = array<i64: 1, 3, 11, 11>}]} {
    %c0 = arith.constant 0 : index
    %c0_0 = arith.constant 0 : index
    %0 = vector.load %arg3[%c0, %c0_0] : memref<11x16xbf16, #tpu.memory_space<vmem>>, vector<11x16xbf16>
    %c0_1 = arith.constant 0 : index
    %c0_2 = arith.constant 0 : index
    %c0_3 = arith.constant 0 : index
    %c0_4 = arith.constant 0 : index
    %1 = vector.load %arg2[%c0_1, %c0_2, %c0_3, %c0_4] : memref<1x3x16x16xbf16, #tpu.memory_space<vmem>>, vector<1x1x16x16xbf16>
    %2 = vector.shape_cast %1 : vector<1x1x16x16xbf16> to vector<16x16xbf16>
    %cst = arith.constant dense<0.000000e+00> : vector<11x16xf32>
    %3 = tpu.matmul %0, %2, %cst {dimension_numbers = #tpu.dot_dimension_numbers<[1], [0], [0], [1], [0, 0, 1, 1], [], []>} : vector<11x16xbf16>, vector<16x16xbf16>, vector<11x16xf32> -> vector<11x16xf32>
    %4 = arith.truncf %3 : vector<11x16xf32> to vector<11x16xbf16>
    %c0_5 = arith.constant 0 : index
    %c0_6 = arith.constant 0 : index
    %5 = vector.load %arg4[%c0_5, %c0_6] : memref<16x11xbf16, #tpu.memory_space<vmem>>, vector<16x11xbf16>
    %cst_7 = arith.constant dense<0.000000e+00> : vector<11x11xf32>
    %6 = tpu.matmul %4, %5, %cst_7 {dimension_numbers = #tpu.dot_dimension_numbers<[1], [0], [0], [1], [0, 0, 1, 1], [], []>} : vector<11x16xbf16>, vector<16x11xbf16>, vector<11x11xf32> -> vector<11x11xf32>
    %7 = arith.truncf %6 : vector<11x11xf32> to vector<11x11xbf16>
    %c0_8 = arith.constant 0 : index
    %c0_9 = arith.constant 0 : index
    %c0_10 = arith.constant 0 : index
    %c0_11 = arith.constant 0 : index
    %8 = vector.load %arg5[%c0_8, %c0_9, %c0_10, %c0_11] : memref<1x3x11x11xbf16, #tpu.memory_space<vmem>>, vector<1x1x11x11xbf16>
    %9 = vector.shape_cast %8 : vector<1x1x11x11xbf16> to vector<11x11xbf16>
    %10 = vector.shape_cast %7 : vector<11x11xbf16> to vector<1x1x11x11xbf16>
    tpu.vector_store %arg5[%c0_8, %c0_9, %c0_10, %c0_11], %10 {strides = array<i32>} : memref<1x3x11x11xbf16, #tpu.memory_space<vmem>>, vector<1x1x11x11xbf16>,
    %c0_12 = arith.constant 0 : index
    %c0_13 = arith.constant 0 : index
    %11 = vector.load %arg3[%c0_12, %c0_13] : memref<11x16xbf16, #tpu.memory_space<vmem>>, vector<11x16xbf16>
    %c0_14 = arith.constant 0 : index
    %c1 = arith.constant 1 : index
    %c0_15 = arith.constant 0 : index
    %c0_16 = arith.constant 0 : index
    %12 = vector.load %arg2[%c0_14, %c1, %c0_15, %c0_16] : memref<1x3x16x16xbf16, #tpu.memory_space<vmem>>, vector<1x1x16x16xbf16>
    %13 = vector.shape_cast %12 : vector<1x1x16x16xbf16> to vector<16x16xbf16>
    %cst_17 = arith.constant dense<0.000000e+00> : vector<11x16xf32>
    %14 = tpu.matmul %11, %13, %cst_17 {dimension_numbers = #tpu.dot_dimension_numbers<[1], [0], [0], [1], [0, 0, 1, 1], [], []>} : vector<11x16xbf16>, vector<16x16xbf16>, vector<11x16xf32> -> vector<11x16xf32>
    %15 = arith.truncf %14 : vector<11x16xf32> to vector<11x16xbf16>
    %c0_18 = arith.constant 0 : index
    %c0_19 = arith.constant 0 : index
    %16 = vector.load %arg4[%c0_18, %c0_19] : memref<16x11xbf16, #tpu.memory_space<vmem>>, vector<16x11xbf16>
    %cst_20 = arith.constant dense<0.000000e+00> : vector<11x11xf32>
    %17 = tpu.matmul %15, %16, %cst_20 {dimension_numbers = #tpu.dot_dimension_numbers<[1], [0], [0], [1], [0, 0, 1, 1], [], []>} : vector<11x16xbf16>, vector<16x11xbf16>, vector<11x11xf32> -> vector<11x11xf32>
    %18 = arith.truncf %17 : vector<11x11xf32> to vector<11x11xbf16>
    %c0_21 = arith.constant 0 : index
    %c1_22 = arith.constant 1 : index
    %c0_23 = arith.constant 0 : index
    %c0_24 = arith.constant 0 : index
    %19 = vector.load %arg5[%c0_21, %c1_22, %c0_23, %c0_24] : memref<1x3x11x11xbf16, #tpu.memory_space<vmem>>, vector<1x1x11x11xbf16>
    %20 = vector.shape_cast %19 : vector<1x1x11x11xbf16> to vector<11x11xbf16>
    %21 = vector.shape_cast %18 : vector<11x11xbf16> to vector<1x1x11x11xbf16>
    tpu.vector_store %arg5[%c0_21, %c1_22, %c0_23, %c0_24], %21 {strides = array<i32>} : memref<1x3x11x11xbf16, #tpu.memory_space<vmem>>, vector<1x1x11x11xbf16>,
    %c0_25 = arith.constant 0 : index
    %c0_26 = arith.constant 0 : index
    %22 = vector.load %arg3[%c0_25, %c0_26] : memref<11x16xbf16, #tpu.memory_space<vmem>>, vector<11x16xbf16>
    %c0_27 = arith.constant 0 : index
    %c2 = arith.constant 2 : index
    %c0_28 = arith.constant 0 : index
    %c0_29 = arith.constant 0 : index
    %23 = vector.load %arg2[%c0_27, %c2, %c0_28, %c0_29] : memref<1x3x16x16xbf16, #tpu.memory_space<vmem>>, vector<1x1x16x16xbf16>
    %24 = vector.shape_cast %23 : vector<1x1x16x16xbf16> to vector<16x16xbf16>
    %cst_30 = arith.constant dense<0.000000e+00> : vector<11x16xf32>
    %25 = tpu.matmul %22, %24, %cst_30 {dimension_numbers = #tpu.dot_dimension_numbers<[1], [0], [0], [1], [0, 0, 1, 1], [], []>} : vector<11x16xbf16>, vector<16x16xbf16>, vector<11x16xf32> -> vector<11x16xf32>
    %26 = arith.truncf %25 : vector<11x16xf32> to vector<11x16xbf16>
    %c0_31 = arith.constant 0 : index
    %c0_32 = arith.constant 0 : index
    %27 = vector.load %arg4[%c0_31, %c0_32] : memref<16x11xbf16, #tpu.memory_space<vmem>>, vector<16x11xbf16>
    %cst_33 = arith.constant dense<0.000000e+00> : vector<11x11xf32>
    %28 = tpu.matmul %26, %27, %cst_33 {dimension_numbers = #tpu.dot_dimension_numbers<[1], [0], [0], [1], [0, 0, 1, 1], [], []>} : vector<11x16xbf16>, vector<16x11xbf16>, vector<11x11xf32> -> vector<11x11xf32>
    %29 = arith.truncf %28 : vector<11x11xf32> to vector<11x11xbf16>
    %c0_34 = arith.constant 0 : index
    %c2_35 = arith.constant 2 : index
    %c0_36 = arith.constant 0 : index
    %c0_37 = arith.constant 0 : index
    %30 = vector.load %arg5[%c0_34, %c2_35, %c0_36, %c0_37] : memref<1x3x11x11xbf16, #tpu.memory_space<vmem>>, vector<1x1x11x11xbf16>
    %31 = vector.shape_cast %30 : vector<1x1x11x11xbf16> to vector<11x11xbf16>
    %32 = vector.shape_cast %29 : vector<11x11xbf16> to vector<1x1x11x11xbf16>
    tpu.vector_store %arg5[%c0_34, %c2_35, %c0_36, %c0_37], %32 {strides = array<i32>} : memref<1x3x11x11xbf16, #tpu.memory_space<vmem>>, vector<1x1x11x11xbf16>,
    return
  }
  func.func @transform_0(%arg0: i32, %arg1: i32) -> (i32, i32, i32, i32) {
    %c0_i32 = arith.constant 0 : i32
    %c0_i32_0 = arith.constant 0 : i32
    %c0_i32_1 = arith.constant 0 : i32
    %c0_i32_2 = arith.constant 0 : i32
    return %arg0, %c0_i32, %c0_i32_0, %c0_i32_1 : i32, i32, i32, i32
  }
  func.func @transform_1(%arg0: i32, %arg1: i32) -> (i32, i32) {
    %c0_i32 = arith.constant 0 : i32
    %c0_i32_0 = arith.constant 0 : i32
    return %arg1, %c0_i32 : i32, i32
  }
  func.func @transform_2(%arg0: i32, %arg1: i32) -> (i32, i32) {
    %c0_i32 = arith.constant 0 : i32
    %c0_i32_0 = arith.constant 0 : i32
    %c0_i32_1 = arith.constant 0 : i32
    return %c0_i32, %c0_i32_0 : i32, i32
  }
  func.func @transform_3(%arg0: i32, %arg1: i32) -> (i32, i32, i32, i32) {
    %c0_i32 = arith.constant 0 : i32
    %c0_i32_0 = arith.constant 0 : i32
    %c0_i32_1 = arith.constant 0 : i32
    return %arg0, %c0_i32, %arg1, %c0_i32_0 : i32, i32, i32, i32
  }
}

module attributes {stable_mosaic.version = 11 : i64} {
  func.func @_resize_kernel(%arg0: i32, %arg1: i32, %arg2: memref<1x3x16x16xbf16, #tpu.memory_space<vmem>>, %arg3: memref<8x16xbf16, #tpu.memory_space<vmem>>, %arg4: memref<16x24xbf16, #tpu.memory_space<vmem>>, %arg5: memref<1x3x8x24xbf16, #tpu.memory_space<vmem>>) attributes {dimension_semantics = [#tpu.dimension_semantics<parallel>, #tpu.dimension_semantics<parallel>], iteration_bounds = array<i64: 2, 3>, scalar_prefetch = 0 : i64, scratch_operands = 0 : i64, tpu.core_type = #tpu.core_type<tc>, window_params = [{transform_indices = @transform_0, window_bounds = array<i64: 1, 3, 16, 16>}, {transform_indices = @transform_1, window_bounds = array<i64: 8, 16>}, {pipeline_mode = #tpu.pipeline_mode<synchronous>, transform_indices = @transform_2, window_bounds = array<i64: 16, 24>}, {transform_indices = @transform_3, window_bounds = array<i64: 1, 3, 8, 24>}]} {
    %c0 = arith.constant 0 : index
    %c0_0 = arith.constant 0 : index
    %0 = vector.load %arg3[%c0, %c0_0] : memref<8x16xbf16, #tpu.memory_space<vmem>>, vector<8x16xbf16>
    %c0_1 = arith.constant 0 : index
    %c0_2 = arith.constant 0 : index
    %c0_3 = arith.constant 0 : index
    %c0_4 = arith.constant 0 : index
    %1 = vector.load %arg2[%c0_1, %c0_2, %c0_3, %c0_4] : memref<1x3x16x16xbf16, #tpu.memory_space<vmem>>, vector<1x1x16x16xbf16>
    %2 = vector.shape_cast %1 : vector<1x1x16x16xbf16> to vector<16x16xbf16>
    %cst = arith.constant dense<0.000000e+00> : vector<8x16xf32>
    %3 = tpu.matmul %0, %2, %cst {dimension_numbers = #tpu.dot_dimension_numbers<[1], [0], [0], [1], [0, 0, 1, 1], [], []>} : vector<8x16xbf16>, vector<16x16xbf16>, vector<8x16xf32> -> vector<8x16xf32>
    %4 = arith.truncf %3 : vector<8x16xf32> to vector<8x16xbf16>
    %c0_5 = arith.constant 0 : index
    %c0_6 = arith.constant 0 : index
    %5 = vector.load %arg3[%c0_5, %c0_6] : memref<8x16xbf16, #tpu.memory_space<vmem>>, vector<8x16xbf16>
    %c0_7 = arith.constant 0 : index
    %c1 = arith.constant 1 : index
    %c0_8 = arith.constant 0 : index
    %c0_9 = arith.constant 0 : index
    %6 = vector.load %arg2[%c0_7, %c1, %c0_8, %c0_9] : memref<1x3x16x16xbf16, #tpu.memory_space<vmem>>, vector<1x1x16x16xbf16>
    %7 = vector.shape_cast %6 : vector<1x1x16x16xbf16> to vector<16x16xbf16>
    %cst_10 = arith.constant dense<0.000000e+00> : vector<8x16xf32>
    %8 = tpu.matmul %5, %7, %cst_10 {dimension_numbers = #tpu.dot_dimension_numbers<[1], [0], [0], [1], [0, 0, 1, 1], [], []>} : vector<8x16xbf16>, vector<16x16xbf16>, vector<8x16xf32> -> vector<8x16xf32>
    %9 = arith.truncf %8 : vector<8x16xf32> to vector<8x16xbf16>
    %c0_11 = arith.constant 0 : index
    %c0_12 = arith.constant 0 : index
    %10 = vector.load %arg3[%c0_11, %c0_12] : memref<8x16xbf16, #tpu.memory_space<vmem>>, vector<8x16xbf16>
    %c0_13 = arith.constant 0 : index
    %c2 = arith.constant 2 : index
    %c0_14 = arith.constant 0 : index
    %c0_15 = arith.constant 0 : index
    %11 = vector.load %arg2[%c0_13, %c2, %c0_14, %c0_15] : memref<1x3x16x16xbf16, #tpu.memory_space<vmem>>, vector<1x1x16x16xbf16>
    %12 = vector.shape_cast %11 : vector<1x1x16x16xbf16> to vector<16x16xbf16>
    %cst_16 = arith.constant dense<0.000000e+00> : vector<8x16xf32>
    %13 = tpu.matmul %10, %12, %cst_16 {dimension_numbers = #tpu.dot_dimension_numbers<[1], [0], [0], [1], [0, 0, 1, 1], [], []>} : vector<8x16xbf16>, vector<16x16xbf16>, vector<8x16xf32> -> vector<8x16xf32>
    %14 = arith.truncf %13 : vector<8x16xf32> to vector<8x16xbf16>
    %15 = tpu.concatenate %4, %9, %14 in 0 : vector<8x16xbf16>, vector<8x16xbf16>, vector<8x16xbf16> -> vector<24x16xbf16>
    %c0_17 = arith.constant 0 : index
    %c0_18 = arith.constant 0 : index
    %16 = vector.load %arg4[%c0_17, %c0_18] : memref<16x24xbf16, #tpu.memory_space<vmem>>, vector<16x24xbf16>
    %cst_19 = arith.constant dense<0.000000e+00> : vector<24x24xf32>
    %17 = tpu.matmul %15, %16, %cst_19 {dimension_numbers = #tpu.dot_dimension_numbers<[1], [0], [0], [1], [0, 0, 1, 1], [], []>} : vector<24x16xbf16>, vector<16x24xbf16>, vector<24x24xf32> -> vector<24x24xf32>
    %18 = vector.extract_strided_slice %17 {offsets = [0, 0], sizes = [8, 24], strides = [1, 1]} : vector<24x24xf32> to vector<8x24xf32>
    %19 = arith.truncf %18 : vector<8x24xf32> to vector<8x24xbf16>
    %c0_20 = arith.constant 0 : index
    %c0_21 = arith.constant 0 : index
    %c0_22 = arith.constant 0 : index
    %c0_23 = arith.constant 0 : index
    %20 = vector.load %arg5[%c0_20, %c0_21, %c0_22, %c0_23] : memref<1x3x8x24xbf16, #tpu.memory_space<vmem>>, vector<1x1x8x24xbf16>
    %21 = vector.shape_cast %20 : vector<1x1x8x24xbf16> to vector<8x24xbf16>
    %22 = vector.shape_cast %19 : vector<8x24xbf16> to vector<1x1x8x24xbf16>
    tpu.vector_store %arg5[%c0_20, %c0_21, %c0_22, %c0_23], %22 {strides = array<i32>} : memref<1x3x8x24xbf16, #tpu.memory_space<vmem>>, vector<1x1x8x24xbf16>,
    %23 = vector.extract_strided_slice %17 {offsets = [8, 0], sizes = [8, 24], strides = [1, 1]} : vector<24x24xf32> to vector<8x24xf32>
    %24 = arith.truncf %23 : vector<8x24xf32> to vector<8x24xbf16>
    %c0_24 = arith.constant 0 : index
    %c1_25 = arith.constant 1 : index
    %c0_26 = arith.constant 0 : index
    %c0_27 = arith.constant 0 : index
    %25 = vector.load %arg5[%c0_24, %c1_25, %c0_26, %c0_27] : memref<1x3x8x24xbf16, #tpu.memory_space<vmem>>, vector<1x1x8x24xbf16>
    %26 = vector.shape_cast %25 : vector<1x1x8x24xbf16> to vector<8x24xbf16>
    %27 = vector.shape_cast %24 : vector<8x24xbf16> to vector<1x1x8x24xbf16>
    tpu.vector_store %arg5[%c0_24, %c1_25, %c0_26, %c0_27], %27 {strides = array<i32>} : memref<1x3x8x24xbf16, #tpu.memory_space<vmem>>, vector<1x1x8x24xbf16>,
    %28 = vector.extract_strided_slice %17 {offsets = [16, 0], sizes = [8, 24], strides = [1, 1]} : vector<24x24xf32> to vector<8x24xf32>
    %29 = arith.truncf %28 : vector<8x24xf32> to vector<8x24xbf16>
    %c0_28 = arith.constant 0 : index
    %c2_29 = arith.constant 2 : index
    %c0_30 = arith.constant 0 : index
    %c0_31 = arith.constant 0 : index
    %30 = vector.load %arg5[%c0_28, %c2_29, %c0_30, %c0_31] : memref<1x3x8x24xbf16, #tpu.memory_space<vmem>>, vector<1x1x8x24xbf16>
    %31 = vector.shape_cast %30 : vector<1x1x8x24xbf16> to vector<8x24xbf16>
    %32 = vector.shape_cast %29 : vector<8x24xbf16> to vector<1x1x8x24xbf16>
    tpu.vector_store %arg5[%c0_28, %c2_29, %c0_30, %c0_31], %32 {strides = array<i32>} : memref<1x3x8x24xbf16, #tpu.memory_space<vmem>>, vector<1x1x8x24xbf16>,
    return
  }
  func.func @transform_0(%arg0: i32, %arg1: i32) -> (i32, i32, i32, i32) {
    %c0_i32 = arith.constant 0 : i32
    %c0_i32_0 = arith.constant 0 : i32
    %c0_i32_1 = arith.constant 0 : i32
    %c0_i32_2 = arith.constant 0 : i32
    return %arg0, %c0_i32, %c0_i32_0, %c0_i32_1 : i32, i32, i32, i32
  }
  func.func @transform_1(%arg0: i32, %arg1: i32) -> (i32, i32) {
    %c0_i32 = arith.constant 0 : i32
    %c0_i32_0 = arith.constant 0 : i32
    return %arg1, %c0_i32 : i32, i32
  }
  func.func @transform_2(%arg0: i32, %arg1: i32) -> (i32, i32) {
    %c0_i32 = arith.constant 0 : i32
    %c0_i32_0 = arith.constant 0 : i32
    %c0_i32_1 = arith.constant 0 : i32
    return %c0_i32, %c0_i32_0 : i32, i32
  }
  func.func @transform_3(%arg0: i32, %arg1: i32) -> (i32, i32, i32, i32) {
    %c0_i32 = arith.constant 0 : i32
    %c0_i32_0 = arith.constant 0 : i32
    %c0_i32_1 = arith.constant 0 : i32
    return %arg0, %c0_i32, %arg1, %c0_i32_0 : i32, i32, i32, i32
  }
}

module attributes {stable_mosaic.version = 11 : i64} {
  func.func @_seg_head_kernel(%arg0: i32, %arg1: i32, %arg2: memref<1x3x640xbf16, #tpu.memory_space<vmem>>, %arg3: memref<32x3xf32, #tpu.memory_space<vmem>>, %arg4: memref<32x1xf32, #tpu.memory_space<vmem>>, %arg5: memref<2x32xf32, #tpu.memory_space<vmem>>, %arg6: memref<2x1xf32, #tpu.memory_space<vmem>>, %arg7: memref<1x2x640xbf16, #tpu.memory_space<vmem>>) attributes {dimension_semantics = [#tpu.dimension_semantics<parallel>, #tpu.dimension_semantics<parallel>], iteration_bounds = array<i64: 2, 1>, scalar_prefetch = 0 : i64, scratch_operands = 0 : i64, tpu.core_type = #tpu.core_type<tc>, window_params = [{transform_indices = @transform_0, window_bounds = array<i64: 1, 3, 640>}, {pipeline_mode = #tpu.pipeline_mode<synchronous>, transform_indices = @transform_1, window_bounds = array<i64: 32, 3>}, {pipeline_mode = #tpu.pipeline_mode<synchronous>, transform_indices = @transform_2, window_bounds = array<i64: 32, 1>}, {pipeline_mode = #tpu.pipeline_mode<synchronous>, transform_indices = @transform_3, window_bounds = array<i64: 2, 32>}, {pipeline_mode = #tpu.pipeline_mode<synchronous>, transform_indices = @transform_4, window_bounds = array<i64: 2, 1>}, {transform_indices = @transform_5, window_bounds = array<i64: 1, 2, 640>}]} {
    %c0 = arith.constant 0 : index
    %c0_0 = arith.constant 0 : index
    %c0_1 = arith.constant 0 : index
    %0 = vector.load %arg2[%c0, %c0_0, %c0_1] : memref<1x3x640xbf16, #tpu.memory_space<vmem>>, vector<1x3x640xbf16>
    %1 = vector.shape_cast %0 : vector<1x3x640xbf16> to vector<3x640xbf16>
    %2 = arith.extf %1 : vector<3x640xbf16> to vector<3x640xf32>
    %c0_2 = arith.constant 0 : index
    %c0_3 = arith.constant 0 : index
    %3 = vector.load %arg3[%c0_2, %c0_3] : memref<32x3xf32, #tpu.memory_space<vmem>>, vector<32x3xf32>
    %cst = arith.constant dense<0.000000e+00> : vector<32x640xf32>
    %4 = tpu.matmul %3, %2, %cst {dimension_numbers = #tpu.dot_dimension_numbers<[1], [0], [0], [1], [0, 0, 1, 1], [], []>} : vector<32x3xf32>, vector<3x640xf32>, vector<32x640xf32> -> vector<32x640xf32>
    %c0_4 = arith.constant 0 : index
    %c0_5 = arith.constant 0 : index
    %5 = vector.load %arg4[%c0_4, %c0_5] : memref<32x1xf32, #tpu.memory_space<vmem>>, vector<32x1xf32>
    %6 = vector.broadcast %5 : vector<32x1xf32> to vector<32x640xf32>
    %7 = arith.addf %4, %6 : vector<32x640xf32>
    %8 = arith.mulf %7, %7 : vector<32x640xf32>
    %9 = arith.mulf %7, %8 : vector<32x640xf32>
    %cst_6 = arith.constant 4.471500e-02 : f32
    %10 = vector.broadcast %cst_6 : f32 to vector<32x640xf32>
    %11 = arith.mulf %10, %9 : vector<32x640xf32>
    %12 = arith.addf %7, %11 : vector<32x640xf32>
    %cst_7 = arith.constant 0.797884583 : f32
    %13 = vector.broadcast %cst_7 : f32 to vector<32x640xf32>
    %14 = arith.mulf %13, %12 : vector<32x640xf32>
    %15 = math.tanh %14 : vector<32x640xf32>
    %cst_8 = arith.constant 1.000000e+00 : f32
    %16 = vector.broadcast %cst_8 : f32 to vector<32x640xf32>
    %17 = arith.addf %16, %15 : vector<32x640xf32>
    %cst_9 = arith.constant 5.000000e-01 : f32
    %18 = vector.broadcast %cst_9 : f32 to vector<32x640xf32>
    %19 = arith.mulf %18, %17 : vector<32x640xf32>
    %20 = arith.mulf %7, %19 : vector<32x640xf32>
    %c0_10 = arith.constant 0 : index
    %c0_11 = arith.constant 0 : index
    %21 = vector.load %arg5[%c0_10, %c0_11] : memref<2x32xf32, #tpu.memory_space<vmem>>, vector<2x32xf32>
    %cst_12 = arith.constant dense<0.000000e+00> : vector<2x640xf32>
    %22 = tpu.matmul %21, %20, %cst_12 {dimension_numbers = #tpu.dot_dimension_numbers<[1], [0], [0], [1], [0, 0, 1, 1], [], []>} : vector<2x32xf32>, vector<32x640xf32>, vector<2x640xf32> -> vector<2x640xf32>
    %c0_13 = arith.constant 0 : index
    %c0_14 = arith.constant 0 : index
    %23 = vector.load %arg6[%c0_13, %c0_14] : memref<2x1xf32, #tpu.memory_space<vmem>>, vector<2x1xf32>
    %24 = vector.broadcast %23 : vector<2x1xf32> to vector<2x640xf32>
    %25 = arith.addf %22, %24 : vector<2x640xf32>
    %26 = arith.truncf %25 : vector<2x640xf32> to vector<2x640xbf16>
    %c0_15 = arith.constant 0 : index
    %c0_16 = arith.constant 0 : index
    %c0_17 = arith.constant 0 : index
    %27 = vector.load %arg7[%c0_15, %c0_16, %c0_17] : memref<1x2x640xbf16, #tpu.memory_space<vmem>>, vector<1x2x640xbf16>
    %28 = vector.shape_cast %27 : vector<1x2x640xbf16> to vector<2x640xbf16>
    %29 = vector.shape_cast %26 : vector<2x640xbf16> to vector<1x2x640xbf16>
    tpu.vector_store %arg7[%c0_15, %c0_16, %c0_17], %29 {strides = array<i32>} : memref<1x2x640xbf16, #tpu.memory_space<vmem>>, vector<1x2x640xbf16>,
    return
  }
  func.func @transform_0(%arg0: i32, %arg1: i32) -> (i32, i32, i32) {
    %c0_i32 = arith.constant 0 : i32
    %c0_i32_0 = arith.constant 0 : i32
    return %arg0, %c0_i32, %arg1 : i32, i32, i32
  }
  func.func @transform_1(%arg0: i32, %arg1: i32) -> (i32, i32) {
    %c0_i32 = arith.constant 0 : i32
    %c0_i32_0 = arith.constant 0 : i32
    %c0_i32_1 = arith.constant 0 : i32
    return %c0_i32, %c0_i32_0 : i32, i32
  }
  func.func @transform_2(%arg0: i32, %arg1: i32) -> (i32, i32) {
    %c0_i32 = arith.constant 0 : i32
    %c0_i32_0 = arith.constant 0 : i32
    %c0_i32_1 = arith.constant 0 : i32
    return %c0_i32, %c0_i32_0 : i32, i32
  }
  func.func @transform_3(%arg0: i32, %arg1: i32) -> (i32, i32) {
    %c0_i32 = arith.constant 0 : i32
    %c0_i32_0 = arith.constant 0 : i32
    %c0_i32_1 = arith.constant 0 : i32
    return %c0_i32, %c0_i32_0 : i32, i32
  }
  func.func @transform_4(%arg0: i32, %arg1: i32) -> (i32, i32) {
    %c0_i32 = arith.constant 0 : i32
    %c0_i32_0 = arith.constant 0 : i32
    %c0_i32_1 = arith.constant 0 : i32
    return %c0_i32, %c0_i32_0 : i32, i32
  }
  func.func @transform_5(%arg0: i32, %arg1: i32) -> (i32, i32, i32) {
    %c0_i32 = arith.constant 0 : i32
    %c0_i32_0 = arith.constant 0 : i32
    return %arg0, %c0_i32, %arg1 : i32, i32, i32
  }
}

module attributes {stable_mosaic.version = 11 : i64} {
  func.func @_fuse_kernel(%arg0: i32, %arg1: i32, %arg2: memref<1x2x8x16xf32, #tpu.memory_space<vmem>>, %arg3: memref<1x2x11x11xbf16, #tpu.memory_space<vmem>>, %arg4: memref<1x2x24x24xbf16, #tpu.memory_space<vmem>>, %arg5: memref<8x11xbf16, #tpu.memory_space<vmem>>, %arg6: memref<11x16xbf16, #tpu.memory_space<vmem>>, %arg7: memref<8x24xbf16, #tpu.memory_space<vmem>>, %arg8: memref<24x16xbf16, #tpu.memory_space<vmem>>, %arg9: memref<6x3xf32, #tpu.memory_space<smem>>, %arg10: memref<3xf32, #tpu.memory_space<smem>>, %arg11: memref<1x2x8x16xf32, #tpu.memory_space<vmem>>, %arg12: memref<1x2x8x16xf32, #tpu.memory_space<vmem>>, %arg13: memref<1x3x8x16xf32, #tpu.memory_space<vmem>>) attributes {dimension_semantics = [#tpu.dimension_semantics<parallel>, #tpu.dimension_semantics<parallel>], iteration_bounds = array<i64: 2, 2>, scalar_prefetch = 0 : i64, scratch_operands = 0 : i64, tpu.core_type = #tpu.core_type<tc>, window_params = [{transform_indices = @transform_0, window_bounds = array<i64: 1, 2, 8, 16>}, {transform_indices = @transform_1, window_bounds = array<i64: 1, 2, 11, 11>}, {transform_indices = @transform_2, window_bounds = array<i64: 1, 2, 24, 24>}, {transform_indices = @transform_3, window_bounds = array<i64: 8, 11>}, {pipeline_mode = #tpu.pipeline_mode<synchronous>, transform_indices = @transform_4, window_bounds = array<i64: 11, 16>}, {transform_indices = @transform_5, window_bounds = array<i64: 8, 24>}, {pipeline_mode = #tpu.pipeline_mode<synchronous>, transform_indices = @transform_6, window_bounds = array<i64: 24, 16>}, {transform_indices = @transform_7, window_bounds = array<i64: 6, 3>}, {transform_indices = @transform_8, window_bounds = array<i64: 3>}, {transform_indices = @transform_9, window_bounds = array<i64: 1, 2, 8, 16>}, {transform_indices = @transform_10, window_bounds = array<i64: 1, 2, 8, 16>}, {transform_indices = @transform_11, window_bounds = array<i64: 1, 3, 8, 16>}]} {
    %c0 = arith.constant 0 : index
    %c0_0 = arith.constant 0 : index
    %0 = vector.load %arg5[%c0, %c0_0] : memref<8x11xbf16, #tpu.memory_space<vmem>>, vector<8x11xbf16>
    %c0_1 = arith.constant 0 : index
    %c0_2 = arith.constant 0 : index
    %c0_3 = arith.constant 0 : index
    %c0_4 = arith.constant 0 : index
    %1 = vector.load %arg3[%c0_1, %c0_2, %c0_3, %c0_4] : memref<1x2x11x11xbf16, #tpu.memory_space<vmem>>, vector<1x1x11x11xbf16>
    %2 = vector.shape_cast %1 : vector<1x1x11x11xbf16> to vector<11x11xbf16>
    %cst = arith.constant dense<0.000000e+00> : vector<8x11xf32>
    %3 = tpu.matmul %0, %2, %cst {dimension_numbers = #tpu.dot_dimension_numbers<[1], [0], [0], [1], [0, 0, 1, 1], [], []>} : vector<8x11xbf16>, vector<11x11xbf16>, vector<8x11xf32> -> vector<8x11xf32>
    %4 = arith.truncf %3 : vector<8x11xf32> to vector<8x11xbf16>
    %c0_5 = arith.constant 0 : index
    %c0_6 = arith.constant 0 : index
    %5 = vector.load %arg5[%c0_5, %c0_6] : memref<8x11xbf16, #tpu.memory_space<vmem>>, vector<8x11xbf16>
    %c0_7 = arith.constant 0 : index
    %c1 = arith.constant 1 : index
    %c0_8 = arith.constant 0 : index
    %c0_9 = arith.constant 0 : index
    %6 = vector.load %arg3[%c0_7, %c1, %c0_8, %c0_9] : memref<1x2x11x11xbf16, #tpu.memory_space<vmem>>, vector<1x1x11x11xbf16>
    %7 = vector.shape_cast %6 : vector<1x1x11x11xbf16> to vector<11x11xbf16>
    %cst_10 = arith.constant dense<0.000000e+00> : vector<8x11xf32>
    %8 = tpu.matmul %5, %7, %cst_10 {dimension_numbers = #tpu.dot_dimension_numbers<[1], [0], [0], [1], [0, 0, 1, 1], [], []>} : vector<8x11xbf16>, vector<11x11xbf16>, vector<8x11xf32> -> vector<8x11xf32>
    %9 = arith.truncf %8 : vector<8x11xf32> to vector<8x11xbf16>
    %10 = tpu.concatenate %4, %9 in 0 : vector<8x11xbf16>, vector<8x11xbf16> -> vector<16x11xbf16>
    %c0_11 = arith.constant 0 : index
    %c0_12 = arith.constant 0 : index
    %11 = vector.load %arg6[%c0_11, %c0_12] : memref<11x16xbf16, #tpu.memory_space<vmem>>, vector<11x16xbf16>
    %cst_13 = arith.constant dense<0.000000e+00> : vector<16x16xf32>
    %12 = tpu.matmul %10, %11, %cst_13 {dimension_numbers = #tpu.dot_dimension_numbers<[1], [0], [0], [1], [0, 0, 1, 1], [], []>} : vector<16x11xbf16>, vector<11x16xbf16>, vector<16x16xf32> -> vector<16x16xf32>
    %13 = vector.extract_strided_slice %12 {offsets = [0, 0], sizes = [8, 16], strides = [1, 1]} : vector<16x16xf32> to vector<8x16xf32>
    %14 = vector.extract_strided_slice %12 {offsets = [8, 0], sizes = [8, 16], strides = [1, 1]} : vector<16x16xf32> to vector<8x16xf32>
    %c0_14 = arith.constant 0 : index
    %c0_15 = arith.constant 0 : index
    %15 = vector.load %arg7[%c0_14, %c0_15] : memref<8x24xbf16, #tpu.memory_space<vmem>>, vector<8x24xbf16>
    %c0_16 = arith.constant 0 : index
    %c0_17 = arith.constant 0 : index
    %c0_18 = arith.constant 0 : index
    %c0_19 = arith.constant 0 : index
    %16 = vector.load %arg4[%c0_16, %c0_17, %c0_18, %c0_19] : memref<1x2x24x24xbf16, #tpu.memory_space<vmem>>, vector<1x1x24x24xbf16>
    %17 = vector.shape_cast %16 : vector<1x1x24x24xbf16> to vector<24x24xbf16>
    %cst_20 = arith.constant dense<0.000000e+00> : vector<8x24xf32>
    %18 = tpu.matmul %15, %17, %cst_20 {dimension_numbers = #tpu.dot_dimension_numbers<[1], [0], [0], [1], [0, 0, 1, 1], [], []>} : vector<8x24xbf16>, vector<24x24xbf16>, vector<8x24xf32> -> vector<8x24xf32>
    %19 = arith.truncf %18 : vector<8x24xf32> to vector<8x24xbf16>
    %c0_21 = arith.constant 0 : index
    %c0_22 = arith.constant 0 : index
    %20 = vector.load %arg7[%c0_21, %c0_22] : memref<8x24xbf16, #tpu.memory_space<vmem>>, vector<8x24xbf16>
    %c0_23 = arith.constant 0 : index
    %c1_24 = arith.constant 1 : index
    %c0_25 = arith.constant 0 : index
    %c0_26 = arith.constant 0 : index
    %21 = vector.load %arg4[%c0_23, %c1_24, %c0_25, %c0_26] : memref<1x2x24x24xbf16, #tpu.memory_space<vmem>>, vector<1x1x24x24xbf16>
    %22 = vector.shape_cast %21 : vector<1x1x24x24xbf16> to vector<24x24xbf16>
    %cst_27 = arith.constant dense<0.000000e+00> : vector<8x24xf32>
    %23 = tpu.matmul %20, %22, %cst_27 {dimension_numbers = #tpu.dot_dimension_numbers<[1], [0], [0], [1], [0, 0, 1, 1], [], []>} : vector<8x24xbf16>, vector<24x24xbf16>, vector<8x24xf32> -> vector<8x24xf32>
    %24 = arith.truncf %23 : vector<8x24xf32> to vector<8x24xbf16>
    %25 = tpu.concatenate %19, %24 in 0 : vector<8x24xbf16>, vector<8x24xbf16> -> vector<16x24xbf16>
    %c0_28 = arith.constant 0 : index
    %c0_29 = arith.constant 0 : index
    %26 = vector.load %arg8[%c0_28, %c0_29] : memref<24x16xbf16, #tpu.memory_space<vmem>>, vector<24x16xbf16>
    %cst_30 = arith.constant dense<0.000000e+00> : vector<16x16xf32>
    %27 = tpu.matmul %25, %26, %cst_30 {dimension_numbers = #tpu.dot_dimension_numbers<[1], [0], [0], [1], [0, 0, 1, 1], [], []>} : vector<16x24xbf16>, vector<24x16xbf16>, vector<16x16xf32> -> vector<16x16xf32>
    %28 = vector.extract_strided_slice %27 {offsets = [0, 0], sizes = [8, 16], strides = [1, 1]} : vector<16x16xf32> to vector<8x16xf32>
    %29 = vector.extract_strided_slice %27 {offsets = [8, 0], sizes = [8, 16], strides = [1, 1]} : vector<16x16xf32> to vector<8x16xf32>
    %c0_31 = arith.constant 0 : index
    %c0_32 = arith.constant 0 : index
    %c0_33 = arith.constant 0 : index
    %c0_34 = arith.constant 0 : index
    %30 = vector.load %arg11[%c0_31, %c0_32, %c0_33, %c0_34] : memref<1x2x8x16xf32, #tpu.memory_space<vmem>>, vector<1x1x8x16xf32>
    %31 = vector.shape_cast %30 : vector<1x1x8x16xf32> to vector<8x16xf32>
    %32 = vector.shape_cast %13 : vector<8x16xf32> to vector<1x1x8x16xf32>
    tpu.vector_store %arg11[%c0_31, %c0_32, %c0_33, %c0_34], %32 {strides = array<i32>} : memref<1x2x8x16xf32, #tpu.memory_space<vmem>>, vector<1x1x8x16xf32>,
    %c0_35 = arith.constant 0 : index
    %c0_36 = arith.constant 0 : index
    %c0_37 = arith.constant 0 : index
    %c0_38 = arith.constant 0 : index
    %33 = vector.load %arg12[%c0_35, %c0_36, %c0_37, %c0_38] : memref<1x2x8x16xf32, #tpu.memory_space<vmem>>, vector<1x1x8x16xf32>
    %34 = vector.shape_cast %33 : vector<1x1x8x16xf32> to vector<8x16xf32>
    %35 = vector.shape_cast %28 : vector<8x16xf32> to vector<1x1x8x16xf32>
    tpu.vector_store %arg12[%c0_35, %c0_36, %c0_37, %c0_38], %35 {strides = array<i32>} : memref<1x2x8x16xf32, #tpu.memory_space<vmem>>, vector<1x1x8x16xf32>,
    %c0_39 = arith.constant 0 : index
    %c1_40 = arith.constant 1 : index
    %c0_41 = arith.constant 0 : index
    %c0_42 = arith.constant 0 : index
    %36 = vector.load %arg11[%c0_39, %c1_40, %c0_41, %c0_42] : memref<1x2x8x16xf32, #tpu.memory_space<vmem>>, vector<1x1x8x16xf32>
    %37 = vector.shape_cast %36 : vector<1x1x8x16xf32> to vector<8x16xf32>
    %38 = vector.shape_cast %14 : vector<8x16xf32> to vector<1x1x8x16xf32>
    tpu.vector_store %arg11[%c0_39, %c1_40, %c0_41, %c0_42], %38 {strides = array<i32>} : memref<1x2x8x16xf32, #tpu.memory_space<vmem>>, vector<1x1x8x16xf32>,
    %c0_43 = arith.constant 0 : index
    %c1_44 = arith.constant 1 : index
    %c0_45 = arith.constant 0 : index
    %c0_46 = arith.constant 0 : index
    %39 = vector.load %arg12[%c0_43, %c1_44, %c0_45, %c0_46] : memref<1x2x8x16xf32, #tpu.memory_space<vmem>>, vector<1x1x8x16xf32>
    %40 = vector.shape_cast %39 : vector<1x1x8x16xf32> to vector<8x16xf32>
    %41 = vector.shape_cast %29 : vector<8x16xf32> to vector<1x1x8x16xf32>
    tpu.vector_store %arg12[%c0_43, %c1_44, %c0_45, %c0_46], %41 {strides = array<i32>} : memref<1x2x8x16xf32, #tpu.memory_space<vmem>>, vector<1x1x8x16xf32>,
    %c0_47 = arith.constant 0 : index
    %c0_48 = arith.constant 0 : index
    %c0_49 = arith.constant 0 : index
    %c0_50 = arith.constant 0 : index
    %42 = vector.load %arg2[%c0_47, %c0_48, %c0_49, %c0_50] : memref<1x2x8x16xf32, #tpu.memory_space<vmem>>, vector<1x1x8x16xf32>
    %43 = vector.shape_cast %42 : vector<1x1x8x16xf32> to vector<8x16xf32>
    %c0_51 = arith.constant 0 : index
    %c1_52 = arith.constant 1 : index
    %c0_53 = arith.constant 0 : index
    %c0_54 = arith.constant 0 : index
    %44 = vector.load %arg2[%c0_51, %c1_52, %c0_53, %c0_54] : memref<1x2x8x16xf32, #tpu.memory_space<vmem>>, vector<1x1x8x16xf32>
    %45 = vector.shape_cast %44 : vector<1x1x8x16xf32> to vector<8x16xf32>
    %c0_55 = arith.constant 0 : index
    %c0_56 = arith.constant 0 : index
    %46 = memref.load %arg9[%c0_55, %c0_56] : memref<6x3xf32, #tpu.memory_space<smem>>
    %47 = vector.broadcast %46 : f32 to vector<8x16xf32>
    %48 = arith.mulf %43, %47 : vector<8x16xf32>
    %c0_57 = arith.constant 0 : index
    %49 = memref.load %arg10[%c0_57] : memref<3xf32, #tpu.memory_space<smem>>
    %50 = vector.broadcast %49 : f32 to vector<8x16xf32>
    %51 = arith.addf %48, %50 : vector<8x16xf32>
    %c1_58 = arith.constant 1 : index
    %c0_59 = arith.constant 0 : index
    %52 = memref.load %arg9[%c1_58, %c0_59] : memref<6x3xf32, #tpu.memory_space<smem>>
    %53 = vector.broadcast %52 : f32 to vector<8x16xf32>
    %54 = arith.mulf %45, %53 : vector<8x16xf32>
    %55 = arith.addf %51, %54 : vector<8x16xf32>
    %c2 = arith.constant 2 : index
    %c0_60 = arith.constant 0 : index
    %56 = memref.load %arg9[%c2, %c0_60] : memref<6x3xf32, #tpu.memory_space<smem>>
    %57 = vector.broadcast %56 : f32 to vector<8x16xf32>
    %58 = arith.mulf %13, %57 : vector<8x16xf32>
    %59 = arith.addf %55, %58 : vector<8x16xf32>
    %c3 = arith.constant 3 : index
    %c0_61 = arith.constant 0 : index
    %60 = memref.load %arg9[%c3, %c0_61] : memref<6x3xf32, #tpu.memory_space<smem>>
    %61 = vector.broadcast %60 : f32 to vector<8x16xf32>
    %62 = arith.mulf %14, %61 : vector<8x16xf32>
    %63 = arith.addf %59, %62 : vector<8x16xf32>
    %c4 = arith.constant 4 : index
    %c0_62 = arith.constant 0 : index
    %64 = memref.load %arg9[%c4, %c0_62] : memref<6x3xf32, #tpu.memory_space<smem>>
    %65 = vector.broadcast %64 : f32 to vector<8x16xf32>
    %66 = arith.mulf %28, %65 : vector<8x16xf32>
    %67 = arith.addf %63, %66 : vector<8x16xf32>
    %c5 = arith.constant 5 : index
    %c0_63 = arith.constant 0 : index
    %68 = memref.load %arg9[%c5, %c0_63] : memref<6x3xf32, #tpu.memory_space<smem>>
    %69 = vector.broadcast %68 : f32 to vector<8x16xf32>
    %70 = arith.mulf %29, %69 : vector<8x16xf32>
    %71 = arith.addf %67, %70 : vector<8x16xf32>
    %c0_64 = arith.constant 0 : index
    %c1_65 = arith.constant 1 : index
    %72 = memref.load %arg9[%c0_64, %c1_65] : memref<6x3xf32, #tpu.memory_space<smem>>
    %73 = vector.broadcast %72 : f32 to vector<8x16xf32>
    %74 = arith.mulf %43, %73 : vector<8x16xf32>
    %c1_66 = arith.constant 1 : index
    %75 = memref.load %arg10[%c1_66] : memref<3xf32, #tpu.memory_space<smem>>
    %76 = vector.broadcast %75 : f32 to vector<8x16xf32>
    %77 = arith.addf %74, %76 : vector<8x16xf32>
    %c1_67 = arith.constant 1 : index
    %c1_68 = arith.constant 1 : index
    %78 = memref.load %arg9[%c1_67, %c1_68] : memref<6x3xf32, #tpu.memory_space<smem>>
    %79 = vector.broadcast %78 : f32 to vector<8x16xf32>
    %80 = arith.mulf %45, %79 : vector<8x16xf32>
    %81 = arith.addf %77, %80 : vector<8x16xf32>
    %c2_69 = arith.constant 2 : index
    %c1_70 = arith.constant 1 : index
    %82 = memref.load %arg9[%c2_69, %c1_70] : memref<6x3xf32, #tpu.memory_space<smem>>
    %83 = vector.broadcast %82 : f32 to vector<8x16xf32>
    %84 = arith.mulf %13, %83 : vector<8x16xf32>
    %85 = arith.addf %81, %84 : vector<8x16xf32>
    %c3_71 = arith.constant 3 : index
    %c1_72 = arith.constant 1 : index
    %86 = memref.load %arg9[%c3_71, %c1_72] : memref<6x3xf32, #tpu.memory_space<smem>>
    %87 = vector.broadcast %86 : f32 to vector<8x16xf32>
    %88 = arith.mulf %14, %87 : vector<8x16xf32>
    %89 = arith.addf %85, %88 : vector<8x16xf32>
    %c4_73 = arith.constant 4 : index
    %c1_74 = arith.constant 1 : index
    %90 = memref.load %arg9[%c4_73, %c1_74] : memref<6x3xf32, #tpu.memory_space<smem>>
    %91 = vector.broadcast %90 : f32 to vector<8x16xf32>
    %92 = arith.mulf %28, %91 : vector<8x16xf32>
    %93 = arith.addf %89, %92 : vector<8x16xf32>
    %c5_75 = arith.constant 5 : index
    %c1_76 = arith.constant 1 : index
    %94 = memref.load %arg9[%c5_75, %c1_76] : memref<6x3xf32, #tpu.memory_space<smem>>
    %95 = vector.broadcast %94 : f32 to vector<8x16xf32>
    %96 = arith.mulf %29, %95 : vector<8x16xf32>
    %97 = arith.addf %93, %96 : vector<8x16xf32>
    %c0_77 = arith.constant 0 : index
    %c2_78 = arith.constant 2 : index
    %98 = memref.load %arg9[%c0_77, %c2_78] : memref<6x3xf32, #tpu.memory_space<smem>>
    %99 = vector.broadcast %98 : f32 to vector<8x16xf32>
    %100 = arith.mulf %43, %99 : vector<8x16xf32>
    %c2_79 = arith.constant 2 : index
    %101 = memref.load %arg10[%c2_79] : memref<3xf32, #tpu.memory_space<smem>>
    %102 = vector.broadcast %101 : f32 to vector<8x16xf32>
    %103 = arith.addf %100, %102 : vector<8x16xf32>
    %c1_80 = arith.constant 1 : index
    %c2_81 = arith.constant 2 : index
    %104 = memref.load %arg9[%c1_80, %c2_81] : memref<6x3xf32, #tpu.memory_space<smem>>
    %105 = vector.broadcast %104 : f32 to vector<8x16xf32>
    %106 = arith.mulf %45, %105 : vector<8x16xf32>
    %107 = arith.addf %103, %106 : vector<8x16xf32>
    %c2_82 = arith.constant 2 : index
    %c2_83 = arith.constant 2 : index
    %108 = memref.load %arg9[%c2_82, %c2_83] : memref<6x3xf32, #tpu.memory_space<smem>>
    %109 = vector.broadcast %108 : f32 to vector<8x16xf32>
    %110 = arith.mulf %13, %109 : vector<8x16xf32>
    %111 = arith.addf %107, %110 : vector<8x16xf32>
    %c3_84 = arith.constant 3 : index
    %c2_85 = arith.constant 2 : index
    %112 = memref.load %arg9[%c3_84, %c2_85] : memref<6x3xf32, #tpu.memory_space<smem>>
    %113 = vector.broadcast %112 : f32 to vector<8x16xf32>
    %114 = arith.mulf %14, %113 : vector<8x16xf32>
    %115 = arith.addf %111, %114 : vector<8x16xf32>
    %c4_86 = arith.constant 4 : index
    %c2_87 = arith.constant 2 : index
    %116 = memref.load %arg9[%c4_86, %c2_87] : memref<6x3xf32, #tpu.memory_space<smem>>
    %117 = vector.broadcast %116 : f32 to vector<8x16xf32>
    %118 = arith.mulf %28, %117 : vector<8x16xf32>
    %119 = arith.addf %115, %118 : vector<8x16xf32>
    %c5_88 = arith.constant 5 : index
    %c2_89 = arith.constant 2 : index
    %120 = memref.load %arg9[%c5_88, %c2_89] : memref<6x3xf32, #tpu.memory_space<smem>>
    %121 = vector.broadcast %120 : f32 to vector<8x16xf32>
    %122 = arith.mulf %29, %121 : vector<8x16xf32>
    %123 = arith.addf %119, %122 : vector<8x16xf32>
    %124 = arith.maximumf %71, %97 : vector<8x16xf32>
    %125 = arith.maximumf %124, %123 : vector<8x16xf32>
    %126 = arith.subf %71, %125 : vector<8x16xf32>
    %127 = math.exp %126 : vector<8x16xf32>
    %128 = arith.subf %97, %125 : vector<8x16xf32>
    %129 = math.exp %128 : vector<8x16xf32>
    %130 = arith.subf %123, %125 : vector<8x16xf32>
    %131 = math.exp %130 : vector<8x16xf32>
    %132 = arith.addf %127, %129 : vector<8x16xf32>
    %133 = arith.addf %132, %131 : vector<8x16xf32>
    %134 = tpu.reciprocal %133 {approx = true} : vector<8x16xf32> -> vector<8x16xf32>
    %135 = arith.mulf %133, %134 : vector<8x16xf32>
    %cst_90 = arith.constant 2.000000e+00 : f32
    %136 = vector.broadcast %cst_90 : f32 to vector<8x16xf32>
    %137 = arith.subf %136, %135 : vector<8x16xf32>
    %138 = arith.mulf %134, %137 : vector<8x16xf32>
    %139 = arith.mulf %127, %138 : vector<8x16xf32>
    %c0_91 = arith.constant 0 : index
    %c0_92 = arith.constant 0 : index
    %c0_93 = arith.constant 0 : index
    %c0_94 = arith.constant 0 : index
    %140 = vector.load %arg13[%c0_91, %c0_92, %c0_93, %c0_94] : memref<1x3x8x16xf32, #tpu.memory_space<vmem>>, vector<1x1x8x16xf32>
    %141 = vector.shape_cast %140 : vector<1x1x8x16xf32> to vector<8x16xf32>
    %142 = vector.shape_cast %139 : vector<8x16xf32> to vector<1x1x8x16xf32>
    tpu.vector_store %arg13[%c0_91, %c0_92, %c0_93, %c0_94], %142 {strides = array<i32>} : memref<1x3x8x16xf32, #tpu.memory_space<vmem>>, vector<1x1x8x16xf32>,
    %143 = arith.mulf %129, %138 : vector<8x16xf32>
    %c0_95 = arith.constant 0 : index
    %c1_96 = arith.constant 1 : index
    %c0_97 = arith.constant 0 : index
    %c0_98 = arith.constant 0 : index
    %144 = vector.load %arg13[%c0_95, %c1_96, %c0_97, %c0_98] : memref<1x3x8x16xf32, #tpu.memory_space<vmem>>, vector<1x1x8x16xf32>
    %145 = vector.shape_cast %144 : vector<1x1x8x16xf32> to vector<8x16xf32>
    %146 = vector.shape_cast %143 : vector<8x16xf32> to vector<1x1x8x16xf32>
    tpu.vector_store %arg13[%c0_95, %c1_96, %c0_97, %c0_98], %146 {strides = array<i32>} : memref<1x3x8x16xf32, #tpu.memory_space<vmem>>, vector<1x1x8x16xf32>,
    %147 = arith.mulf %131, %138 : vector<8x16xf32>
    %c0_99 = arith.constant 0 : index
    %c2_100 = arith.constant 2 : index
    %c0_101 = arith.constant 0 : index
    %c0_102 = arith.constant 0 : index
    %148 = vector.load %arg13[%c0_99, %c2_100, %c0_101, %c0_102] : memref<1x3x8x16xf32, #tpu.memory_space<vmem>>, vector<1x1x8x16xf32>
    %149 = vector.shape_cast %148 : vector<1x1x8x16xf32> to vector<8x16xf32>
    %150 = vector.shape_cast %147 : vector<8x16xf32> to vector<1x1x8x16xf32>
    tpu.vector_store %arg13[%c0_99, %c2_100, %c0_101, %c0_102], %150 {strides = array<i32>} : memref<1x3x8x16xf32, #tpu.memory_space<vmem>>, vector<1x1x8x16xf32>,
    return
  }
  func.func @transform_0(%arg0: i32, %arg1: i32) -> (i32, i32, i32, i32) {
    %c0_i32 = arith.constant 0 : i32
    %c0_i32_0 = arith.constant 0 : i32
    %c0_i32_1 = arith.constant 0 : i32
    return %arg0, %c0_i32, %arg1, %c0_i32_0 : i32, i32, i32, i32
  }
  func.func @transform_1(%arg0: i32, %arg1: i32) -> (i32, i32, i32, i32) {
    %c0_i32 = arith.constant 0 : i32
    %c0_i32_0 = arith.constant 0 : i32
    %c0_i32_1 = arith.constant 0 : i32
    %c0_i32_2 = arith.constant 0 : i32
    return %arg0, %c0_i32, %c0_i32_0, %c0_i32_1 : i32, i32, i32, i32
  }
  func.func @transform_2(%arg0: i32, %arg1: i32) -> (i32, i32, i32, i32) {
    %c0_i32 = arith.constant 0 : i32
    %c0_i32_0 = arith.constant 0 : i32
    %c0_i32_1 = arith.constant 0 : i32
    %c0_i32_2 = arith.constant 0 : i32
    return %arg0, %c0_i32, %c0_i32_0, %c0_i32_1 : i32, i32, i32, i32
  }
  func.func @transform_3(%arg0: i32, %arg1: i32) -> (i32, i32) {
    %c0_i32 = arith.constant 0 : i32
    %c0_i32_0 = arith.constant 0 : i32
    return %arg1, %c0_i32 : i32, i32
  }
  func.func @transform_4(%arg0: i32, %arg1: i32) -> (i32, i32) {
    %c0_i32 = arith.constant 0 : i32
    %c0_i32_0 = arith.constant 0 : i32
    %c0_i32_1 = arith.constant 0 : i32
    return %c0_i32, %c0_i32_0 : i32, i32
  }
  func.func @transform_5(%arg0: i32, %arg1: i32) -> (i32, i32) {
    %c0_i32 = arith.constant 0 : i32
    %c0_i32_0 = arith.constant 0 : i32
    return %arg1, %c0_i32 : i32, i32
  }
  func.func @transform_6(%arg0: i32, %arg1: i32) -> (i32, i32) {
    %c0_i32 = arith.constant 0 : i32
    %c0_i32_0 = arith.constant 0 : i32
    %c0_i32_1 = arith.constant 0 : i32
    return %c0_i32, %c0_i32_0 : i32, i32
  }
  func.func @transform_7(%arg0: i32, %arg1: i32) -> (i32, i32) {
    %c0_i32 = arith.constant 0 : i32
    %c0_i32_0 = arith.constant 0 : i32
    %c0_i32_1 = arith.constant 0 : i32
    return %c0_i32, %c0_i32_0 : i32, i32
  }
  func.func @transform_8(%arg0: i32, %arg1: i32) -> i32 {
    %c0_i32 = arith.constant 0 : i32
    %c0_i32_0 = arith.constant 0 : i32
    return %c0_i32 : i32
  }
  func.func @transform_9(%arg0: i32, %arg1: i32) -> (i32, i32, i32, i32) {
    %c0_i32 = arith.constant 0 : i32
    %c0_i32_0 = arith.constant 0 : i32
    %c0_i32_1 = arith.constant 0 : i32
    return %arg0, %c0_i32, %arg1, %c0_i32_0 : i32, i32, i32, i32
  }
  func.func @transform_10(%arg0: i32, %arg1: i32) -> (i32, i32, i32, i32) {
    %c0_i32 = arith.constant 0 : i32
    %c0_i32_0 = arith.constant 0 : i32
    %c0_i32_1 = arith.constant 0 : i32
    return %arg0, %c0_i32, %arg1, %c0_i32_0 : i32, i32, i32, i32
  }
  func.func @transform_11(%arg0: i32, %arg1: i32) -> (i32, i32, i32, i32) {
    %c0_i32 = arith.constant 0 : i32
    %c0_i32_0 = arith.constant 0 : i32
    %c0_i32_1 = arith.constant 0 : i32
    return %arg0, %c0_i32, %arg1, %c0_i32_0 : i32, i32, i32, i32
  }
}

</mosaic_0001>

<bundles_post_ra>
// kernel: three_model_forward.9
= control target key start
LH: loop header
LB: loop body
LE: loop exit
PB: predicated region body
PF: predicated region fallthrough
CT: control target
= control target key end

     0   :  { %s569_s18 = smov 0   ;;  %s571_s19 = smov 0   ;;  %s636_s0 = inlined_call_operand.vmem [shape: bf16[2,3,128], index: 0, kind: input, shape index: {}]   ;;  %s637_s1 = inlined_call_operand.vmem [shape: f32[32,3], index: 1, kind: input, shape index: {}]   ;;  %s638_s2 = inlined_call_operand.vmem [shape: f32[32,1], index: 2, kind: input, shape index: {}]   ;;  %s639_s3 = inlined_call_operand.vmem [shape: f32[2,32], index: 3, kind: input, shape index: {}]   ;;  %s640_s4 = inlined_call_operand.vmem [shape: f32[2,1], index: 4, kind: input, shape index: {}]   ;;  %s641_s5 = inlined_call_operand.vmem [shape: bf16[2,2,128], index: 5, kind: output, shape index: {}]  }
   0x1   :  { %s573_s20 = smov 0  }
   0x2 LB: > { %s27_s21 = sadd.s32 1, %s532_s19  ;;  %p466_p0 = scmp.ge.s32.totalorder %s536_s20, 1  ;;  %s536_s20 = sphi %s573_s20, %s15_s20   ;;  %s532_s19 = sphi %s571_s19, %s643_s19   ;;  %s528_s18 = sphi %s569_s18, %s642_s18  }
   0x3   : > { %p29_p1 = scmp.ge.s32.totalorder %s27_s21, 2  ;;  %p205_p2 = scmp.lt.s32.totalorder %s536_s20, 3 }
   0x5   : > { %s645_s21 = smov (%p29_p1, %s27_s21), 0  ;;  %p206_p3 = pnand %p466_p0, %p205_p2 }
   0x6   : > { %p236_p4 = scmp.lt.s32.totalorder (!%p206_p3), %s528_s18, 1 }
   0x7   : > { %209 = sbr.rel (%p206_p3) target bundleno = 321 (0x141), region = 40 }
   0xc   : > { %v256_v0 = vld [vmem:[%s638_s2 + $0x8] sm:$0xff]  ;;  %v258_v1 = vld [vmem:[%s638_s2 + $0x18] sm:$0xff]  ;;  %s647_s18 = smov (!%p236_p4, %s528_s18), 1  ;;  %v538_v2 = vmov 0   ;;  %vm292_vm0 = vcmask 1042432   ;;  %v251_v5 = vld [vmem:[%s637_s1] sm:$0xff] }
   0xd   : > { %504 = vset.pattern.permute.xlu1 %v538_v2  ;;  %503 = vset.pattern.permute.xlu0 %v538_v2  ;;  %s467_s26 = sshll.u32 %s647_s18, 1  ;;  %vm279_vm1 = vcmask 23552   ;;  %v252_v6 = vld [vmem:[%s637_s1 + $0x8] sm:$0xff]  ;;  %v254_v7 = vld [vmem:[%s637_s1 + $0x18] sm:$0xff]  ;;  %v255_v8 = vld [vmem:[%s638_s2] sm:$0xff]  ;;  %vm368_vm2 = vcmask 261120   ;;  %s248_s27 = scalar_lea.vmem %s641_s5, %s647_s18 }
   0xe   : > { %266 = vperm.xlu1 %504, %v256_v0   ;;  %276 = vperm.xlu0 %503, %v258_v1   ;;  %s242_s29 = scalar_lea.vmem %s636_s0, %s467_s26  ;;  %v257_v9 = vld [vmem:[%s638_s2 + $0x10] sm:$0xff]  ;;  %v362_v29 = vld [vmem:[%s640_s4] sm:$0x3] }
   0xf   : > { %505 = vset.pattern.permute.xlu2 %v538_v2  ;;  %v249_v3 = vld [vmem:[%s242_s29] sm:$0x3]  ;;  %v253_v10 = vld [vmem:[%s637_s1 + $0x10] sm:$0xff] }
  0x10   : > { %v250_v4 = vunpack.c.l.bf16 %v249_v3  ;;  %365 = vperm.xlu2 %505, %v362_v29   ;;  %v361_v60 = vld [vmem:[%s639_s3] sm:$0x3] }
  0x12   : > { %468 = vmatpush.msk.msra.mxu0 %vm292_vm0, %v250_v4  ;;  %476 = vmatpush.msk.msra.mxu2 %vm292_vm0, %v250_v4 }
  0x13   : > { %477 = vmatpush.msk.msra.mxu3 %vm292_vm0, %v250_v4  ;;  %469 = vmatmul.msk.f32.vlgmr.msra.gmra.mxu0 %vm279_vm1, %v251_v5 }
  0x14   : > { %470 = vmatmul.msk.f32.vlgmr.msra.gmra.mxu2 %vm279_vm1, %v252_v6  ;;  %472 = vmatmul.msk.f32.vlgmr.msra.gmra.mxu3 %vm279_vm1, %v254_v7 }
  0x16   : > { %261 = vperm.xlu1 %504, %v255_v8   ;;  %271 = vperm.xlu0 %503, %v257_v9  }
  0x1c   : > { %471 = vmatmul.msk.f32.gmra.mxu2 %vm279_vm1, %v253_v10 }
  0x6a   : > { %v366_v61 = vpop.permute.xlu2 %365 }
  0x80   : > { %v267_v11 = vpop.permute.xlu1 %266  ;;  %v277_v15 = vpop.permute.xlu0 %276 }
  0x88   : > { %v262_v12 = vpop.permute.xlu1 %261  ;;  %v272_v30 = vpop.permute.xlu0 %271 }
  0x90   : > { %v313_v13 = vpop.f32.mrf.mxu0 }
  0x91   : > { %v314_v14 = vadd.f32 %v313_v13, %v262_v12 }
  0x93   : > { %v325_v16 = vmul.f32 %v314_v14, %v314_v14 }
  0x95   : > { %v329_v21 = vmul.f32 %v325_v16, %v314_v14 }
  0x97   : > { %v316_v17 = vpop.f32.mrf.mxu2  ;;  %v322_v18 = vpop.f32.mrf.mxu3  ;;  %v333_v26 = vmul.f32 0.044715, %v329_v21 }
  0x98   : > { %v317_v19 = vadd.f32 %v316_v17, %v267_v11  ;;  %v323_v20 = vadd.f32 %v322_v18, %v277_v15 }
  0x99   : > { %v337_v37 = vadd.f32 %v333_v26, %v314_v14 }
  0x9a   : > { %v326_v22 = vmul.f32 %v317_v19, %v317_v19  ;;  %v328_v23 = vmul.f32 %v323_v20, %v323_v20 }
  0x9b   : > { %v341_v41 = vmul.f32 0.7978846, %v337_v37 }
  0x9c   : > { %v330_v24 = vmul.f32 %v326_v22, %v317_v19  ;;  %v332_v25 = vmul.f32 %v328_v23, %v323_v20 }
  0x9e   : > { %v336_v27 = vmul.f32 0.044715, %v332_v25  ;;  %v334_v28 = vmul.f32 0.044715, %v330_v24 }
  0x9f   : > { %v319_v31 = vpop.f32.mrf.mxu2 }
  0xa0   : > { %v320_v32 = vadd.f32 %v319_v31, %v272_v30  ;;  %v340_v33 = vadd.f32 %v336_v27, %v323_v20  ;;  %v338_v34 = vadd.f32 %v334_v28, %v317_v19 }
  0xa2   : > { %v327_v35 = vmul.f32 %v320_v32, %v320_v32  ;;  %v344_v36 = vmul.f32 0.7978846, %v340_v33  ;;  %v342_v39 = vmul.f32 0.7978846, %v338_v34 }
  0xa4   : > { %v331_v38 = vmul.f32 %v327_v35, %v320_v32  ;;  %506 = vtanh.f32 %v344_v36 }
  0xa5   : > { %508 = vtanh.f32 %v342_v39 }
  0xa6   : > { %v335_v40 = vmul.f32 0.044715, %v331_v38  ;;  %510 = vtanh.f32 %v341_v41 }
  0xa8   : > { %v339_v42 = vadd.f32 %v335_v40, %v320_v32 }
  0xaa   : > { %v507_v43 = vpop.eup %506  ;;  %v343_v44 = vmul.f32 0.7978846, %v339_v42 }
  0xab   : > { %v352_v45 = vadd.f32 1.0, %v507_v43  ;;  %v509_v47 = vpop.eup %508 }
  0xac   : > { %512 = vtanh.f32 %v343_v44  ;;  %v511_v49 = vpop.eup %510  ;;  %v350_v50 = vadd.f32 1.0, %v509_v47 }
  0xad   : > { %v356_v46 = vmul.f32 0.5, %v352_v45  ;;  %v349_v53 = vadd.f32 1.0, %v511_v49 }
  0xae   : > { %v354_v55 = vmul.f32 0.5, %v350_v50 }
  0xaf   : > { %v360_v48 = vmul.f32 %v356_v46, %v323_v20  ;;  %v353_v57 = vmul.f32 0.5, %v349_v53 }
  0xb0   : > { %v358_v58 = vmul.f32 %v354_v55, %v317_v19 }
  0xb1   : > { %384 = vmatpush.msra.mxu1 %v360_v48  ;;  %v357_v59 = vmul.f32 %v353_v57, %v314_v14 }
  0xb2   : > { %v513_v51 = vpop.eup %512 }
  0xb3   : > { %v351_v52 = vadd.f32 1.0, %v513_v51 }
  0xb5   : > { %v355_v54 = vmul.f32 0.5, %v351_v52 }
  0xb7   : > { %v359_v56 = vmul.f32 %v355_v54, %v320_v32 }
  0xb9   : > { %385 = vmatpush.msra.mxu1 %v359_v56 }
  0xbb   : > { %386 = vmatpush.msra.mxu1 %v358_v58 }
  0xbd   : > { %387 = vmatpush.msra.mxu1 %v357_v59 }
  0xbe   : > { %473 = vmatmul.msk.f32.vlgmr.msra.gmra.mxu1 %vm368_vm2, %v361_v60 }
 0x13b   : > { %v389_v62 = vpop.f32.mrf.mxu1 }
 0x13c   : > { %v390_v63 = vadd.f32 %v389_v62, %v366_v61 }
 0x13e   : > { %v392_v0 = vpack.c.bf16 %v390_v63, %v390_v63 }
 0x140   : > { %393 = vst [vmem:[%s248_s27] sm:$0x1] %v392_v0 }
 0x141 PF: > { %s15_s20 = sadd.s32 1, %s536_s20   ;;  %s642_s18 = smov %s532_s19 }
 0x142   : > { %p12_p5 = scmp.ge.s32.totalorder %s15_s20, 4   ;;  %s643_s19 = smov %s645_s21 }
 0x144   :  { %14 = sbr.rel (!%p12_p5) target bundleno = 2 (0x2), region = 70 }

// kernel: three_model_forward.6
= control target key start
LH: loop header
LB: loop body
LE: loop exit
PB: predicated region body
PF: predicated region fallthrough
CT: control target
= control target key end

     0   :  { %s654_s12 = smov 0   ;;  %s656_s13 = smov 0   ;;  %s740_s0 = inlined_call_operand.vmem [shape: bf16[2,3,16,16], index: 0, kind: input, shape index: {}]   ;;  %s741_s1 = inlined_call_operand.vmem [shape: bf16[11,16], index: 1, kind: input, shape index: {}]   ;;  %s742_s2 = inlined_call_operand.vmem [shape: bf16[16,11], index: 2, kind: input, shape index: {}]   ;;  %s743_s3 = inlined_call_operand.vmem [shape: bf16[2,3,11,11], index: 3, kind: output, shape index: {}]  }
   0x1   :  { %s658_s14 = smov 0  }
   0x2 LB: > { %s25_s15 = sadd.s32 1, %s628_s13  ;;  %p519_p0 = scmp.ge.s32.totalorder %s632_s14, 1  ;;  %s632_s14 = sphi %s658_s14, %s13_s14   ;;  %s628_s13 = sphi %s656_s13, %s747_s13   ;;  %s624_s12 = sphi %s654_s12, %s746_s12  }
   0x3   : > { %p27_p1 = scmp.ge.s32.totalorder %s25_s15, 2  ;;  %p162_p2 = scmp.lt.s32.totalorder %s632_s14, 3 }
   0x5   : > { %s749_s15 = smov (%p27_p1, %s25_s15), 0  ;;  %p163_p3 = pnand %p519_p0, %p162_p2 }
   0x6   : > { %p195_p4 = scmp.lt.s32.totalorder (!%p163_p3), %s624_s12, 1 }
   0x7   : > { %166 = sbr.rel (%p163_p3) target bundleno = 310 (0x136), region = 32 }
   0xc   : > { %s751_s12 = smov (!%p195_p4, %s624_s12), 1  ;;  %v524_v0 = vld [vmem:[%s741_s1] sm:$0xf]  ;;  %v576_v1 = vld [vmem:[%s741_s1] sm:$0x30]  ;;  %vm232_vm0 = vcmask 130048  }
   0xd   : > { %s585_s16 = smul.u32 24, %s751_s12  ;;  %v540_v2 = vld [vmem:[%s741_s1] sm:$0xf]  ;;  %v579_v3 = vld [vmem:[%s741_s1] sm:$0x30]  ;;  %v525_v7 = vor.u32 %v576_v1, %v524_v0  ;;  %vm278_vm1 = vcmask 84992  }
   0xe   : > { %v541_v8 = vor.u32 %v579_v3, %v540_v2  ;;  %v559_v9 = vld [vmem:[%s741_s1] sm:$0xf]  ;;  %v582_v10 = vld [vmem:[%s741_s1] sm:$0x30]  ;;  %vm280_vm2 = vcmask 82944  }
   0xf   : > { %s199_s27 = scalar_lea.vmem %s740_s0, %s585_s16  ;;  %v560_v11 = vor.u32 %v582_v10, %v559_v9  ;;  %v578_v12 = vld [vmem:[%s742_s2] sm:$0xff]  ;;  %s214_s18 = scalar_lea.vmem %s743_s3, %s585_s16  ;;  %vm281_vm3 = vsmask.f32 1280 }
  0x10   : > { %v577_v4 = vld [vmem:[%s199_s27] sm:$0xff]  ;;  %v580_v5 = vld [vmem:[%s199_s27 + $0x8] sm:$0xff]  ;;  %v583_v6 = vld [vmem:[%s199_s27 + $0x10] sm:$0xff]  ;;  %269 = vmatpush.bf16.msra.mxu1 %v578_v12 }
  0x11   : > { %243 = vmatpush.bf16.msra.mxu0 %v577_v4  ;;  %312 = vmatpush.bf16.msra.mxu2 %v580_v5  ;;  %v584_v13 = vld [vmem:[%s742_s2] sm:$0xff]  ;;  %vm719_vm4 = vmand %vm280_vm2, %vm281_vm3  ;;  %v553_v36 = vld [vmem:[%s214_s18 + $0xc] sm:$0x3] }
  0x12   : > { %v581_v14 = vld [vmem:[%s742_s2] sm:$0xff]  ;;  %v572_v40 = vld [vmem:[%s214_s18 + $0x14] sm:$0x3] }
  0x13   : > { %338 = vmatpush.bf16.msra.mxu3 %v581_v14  ;;  %v283_v28 = vld [vmem:[%s214_s18 + $0x4] sm:$0x3] }
  0x14   : > { %530 = vmatmul.msk.bf16.vlgmr.msra.gmra.mxu0 %vm232_vm0, %v525_v7  ;;  %546 = vmatmul.msk.bf16.vlgmr.msra.gmra.mxu2 %vm232_vm0, %v541_v8 }
  0x15   : > { %378 = vmatpush.bf16.msrb.mxu0 %v583_v6  ;;  %404 = vmatpush.bf16.msrb.mxu1 %v584_v13 }
  0x24   : > { %565 = vmatmul.msk.bf16.vlgmr.msrb.gmra.mxu0 %vm232_vm0, %v560_v11 }
  0x91   : > { %v245_v15 = vpop.f32.mrf.mxu0 }
  0x97   : > { %v314_v16 = vpop.f32.mrf.mxu2 }
  0x99   : > { %v247_v17 = vpop.f32.mrf.mxu0 }
  0x9a   : > { %v250_v18 = vpack.c.bf16 %v247_v17, %v245_v15 }
  0x9c   : > { %535 = vmatmul.msk.bf16.vlgmr.msra.gmra.mxu1 %vm232_vm0, %v250_v18 }
  0x9f   : > { %v316_v19 = vpop.f32.mrf.mxu2 }
  0xa0   : > { %v319_v20 = vpack.c.bf16 %v316_v19, %v314_v16 }
  0xa1   : > { %v380_v21 = vpop.f32.mrf.mxu0 }
  0xa2   : > { %551 = vmatmul.msk.bf16.vlgmr.msra.gmra.mxu3 %vm232_vm0, %v319_v20 }
  0xa9   : > { %v382_v22 = vpop.f32.mrf.mxu0 }
  0xaa   : > { %v385_v23 = vpack.c.bf16 %v382_v22, %v380_v21 }
  0xac   : > { %570 = vmatmul.msk.bf16.vlgmr.msrb.gmra.mxu1 %vm232_vm0, %v385_v23 }
 0x119   : > { %v271_v24 = vpop.f32.mrf.mxu1 }
 0x11a   : > { %v276_v25 = vpack.c.bf16 %v271_v24, %v271_v24 }
 0x11c   : > { %279 = vst.msk [vmem:[%s214_s18] sm:$0xf] %vm278_vm1, %v276_v25 }
 0x121   : > { %v273_v26 = vpop.f32.mrf.mxu1 }
 0x122   : > { %v277_v29 = vpack.c.bf16 %v273_v26, %v273_v26 }
 0x124   : > { %v284_v30 = vsel %vm719_vm4, %v277_v29, %v283_v28 }
 0x125   : > { %285 = vst [vmem:[%s214_s18 + $0x4] sm:$0x3] %v284_v30  ;;  %v340_v31 = vpop.f32.mrf.mxu3 }
 0x126   : > { %v345_v32 = vpack.c.bf16 %v340_v31, %v340_v31 }
 0x128   : > { %552 = vst.msk [vmem:[%s214_s18 + $0x8] sm:$0xf] %vm278_vm1, %v345_v32 }
 0x129   : > { %v406_v33 = vpop.f32.mrf.mxu1 }
 0x12a   : > { %v411_v34 = vpack.c.bf16 %v406_v33, %v406_v33 }
 0x12c   : > { %571 = vst.msk [vmem:[%s214_s18 + $0x10] sm:$0xf] %vm278_vm1, %v411_v34 }
 0x12d   : > { %v342_v35 = vpop.f32.mrf.mxu3 }
 0x12e   : > { %v346_v37 = vpack.c.bf16 %v342_v35, %v342_v35 }
 0x130   : > { %v350_v38 = vsel %vm719_vm4, %v346_v37, %v553_v36 }
 0x131   : > { %554 = vst [vmem:[%s214_s18 + $0xc] sm:$0x3] %v350_v38  ;;  %v408_v39 = vpop.f32.mrf.mxu1 }
 0x132   : > { %v412_v41 = vpack.c.bf16 %v408_v39, %v408_v39 }
 0x134   : > { %v416_v42 = vsel %vm719_vm4, %v412_v41, %v572_v40 }
 0x135   : > { %573 = vst [vmem:[%s214_s18 + $0x14] sm:$0x3] %v416_v42 }
 0x136 PF: > { %s13_s14 = sadd.s32 1, %s632_s14   ;;  %s746_s12 = smov %s628_s13 }
 0x137   : > { %p10_p5 = scmp.ge.s32.totalorder %s13_s14, 4   ;;  %s747_s13 = smov %s749_s15 }
 0x139   :  { %12 = sbr.rel (!%p10_p5) target bundleno = 2 (0x2), region = 69 }

// kernel: three_model_forward.8
= control target key start
LH: loop header
LB: loop body
LE: loop exit
PB: predicated region body
PF: predicated region fallthrough
CT: control target
= control target key end

     0   :  { %s716_s18 = smov 0   ;;  %s718_s19 = smov 0   ;;  %s833_s0 = inlined_call_operand.vmem [shape: f32[2,3,256], index: 0, kind: input, shape index: {}]   ;;  %s834_s1 = inlined_call_operand.vmem [shape: f32[32,3], index: 1, kind: input, shape index: {}]   ;;  %s835_s2 = inlined_call_operand.vmem [shape: f32[32,1], index: 2, kind: input, shape index: {}]   ;;  %s836_s3 = inlined_call_operand.vmem [shape: f32[2,32], index: 3, kind: input, shape index: {}]   ;;  %s837_s4 = inlined_call_operand.vmem [shape: f32[2,1], index: 4, kind: input, shape index: {}]   ;;  %s838_s5 = inlined_call_operand.vmem [shape: f32[2,2,256], index: 5, kind: output, shape index: {}]  }
   0x1   :  { %s720_s20 = smov 0  }
   0x2 LB: > { %s27_s21 = sadd.s32 1, %s679_s19  ;;  %p594_p0 = scmp.ge.s32.totalorder %s683_s20, 1  ;;  %s683_s20 = sphi %s720_s20, %s15_s20   ;;  %s679_s19 = sphi %s718_s19, %s840_s19   ;;  %s675_s18 = sphi %s716_s18, %s839_s18  }
   0x3   : > { %p29_p1 = scmp.ge.s32.totalorder %s27_s21, 2  ;;  %p208_p2 = scmp.lt.s32.totalorder %s683_s20, 3 }
   0x5   : > { %s842_s21 = smov (%p29_p1, %s27_s21), 0  ;;  %p209_p3 = pnand %p594_p0, %p208_p2 }
   0x6   : > { %p245_p4 = scmp.lt.s32.totalorder (!%p209_p3), %s675_s18, 1 }
   0x7   : > { %212 = sbr.rel (%p209_p3) target bundleno = 337 (0x151), region = 40 }
   0xc   : > { %v685_v0 = vmov 0   ;;  %v270_v1 = vld [vmem:[%s835_s2 + $0x8] sm:$0xff]  ;;  %v272_v2 = vld [vmem:[%s835_s2 + $0x18] sm:$0xff]  ;;  %s844_s18 = smov (!%p245_p4, %s675_s18), 1  ;;  %v269_v4 = vld [vmem:[%s835_s2] sm:$0xff]  ;;  %vm310_vm0 = vcmask 1042432  }
   0xd   : > { %643 = vset.pattern.permute.xlu1 %v685_v0  ;;  %642 = vset.pattern.permute.xlu0 %v685_v0  ;;  %s613_s26 = sshll.u32 %s844_s18, 3  ;;  %v271_v5 = vld [vmem:[%s835_s2 + $0x10] sm:$0xff]  ;;  %v265_v6 = vld [vmem:[%s834_s1] sm:$0xff]  ;;  %vm297_vm1 = vcmask 23552   ;;  %v268_v7 = vld [vmem:[%s834_s1 + $0x18] sm:$0xff]  ;;  %vm452_vm2 = vcmask 261120  }
   0xe   : > { %280 = vperm.xlu1 %643, %v270_v1   ;;  %290 = vperm.xlu0 %642, %v272_v2   ;;  %s252_s29 = scalar_lea.vmem %s833_s0, %s613_s26  ;;  %v266_v10 = vld [vmem:[%s834_s1 + $0x8] sm:$0xff]  ;;  %v267_v11 = vld [vmem:[%s834_s1 + $0x10] sm:$0xff]  ;;  %v446_v49 = vld [vmem:[%s837_s4] sm:$0x3]  ;;  %s614_s25 = sshll.u32 %s844_s18, 2  ;;  %vm499_vm3 = vcmask 1041408  }
   0xf   : > { %644 = vset.pattern.permute.xlu2 %v685_v0  ;;  %v264_v3 = vld [vmem:[%s252_s29] sm:$0x77]  ;;  %s262_s28 = scalar_lea.vmem %s838_s5, %s614_s25 }
  0x10   : > { %294 = vst [vmem:[#allocation1] ss:$2 sm:$0xff] %v264_v3  ;;  %449 = vperm.xlu2 %644, %v446_v49  }
  0x16   : > { %275 = vperm.xlu1 %643, %v269_v4   ;;  %285 = vperm.xlu0 %642, %v271_v5  }
  0x17   : > { %v295_v8 = vld.sshfl [vmem:[#allocation1] sm:$0xff pattern:$0x75316420]  ;;  %v296_v9 = vld.sshfl [vmem:[#allocation1 + $0x8] sm:$0xff pattern:$0x75316420] }
  0x18   : > { %599 = vmatpush.msk.msra.mxu0 %vm310_vm0, %v295_v8  ;;  %615 = vmatpush.msk.msra.mxu2 %vm310_vm0, %v295_v8 }
  0x19   : > { %604 = vmatpush.msk.msra.mxu1 %vm310_vm0, %v296_v9  ;;  %616 = vmatpush.msk.msra.mxu3 %vm310_vm0, %v296_v9 }
  0x1a   : > { %600 = vmatmul.msk.f32.vlgmr.msra.gmra.mxu0 %vm297_vm1, %v265_v6  ;;  %603 = vmatmul.msk.f32.vlgmr.msra.gmra.mxu2 %vm297_vm1, %v268_v7 }
  0x1b   : > { %605 = vmatmul.msk.f32.vlgmr.msra.gmra.mxu1 %vm297_vm1, %v265_v6  ;;  %608 = vmatmul.msk.f32.vlgmr.msra.gmra.mxu3 %vm297_vm1, %v268_v7 }
  0x22   : > { %601 = vmatmul.msk.f32.gmra.mxu0 %vm297_vm1, %v266_v10 }
  0x23   : > { %606 = vmatmul.msk.f32.gmra.mxu1 %vm297_vm1, %v266_v10 }
  0x2a   : > { %602 = vmatmul.msk.f32.gmra.mxu0 %vm297_vm1, %v267_v11 }
  0x2b   : > { %607 = vmatmul.msk.f32.gmra.mxu1 %vm297_vm1, %v267_v11 }
  0x80   : > { %v281_v12 = vpop.permute.xlu1 %280  ;;  %v291_v18 = vpop.permute.xlu0 %290 }
  0x88   : > { %v276_v13 = vpop.permute.xlu1 %275  ;;  %v286_v44 = vpop.permute.xlu0 %285 }
  0x97   : > { %v332_v14 = vpop.f32.mrf.mxu0 }
  0x98   : > { %v361_v15 = vpop.f32.mrf.mxu1  ;;  %v772_v16 = vadd.f32 %v332_v14, %v276_v13 }
  0x99   : > { %v774_v17 = vadd.f32 %v361_v15, %v276_v13 }
  0x9a   : > { %v373_v20 = vmul.f32 %v772_v16, %v772_v16 }
  0x9b   : > { %v374_v23 = vmul.f32 %v774_v17, %v774_v17 }
  0x9c   : > { %v381_v31 = vmul.f32 %v373_v20, %v772_v16 }
  0x9d   : > { %v341_v19 = vpop.f32.mrf.mxu2  ;;  %v382_v34 = vmul.f32 %v374_v23, %v774_v17 }
  0x9e   : > { %v778_v21 = vadd.f32 %v341_v19, %v291_v18  ;;  %v370_v22 = vpop.f32.mrf.mxu3  ;;  %v389_v43 = vmul.f32 0.044715, %v381_v31 }
  0x9f   : > { %v782_v24 = vadd.f32 %v370_v22, %v291_v18  ;;  %v335_v25 = vpop.f32.mrf.mxu0  ;;  %v390_v48 = vmul.f32 0.044715, %v382_v34 }
  0xa0   : > { %v379_v26 = vmul.f32 %v778_v21, %v778_v21  ;;  %v786_v27 = vadd.f32 %v335_v25, %v281_v12  ;;  %v364_v28 = vpop.f32.mrf.mxu1  ;;  %v397_v58 = vadd.f32 %v389_v43, %v772_v16 }
  0xa1   : > { %v380_v29 = vmul.f32 %v782_v24, %v782_v24  ;;  %v790_v30 = vadd.f32 %v364_v28, %v281_v12  ;;  %v398_v60 = vadd.f32 %v390_v48, %v774_v17 }
  0xa2   : > { %v387_v32 = vmul.f32 %v379_v26, %v778_v21  ;;  %v375_v33 = vmul.f32 %v786_v27, %v786_v27  ;;  %v405_v2 = vmul.f32 0.7978846, %v397_v58 }
  0xa3   : > { %v388_v35 = vmul.f32 %v380_v29, %v782_v24  ;;  %v376_v36 = vmul.f32 %v790_v30, %v790_v30  ;;  %v406_v4 = vmul.f32 0.7978846, %v398_v60 }
  0xa4   : > { %v383_v37 = vmul.f32 %v375_v33, %v786_v27  ;;  %v395_v38 = vmul.f32 0.044715, %v387_v32 }
  0xa5   : > { %v384_v39 = vmul.f32 %v376_v36, %v790_v30  ;;  %v396_v40 = vmul.f32 0.044715, %v388_v35 }
  0xa6   : > { %v403_v41 = vadd.f32 %v395_v38, %v778_v21  ;;  %v391_v42 = vmul.f32 0.044715, %v383_v37 }
  0xa7   : > { %v338_v45 = vpop.f32.mrf.mxu0  ;;  %v404_v46 = vadd.f32 %v396_v40, %v782_v24  ;;  %v392_v47 = vmul.f32 0.044715, %v384_v39 }
  0xa8   : > { %v339_v50 = vadd.f32 %v338_v45, %v286_v44  ;;  %v367_v51 = vpop.f32.mrf.mxu1  ;;  %v411_v52 = vmul.f32 0.7978846, %v403_v41  ;;  %v399_v53 = vadd.f32 %v391_v42, %v786_v27 }
  0xa9   : > { %v368_v54 = vadd.f32 %v367_v51, %v286_v44  ;;  %v412_v55 = vmul.f32 0.7978846, %v404_v46  ;;  %v400_v56 = vadd.f32 %v392_v47, %v790_v30  ;;  %v445_v44 = vld [vmem:[%s836_s3] sm:$0x3]  ;;  %v450_v46 = vpop.permute.xlu2 %449 }
  0xaa   : > { %v377_v57 = vmul.f32 %v339_v50, %v339_v50  ;;  %645 = vtanh.f32 %v411_v52  ;;  %v407_v62 = vmul.f32 0.7978846, %v399_v53 }
  0xab   : > { %v378_v59 = vmul.f32 %v368_v54, %v368_v54  ;;  %647 = vtanh.f32 %v412_v55  ;;  %v408_v0 = vmul.f32 0.7978846, %v400_v56 }
  0xac   : > { %v385_v61 = vmul.f32 %v377_v57, %v339_v50  ;;  %649 = vtanh.f32 %v407_v62 }
  0xad   : > { %v386_v63 = vmul.f32 %v378_v59, %v368_v54  ;;  %651 = vtanh.f32 %v408_v0 }
  0xae   : > { %v393_v1 = vmul.f32 0.044715, %v385_v61  ;;  %653 = vtanh.f32 %v405_v2 }
  0xaf   : > { %v394_v3 = vmul.f32 0.044715, %v386_v63  ;;  %655 = vtanh.f32 %v406_v4 }
  0xb0   : > { %v646_v5 = vpop.eup %645  ;;  %v401_v6 = vadd.f32 %v393_v1, %v339_v50 }
  0xb1   : > { %v648_v7 = vpop.eup %647  ;;  %v427_v8 = vadd.f32 1.0, %v646_v5  ;;  %v402_v9 = vadd.f32 %v394_v3, %v368_v54 }
  0xb2   : > { %v428_v10 = vadd.f32 1.0, %v648_v7  ;;  %v409_v11 = vmul.f32 0.7978846, %v401_v6  ;;  %v650_v18 = vpop.eup %649 }
  0xb3   : > { %v435_v12 = vmul.f32 0.5, %v427_v8  ;;  %v410_v13 = vmul.f32 0.7978846, %v402_v9  ;;  %v652_v20 = vpop.eup %651  ;;  %v423_v25 = vadd.f32 1.0, %v650_v18 }
  0xb4   : > { %v436_v14 = vmul.f32 0.5, %v428_v10  ;;  %657 = vtanh.f32 %v409_v11  ;;  %v654_v22 = vpop.eup %653  ;;  %v424_v28 = vadd.f32 1.0, %v652_v20 }
  0xb5   : > { %v443_v15 = vmul.f32 %v435_v12, %v778_v21  ;;  %659 = vtanh.f32 %v410_v13  ;;  %v656_v23 = vpop.eup %655  ;;  %v421_v32 = vadd.f32 1.0, %v654_v22  ;;  %v431_v36 = vmul.f32 0.5, %v423_v25 }
  0xb6   : > { %v444_v19 = vmul.f32 %v436_v14, %v782_v24  ;;  %v422_v34 = vadd.f32 1.0, %v656_v23  ;;  %v432_v37 = vmul.f32 0.5, %v424_v28 }
  0xb7   : > { %468 = vmatpush.msrb.mxu2 %v443_v15  ;;  %v429_v39 = vmul.f32 0.5, %v421_v32  ;;  %v439_v41 = vmul.f32 %v431_v36, %v786_v27 }
  0xb8   : > { %488 = vmatpush.msrb.mxu3 %v444_v19  ;;  %v430_v40 = vmul.f32 0.5, %v422_v34  ;;  %v440_v42 = vmul.f32 %v432_v37, %v790_v30 }
  0xb9   : > { %v437_v43 = vmul.f32 %v429_v39, %v772_v16 }
  0xba   : > { %v658_v26 = vpop.eup %657  ;;  %v438_v45 = vmul.f32 %v430_v40, %v774_v17 }
  0xbb   : > { %v660_v29 = vpop.eup %659  ;;  %v425_v31 = vadd.f32 1.0, %v658_v26 }
  0xbc   : > { %v426_v33 = vadd.f32 1.0, %v660_v29 }
  0xbd   : > { %v433_v35 = vmul.f32 0.5, %v425_v31 }
  0xbe   : > { %v434_v21 = vmul.f32 0.5, %v426_v33 }
  0xbf   : > { %v441_v38 = vmul.f32 %v433_v35, %v339_v50 }
  0xc0   : > { %v442_v24 = vmul.f32 %v434_v21, %v368_v54 }
  0xc1   : > { %469 = vmatpush.msrb.mxu2 %v441_v38 }
  0xc2   : > { %489 = vmatpush.msrb.mxu3 %v442_v24 }
  0xc3   : > { %470 = vmatpush.msrb.mxu2 %v439_v41 }
  0xc4   : > { %490 = vmatpush.msrb.mxu3 %v440_v42 }
  0xc5   : > { %471 = vmatpush.msrb.mxu2 %v437_v43 }
  0xc6   : > { %491 = vmatpush.msrb.mxu3 %v438_v45  ;;  %609 = vmatmul.msk.f32.vlgmr.msrb.gmra.mxu2 %vm452_vm2, %v445_v44 }
  0xc7   : > { %610 = vmatmul.msk.f32.vlgmr.msrb.gmra.mxu3 %vm452_vm2, %v445_v44 }
 0x149   : > { %v473_v47 = vpop.f32.mrf.mxu2 }
 0x14a   : > { %v493_v27 = vpop.f32.mrf.mxu3  ;;  %v474_v16 = vadd.f32 %v473_v47, %v450_v46 }
 0x14b   : > { %v494_v30 = vadd.f32 %v493_v27, %v450_v46 }
 0x14d   : > { %v498_v48 = vrot.slane %v494_v30, 6 }
 0x14f   : > { %v500_v49 = vsel %vm499_vm3, %v474_v16, %v498_v48 }
 0x150   : > { %502 = vst [vmem:[%s262_s28] sm:$0xf] %v500_v49 }
 0x151 PF: > { %s15_s20 = sadd.s32 1, %s683_s20   ;;  %s839_s18 = smov %s679_s19 }
 0x152   : > { %p12_p5 = scmp.ge.s32.totalorder %s15_s20, 4   ;;  %s840_s19 = smov %s842_s21 }
 0x154   :  { %14 = sbr.rel (!%p12_p5) target bundleno = 2 (0x2), region = 70 }

// kernel: three_model_forward.7
= control target key start
LH: loop header
LB: loop body
LE: loop exit
PB: predicated region body
PF: predicated region fallthrough
CT: control target
= control target key end

     0   :  { %s629_s12 = smov 0   ;;  %s631_s13 = smov 0   ;;  %s735_s0 = inlined_call_operand.vmem [shape: bf16[2,3,16,16], index: 0, kind: input, shape index: {}]   ;;  %s736_s1 = inlined_call_operand.vmem [shape: bf16[24,16], index: 1, kind: input, shape index: {}]   ;;  %s737_s2 = inlined_call_operand.vmem [shape: bf16[16,24], index: 2, kind: input, shape index: {}]   ;;  %s738_s3 = inlined_call_operand.vmem [shape: bf16[2,3,24,24], index: 3, kind: output, shape index: {}]  }
   0x1   :  { %s633_s14 = smov 0   ;;  %s635_s15 = smov 0  }
   0x2   :  { %s637_s16 = smov 0   ;;  %s639_s17 = smov 0  }
   0x3   :  { %s641_s18 = smov 0  }
   0x4 LB: > { %s22_s19 = sadd.s32 1, %s599_s16  ;;  %s25_s20 = sadd.s32 1, %s603_s17  ;;  %s607_s18 = sphi %s641_s18, %s13_s18   ;;  %s603_s17 = sphi %s639_s17, %s745_s17   ;;  %s599_s16 = sphi %s637_s16, %s744_s16   ;;  %s595_s15 = sphi %s635_s15, %s743_s15   ;;  %s591_s14 = sphi %s633_s14, %s742_s14   ;;  %s587_s13 = sphi %s631_s13, %s741_s13   ;;  %s583_s12 = sphi %s629_s12, %s740_s12  }
   0x5   : > { %p23_p0 = scmp.ge.s32.totalorder %s22_s19, 3  ;;  %s453_s21 = sadd.s32 4294967295, %s607_s18  }
   0x6   : > { %p117_p1 = scmp.ne.s32.totalorder %s587_s13, %s583_s12  ;;  %p118_p2 = scmp.eq.s32.totalorder %s453_s21, 5 }
   0x7   : > { %s747_s19 = smov (%p23_p0, %s22_s19), 0  ;;  %s749_s20 = smov (!%p23_p0, %s25_s20), %s603_s17 }
   0x8   : > { %s103_s22 = ssub.s32 %s599_s16, %s747_s19  ;;  %p27_p3 = scmp.ge.s32.totalorder %s749_s20, 2 }
   0x9   : > { %p457_p4 = scmp.ge.s32.totalorder %s607_s18, 1  ;;  %p675_p5 = por %p118_p2, %p117_p1 }
   0xa   : > { %p160_p6 = scmp.lt.s32.totalorder %s607_s18, 7  ;;  %s751_s20 = smov (%p27_p3, %s749_s20), 0 }
   0xb   : > { %s102_s24 = ssub.s32 %s603_s17, %s751_s20  ;;  %s107_s26 = sadd.s32 1, %s587_s13 }
   0xc   : > { %p161_p7 = pnand %p457_p4, %p160_p6  ;;  %s104_s25 = sor.u32 %s103_s22, %s102_s24 }
   0xd   : > { %p105_p8 = scmp.eq.s32.totalorder %s104_s25, 0  ;;  %p187_p9 = scmp.lt.s32.totalorder (!%p161_p7), %s595_s15, 1 }
   0xe   : > { %164 = sbr.rel (%p161_p7) target bundleno = 320 (0x140), region = 32  ;;  %p192_p10 = scmp.lt.s32.totalorder (!%p161_p7), %s591_s14, 2 }
   0xf   : > { %s686_s27 = scalar_select %p105_p8, %s587_s13, %s107_s26  }
  0x10   : > { %s184_s22 = sand.u32 (!%p161_p7), 1, %s583_s12  }
  0x11   : > { %s494_s24 = smul.u32 (!%p161_p7), 12, %s184_s22 }
  0x13   : > { %s188_s28 = scalar_select %p187_p9, %s595_s15, 1  ;;  %vm206_vm0 = vcmask 130048   ;;  %v493_v4 = vld [vmem:[%s737_s2] sm:$0xff]  ;;  %vm273_vm1 = vcmask 1043456   ;;  %vm309_vm2 = vcmask 191488  }
  0x14   : > { %s193_s29 = scalar_select %p192_p10, %s591_s14, 2  ;;  %297 = vmatpush.bf16.msra.mxu3 %v493_v4 }
  0x15   : > { %s495_s30 = smul.u32 24, %s188_s28  ;;  %s186_s25 = scalar_lea.vmem [#allocation2], %s494_s24 }
  0x16   : > { %s459_s4 = sshll.u32 %s193_s29, 2  ;;  %s496_s26 = smul.u32 (%p675_p5), 9, %s595_s15 }
  0x17   : > { %s191_s7 = scalar_lea.vmem %s735_s0, %s495_s30  ;;  %s195_s10 = scalar_lea.vmem %s736_s1, %s459_s4 }
  0x18   : > { %v490_v0 = vld [vmem:[%s191_s7] sm:$0xff]  ;;  %v491_v1 = vld [vmem:[%s191_s7 + $0x8] sm:$0xff]  ;;  %v492_v2 = vld [vmem:[%s191_s7 + $0x10] sm:$0xff]  ;;  %s325_s12 = sadd.s32 (%p675_p5), %s591_s14, %s496_s26 }
  0x19   : > { %217 = vmatpush.bf16.msra.mxu0 %v490_v0  ;;  %240 = vmatpush.bf16.msra.mxu1 %v491_v1  ;;  %v197_v3 = vld [vmem:[%s195_s10] sm:$0xf]  ;;  %s487_s28 = sshll.u32 (%p675_p5), %s325_s12, 2 }
  0x1a   : > { %263 = vmatpush.bf16.msra.mxu2 %v492_v2  ;;  %s327_s4 = scalar_lea.vmem (%p675_p5), %s738_s3, %s487_s28 }
  0x1c   : > { %464 = vmatmul.msk.bf16.vlgmr.msra.gmra.mxu0 %vm206_vm0, %v197_v3  ;;  %471 = vmatmul.msk.bf16.vlgmr.msra.gmra.mxu1 %vm206_vm0, %v197_v3 }
  0x1d   : > { %478 = vmatmul.msk.bf16.vlgmr.msra.gmra.mxu2 %vm206_vm0, %v197_v3 }
  0x99   : > { %v219_v5 = vpop.f32.mrf.mxu0  ;;  %v242_v6 = vpop.f32.mrf.mxu1 }
  0x9a   : > { %v246_v7 = vpack.c.bf16 %v242_v6, %v242_v6  ;;  %v223_v8 = vpack.c.bf16 %v219_v5, %v219_v5 }
  0x9c   : > { %v271_v9 = vunpack.c.l.b16 %v246_v7 }
  0x9e   : > { %v272_v10 = vpack.c.b16 %v271_v9, %v271_v9 }
  0xa0   : > { %v276_v11 = vsel %vm273_vm1, %v223_v8, %v272_v10  ;;  %v265_v12 = vpop.f32.mrf.mxu2 }
  0xa1   : > { %v221_v13 = vpop.f32.mrf.mxu0  ;;  %v244_v14 = vpop.f32.mrf.mxu1  ;;  %483 = vmatmul.msk.bf16.vlgmr.msra.gmra.mxu3 %vm206_vm0, %v276_v11  ;;  %v269_v16 = vpack.c.bf16 %v265_v12, %v265_v12 }
  0xa8   : > { %v267_v15 = vpop.f32.mrf.mxu2 }
  0xb1   : > { %484 = vmatmul.msk.bf16.gmra.mxu3 %vm206_vm0, %v269_v16 }
 0x124   : > { %v299_v17 = vpop.f32.mrf.mxu3 }
 0x125   : > { %v308_v18 = vpack.c.bf16 %v299_v17, %v299_v17 }
 0x127   : > { %310 = vst.msk [vmem:[%s186_s25] sm:$0xf] %vm309_vm2, %v308_v18 }
 0x12c   : > { %v301_v19 = vpop.f32.mrf.mxu3 }
 0x12d   : > { %v311_v20 = vpack.c.bf16 %v301_v19, %v301_v19 }
 0x12e   : > { %v344_v24 = vld [vmem:[%s186_s25] sm:$0xf] (%p675_p5) }
 0x12f   : > { %485 = vst.msk [vmem:[%s186_s25 + $0x4] sm:$0xf] %vm309_vm2, %v311_v20 }
 0x130   : > { %345 = vst [vmem:[%s327_s4] sm:$0xf] (%p675_p5), %v344_v24 }
 0x134   : > { %v304_v21 = vpop.f32.mrf.mxu3 }
 0x135   : > { %v314_v22 = vpack.c.bf16 %v304_v21, %v304_v21 }
 0x136   : > { %v346_v25 = vld [vmem:[%s186_s25 + $0x4] sm:$0xf] (%p675_p5) }
 0x137   : > { %486 = vst.msk [vmem:[%s186_s25 + $0x8] sm:$0xf] %vm309_vm2, %v314_v22 }
 0x138   : > { %323 = sbr.rel (!%p675_p5) target bundleno = 320 (0x140), region = 36  ;;  %347 = vst [vmem:[%s327_s4 + $0xc] sm:$0xf] (%p675_p5), %v346_v25 }
 0x13c   : > { %v306_v23 = vpop.f32.mrf.mxu3 }
 0x13e   : > { %v348_v26 = vld [vmem:[%s186_s25 + $0x8] sm:$0xf] }
 0x13f   : > { %349 = vst [vmem:[%s327_s4 + $0x18] sm:$0xf] %v348_v26 }
 0x140 PF: > { %s13_s18 = sadd.s32 1, %s607_s18   ;;  %s740_s12 = smov %s587_s13 }
 0x141   : > { %p10_p11 = scmp.ge.s32.totalorder %s13_s18, 8   ;;  %s741_s13 = smov %s686_s27 }
 0x142   : > { %s742_s14 = smov %s599_s16  ;;  %s743_s15 = smov %s603_s17 }
 0x143   : > { %s744_s16 = smov %s747_s19  ;;  %s745_s17 = smov %s751_s20 }
 0x144   :  { %12 = sbr.rel (!%p10_p11) target bundleno = 4 (0x4), region = 110 }

// kernel: three_model_forward.10
= control target key start
LH: loop header
LB: loop body
LE: loop exit
PB: predicated region body
PF: predicated region fallthrough
CT: control target
= control target key end

     0   :  { %s1041_s18 = smov 0   ;;  %s1043_s19 = smov 0   ;;  %s1321_s0 = inlined_call_operand.vmem [shape: bf16[2,3,640], index: 0, kind: input, shape index: {}]   ;;  %s1322_s1 = inlined_call_operand.vmem [shape: f32[32,3], index: 1, kind: input, shape index: {}]   ;;  %s1323_s2 = inlined_call_operand.vmem [shape: f32[32,1], index: 2, kind: input, shape index: {}]   ;;  %s1324_s3 = inlined_call_operand.vmem [shape: f32[2,32], index: 3, kind: input, shape index: {}]   ;;  %s1325_s4 = inlined_call_operand.vmem [shape: f32[2,1], index: 4, kind: input, shape index: {}]   ;;  %s1326_s5 = inlined_call_operand.vmem [shape: bf16[2,2,640], index: 5, kind: output, shape index: {}]  }
   0x1   :  { %s1045_s20 = smov 0  }
   0x2 LB: > { %s27_s21 = sadd.s32 1, %s1004_s19  ;;  %p881_p0 = scmp.ge.s32.totalorder %s1008_s20, 1  ;;  %s1008_s20 = sphi %s1045_s20, %s15_s20   ;;  %s1004_s19 = sphi %s1043_s19, %s1328_s19   ;;  %s1000_s18 = sphi %s1041_s18, %s1327_s18  }
   0x3   : > { %p29_p1 = scmp.ge.s32.totalorder %s27_s21, 2  ;;  %p208_p2 = scmp.lt.s32.totalorder %s1008_s20, 3 }
   0x5   : > { %s1330_s21 = smov (%p29_p1, %s27_s21), 0  ;;  %p209_p3 = pnand %p881_p0, %p208_p2 }
   0x6   : > { %p244_p4 = scmp.lt.s32.totalorder (!%p209_p3), %s1000_s18, 1 }
   0x7   : > { %212 = sbr.rel (%p209_p3) target bundleno = 377 (0x179), region = 40 }
   0xc   : > { %v1010_v0 = vmov 0   ;;  %v272_v1 = vld [vmem:[%s1323_s2 + $0x8] sm:$0xff]  ;;  %s1332_s18 = smov (!%p244_p4, %s1000_s18), 1  ;;  %v274_v2 = vld [vmem:[%s1323_s2 + $0x18] sm:$0xff]  ;;  %v271_v5 = vld [vmem:[%s1323_s2] sm:$0xff]  ;;  %vm321_vm0 = vcmask 1042432  }
   0xd   : > { %944 = vset.pattern.permute.xlu1 %v1010_v0  ;;  %943 = vset.pattern.permute.xlu0 %v1010_v0  ;;  %s916_s24 = smul.u32 10, %s1332_s18  ;;  %v273_v9 = vld [vmem:[%s1323_s2 + $0x10] sm:$0xff]  ;;  %v267_v10 = vld [vmem:[%s1322_s1] sm:$0xff]  ;;  %vm308_vm1 = vcmask 23552   ;;  %v270_v11 = vld [vmem:[%s1322_s1 + $0x18] sm:$0xff]  ;;  %vm664_vm2 = vcmask 261120  }
   0xe   : > { %282 = vperm.xlu1 %944, %v272_v1   ;;  %945 = vset.pattern.permute.xlu2 %v1010_v0  ;;  %v268_v17 = vld [vmem:[%s1322_s1 + $0x8] sm:$0xff]  ;;  %v269_v18 = vld [vmem:[%s1322_s1 + $0x10] sm:$0xff]  ;;  %vm779_vm3 = vcmask 1040384   ;;  %s917_s25 = smul.u32 5, %s1332_s18  ;;  %vm783_vm4 = vcmask 1041408   ;;  %vm786_vm5 = vcmask 1043459  }
   0xf   : > { %s251_s29 = scalar_lea.vmem %s1321_s0, %s916_s24  ;;  %292 = vperm.xlu0 %943, %v274_v2   ;;  %vm790_vm6 = vcmask 1044483  }
  0x10   : > { %v262_v3 = vld [vmem:[%s251_s29] sm:$0xff]  ;;  %v263_v4 = vld [vmem:[%s251_s29 + $0x8] sm:$0x3]  ;;  %s260_s28 = scalar_lea.vmem %s1326_s5, %s917_s25 }
  0x11   : > { %v264_v6 = vunpack.c.l.bf16 %v262_v3  ;;  %v265_v7 = vunpack.c.h.bf16 %v262_v3  ;;  %v266_v8 = vunpack.c.l.bf16 %v263_v4 }
  0x13   : > { %298 = vst [vmem:[#allocation1] ss:$2 sm:$0xff] %v264_v6 }
  0x14   : > { %300 = vst [vmem:[#allocation1 + $0x10] ss:$2 sm:$0xff] %v265_v7 }
  0x15   : > { %302 = vst [vmem:[#allocation1 + $0x20] ss:$2 sm:$0xff] %v266_v8 }
  0x16   : > { %277 = vperm.xlu1 %944, %v271_v5  }
  0x17   : > { %287 = vperm.xlu0 %943, %v273_v9  }
  0x1a   : > { %v303_v12 = vld.sshfl [vmem:[#allocation1] sm:$0xff pattern:$0x75316420]  ;;  %v304_v13 = vld.sshfl [vmem:[#allocation1 + $0x8] sm:$0xff pattern:$0x75316420] }
  0x1b   : > { %883 = vmatpush.msk.msra.mxu0 %vm321_vm0, %v303_v12  ;;  %915 = vmatpush.msk.msra.mxu3 %vm321_vm0, %v303_v12  ;;  %v305_v14 = vld.sshfl [vmem:[#allocation1 + $0x10] sm:$0xff pattern:$0x75316420]  ;;  %v306_v15 = vld.sshfl [vmem:[#allocation1 + $0x18] sm:$0xff pattern:$0x75316420] }
  0x1c   : > { %888 = vmatpush.msk.msra.mxu1 %vm321_vm0, %v304_v13  ;;  %893 = vmatpush.msk.msra.mxu2 %vm321_vm0, %v305_v14  ;;  %v307_v16 = vld.sshfl [vmem:[#allocation1 + $0x20] sm:$0xff pattern:$0x75316420] }
  0x1d   : > { %884 = vmatmul.msk.f32.vlgmr.msra.gmra.mxu0 %vm308_vm1, %v267_v10  ;;  %887 = vmatmul.msk.f32.vlgmr.msra.gmra.mxu3 %vm308_vm1, %v270_v11 }
  0x1e   : > { %889 = vmatmul.msk.f32.vlgmr.msra.gmra.mxu1 %vm308_vm1, %v267_v10  ;;  %894 = vmatmul.msk.f32.vlgmr.msra.gmra.mxu2 %vm308_vm1, %v267_v10 }
  0x1f   : > { %898 = vmatpush.msk.msrb.mxu3 %vm321_vm0, %v306_v15  ;;  %903 = vmatpush.msk.msrb.mxu0 %vm321_vm0, %v307_v16 }
  0x25   : > { %885 = vmatmul.msk.f32.gmra.mxu0 %vm308_vm1, %v268_v17  ;;  %899 = vmatmul.msk.f32.vlgmr.msrb.gmra.mxu3 %vm308_vm1, %v267_v10 }
  0x26   : > { %890 = vmatmul.msk.f32.gmra.mxu1 %vm308_vm1, %v268_v17  ;;  %895 = vmatmul.msk.f32.gmra.mxu2 %vm308_vm1, %v268_v17 }
  0x2d   : > { %886 = vmatmul.msk.f32.gmra.mxu0 %vm308_vm1, %v269_v18  ;;  %900 = vmatmul.msk.f32.gmra.mxu3 %vm308_vm1, %v268_v17 }
  0x2e   : > { %891 = vmatmul.msk.f32.gmra.mxu1 %vm308_vm1, %v269_v18  ;;  %896 = vmatmul.msk.f32.gmra.mxu2 %vm308_vm1, %v269_v18 }
  0x35   : > { %901 = vmatmul.msk.f32.gmra.mxu3 %vm308_vm1, %v269_v18  ;;  %904 = vmatmul.msk.f32.vlgmr.msrb.gmra.mxu0 %vm308_vm1, %v267_v10 }
  0x36   : > { %892 = vmatmul.msk.f32.gmra.mxu1 %vm308_vm1, %v270_v11  ;;  %897 = vmatmul.msk.f32.gmra.mxu2 %vm308_vm1, %v270_v11 }
  0x3d   : > { %902 = vmatmul.msk.f32.gmra.mxu3 %vm308_vm1, %v270_v11  ;;  %905 = vmatmul.msk.f32.gmra.mxu0 %vm308_vm1, %v268_v17 }
  0x45   : > { %906 = vmatmul.msk.f32.gmra.mxu0 %vm308_vm1, %v269_v18 }
  0x4d   : > { %907 = vmatmul.msk.f32.gmra.mxu0 %vm308_vm1, %v270_v11 }
  0x80   : > { %v1115_v19 = vpop.permute.xlu1 %282 }
  0x81   : > { %v1127_v26 = vpop.permute.xlu0 %292 }
  0x88   : > { %v1117_v20 = vpop.permute.xlu1 %277 }
  0x89   : > { %v1153_v46 = vpop.permute.xlu0 %287 }
  0x9a   : > { %v349_v21 = vpop.f32.mrf.mxu0 }
  0x9b   : > { %v1120_v22 = vadd.f32 %v349_v21, %v1117_v20  ;;  %v378_v23 = vpop.f32.mrf.mxu1 }
  0x9c   : > { %v1123_v24 = vadd.f32 %v378_v23, %v1117_v20 }
  0x9d   : > { %v477_v25 = vmul.f32 %v1120_v22, %v1120_v22 }
  0x9e   : > { %v478_v28 = vmul.f32 %v1123_v24, %v1123_v24 }
  0x9f   : > { %v497_v27 = vmul.f32 %v477_v25, %v1120_v22 }
  0xa0   : > { %v358_v29 = vpop.f32.mrf.mxu3  ;;  %v498_v37 = vmul.f32 %v478_v28, %v1123_v24 }
  0xa1   : > { %v1133_v30 = vadd.f32 %v358_v29, %v1127_v26  ;;  %v407_v31 = vpop.f32.mrf.mxu2  ;;  %v517_v38 = vmul.f32 0.044715, %v497_v27 }
  0xa2   : > { %v352_v32 = vpop.f32.mrf.mxu0  ;;  %v1138_v34 = vadd.f32 %v407_v31, %v1117_v20  ;;  %v518_v48 = vmul.f32 0.044715, %v498_v37 }
  0xa3   : > { %v492_v33 = vmul.f32 %v1133_v30, %v1133_v30  ;;  %v1141_v35 = vadd.f32 %v352_v32, %v1115_v19  ;;  %v381_v36 = vpop.f32.mrf.mxu1  ;;  %v537_v47 = vadd.f32 %v517_v38, %v1120_v22 }
  0xa4   : > { %v1148_v41 = vadd.f32 %v381_v36, %v1115_v19  ;;  %v479_v42 = vmul.f32 %v1138_v34, %v1138_v34  ;;  %v538_v62 = vadd.f32 %v518_v48, %v1123_v24 }
  0xa5   : > { %v512_v39 = vmul.f32 %v492_v33, %v1133_v30  ;;  %v482_v40 = vmul.f32 %v1141_v35, %v1141_v35  ;;  %v557_v61 = vmul.f32 0.7978846, %v537_v47 }
  0xa6   : > { %v483_v49 = vmul.f32 %v1148_v41, %v1148_v41  ;;  %v499_v55 = vmul.f32 %v479_v42, %v1138_v34  ;;  %v558_v13 = vmul.f32 0.7978846, %v538_v62 }
  0xa7   : > { %v502_v43 = vmul.f32 %v482_v40, %v1141_v35  ;;  %v532_v44 = vmul.f32 0.044715, %v512_v39 }
  0xa8   : > { %v436_v45 = vpop.f32.mrf.mxu3  ;;  %v503_v63 = vmul.f32 %v483_v49, %v1148_v41  ;;  %v519_v4 = vmul.f32 0.044715, %v499_v55 }
  0xa9   : > { %v410_v50 = vpop.f32.mrf.mxu2  ;;  %v552_v51 = vadd.f32 %v532_v44, %v1133_v30  ;;  %v522_v52 = vmul.f32 0.044715, %v502_v43  ;;  %v1179_v5 = vadd.f32 %v436_v45, %v1117_v20 }
  0xaa   : > { %v1160_v53 = vadd.f32 %v410_v50, %v1115_v19  ;;  %v355_v54 = vpop.f32.mrf.mxu0  ;;  %v523_v12 = vmul.f32 0.044715, %v503_v63  ;;  %v539_v21 = vadd.f32 %v519_v4, %v1138_v34 }
  0xab   : > { %v1164_v56 = vadd.f32 %v355_v54, %v1153_v46  ;;  %v384_v57 = vpop.f32.mrf.mxu1  ;;  %v572_v58 = vmul.f32 0.7978846, %v552_v51  ;;  %v542_v59 = vadd.f32 %v522_v52, %v1141_v35  ;;  %v480_v23 = vmul.f32 %v1179_v5, %v1179_v5 }
  0xac   : > { %v1168_v60 = vadd.f32 %v384_v57, %v1153_v46  ;;  %v484_v0 = vmul.f32 %v1160_v53, %v1160_v53  ;;  %v543_v37 = vadd.f32 %v523_v12, %v1148_v41  ;;  %v1206_v45 = vmul.f32 0.7978846, %v539_v21 }
  0xad   : > { %v487_v1 = vmul.f32 %v1164_v56, %v1164_v56  ;;  %946 = vtanh.f32 %v572_v58  ;;  %v562_v3 = vmul.f32 0.7978846, %v542_v59  ;;  %v500_v48 = vmul.f32 %v480_v23, %v1179_v5 }
  0xae   : > { %v488_v2 = vmul.f32 %v1168_v60, %v1168_v60  ;;  %948 = vtanh.f32 %v557_v61  ;;  %v504_v9 = vmul.f32 %v484_v0, %v1160_v53  ;;  %v563_v59 = vmul.f32 0.7978846, %v543_v37 }
  0xaf   : > { %v507_v6 = vmul.f32 %v487_v1, %v1164_v56  ;;  %950 = vtanh.f32 %v562_v3 }
  0xb0   : > { %v508_v7 = vmul.f32 %v488_v2, %v1168_v60  ;;  %v439_v8 = vpop.f32.mrf.mxu3  ;;  %v524_v33 = vmul.f32 0.044715, %v504_v9  ;;  %952 = vtanh.f32 %v558_v13 }
  0xb1   : > { %v413_v10 = vpop.f32.mrf.mxu2  ;;  %v527_v11 = vmul.f32 0.044715, %v507_v6  ;;  %v1188_v15 = vadd.f32 %v439_v8, %v1115_v19  ;;  %v520_v6 = vmul.f32 0.044715, %v500_v48 }
  0xb2   : > { %v1185_v14 = vadd.f32 %v413_v10, %v1153_v46  ;;  %v465_v16 = vpop.f32.mrf.mxu0  ;;  %v528_v17 = vmul.f32 0.044715, %v508_v7  ;;  %v544_v54 = vadd.f32 %v524_v33, %v1160_v53 }
  0xb3   : > { %v947_v18 = vpop.eup %946  ;;  %v387_v25 = vpop.f32.mrf.mxu1  ;;  %v547_v27 = vadd.f32 %v527_v11, %v1164_v56  ;;  %v485_v40 = vmul.f32 %v1188_v15, %v1188_v15 }
  0xb4   : > { %v489_v28 = vmul.f32 %v1185_v14, %v1185_v14  ;;  %v1197_v29 = vadd.f32 %v387_v25, %v1127_v26  ;;  %v612_v31 = vadd.f32 1.0, %v947_v18  ;;  %v548_v32 = vadd.f32 %v528_v17, %v1168_v60  ;;  %v949_v38 = vpop.eup %948 }
  0xb5   : > { %v567_v36 = vmul.f32 0.7978846, %v547_v27  ;;  %v951_v47 = vpop.eup %950  ;;  %v597_v58 = vadd.f32 1.0, %v949_v38  ;;  %v505_v62 = vmul.f32 %v485_v40, %v1188_v15 }
  0xb6   : > { %v509_v39 = vmul.f32 %v489_v28, %v1185_v14  ;;  %v493_v42 = vmul.f32 %v1197_v29, %v1197_v29  ;;  %v632_v43 = vmul.f32 0.5, %v612_v31  ;;  %v568_v44 = vmul.f32 0.7978846, %v548_v32  ;;  %v1220_v2 = vpop.eup %952 }
  0xb7   : > { %954 = vtanh.f32 %v567_v36  ;;  %v602_v4 = vadd.f32 1.0, %v951_v47  ;;  %v617_v12 = vmul.f32 0.5, %v597_v58  ;;  %v525_v13 = vmul.f32 0.044715, %v505_v62  ;;  %v1263_v62 = vld [vmem:[%s1324_s3] sm:$0x3] }
  0xb8   : > { %v529_v49 = vmul.f32 0.044715, %v509_v39  ;;  %v513_v50 = vmul.f32 %v493_v42, %v1197_v29  ;;  %v442_v51 = vpop.f32.mrf.mxu3  ;;  %v652_v52 = vmul.f32 %v632_v43, %v1133_v30  ;;  %v1223_v30 = vadd.f32 %v465_v16, %v1117_v20 }
  0xb9   : > { %v416_v55 = vpop.f32.mrf.mxu2  ;;  %v1213_v57 = vadd.f32 %v442_v51, %v1153_v46  ;;  %956 = vtanh.f32 %v568_v44  ;;  %v622_v25 = vmul.f32 0.5, %v602_v4  ;;  %v540_v36 = vadd.f32 %v520_v6, %v1179_v5 }
  0xba   : > { %v549_v61 = vadd.f32 %v529_v49, %v1185_v14  ;;  %v1218_v63 = vadd.f32 %v416_v55, %v1127_v26  ;;  %v468_v0 = vpop.f32.mrf.mxu0  ;;  %680 = vmatpush.msrb.mxu1 %v652_v52  ;;  %v533_v1 = vmul.f32 0.044715, %v513_v50  ;;  %958 = vtanh.f32 %v563_v59 }
  0xbb   : > { %v490_v3 = vmul.f32 %v1213_v57, %v1213_v57  ;;  %v1230_v8 = vadd.f32 %v468_v0, %v1115_v19  ;;  %v481_v21 = vmul.f32 %v1223_v30, %v1223_v30  ;;  %v564_v19 = vmul.f32 0.7978846, %v544_v54 }
  0xbc   : > { %v494_v7 = vmul.f32 %v1218_v63, %v1218_v63  ;;  %v553_v9 = vadd.f32 %v533_v1, %v1197_v29  ;;  %v569_v20 = vmul.f32 0.7978846, %v549_v61  ;;  %v545_v39 = vadd.f32 %v525_v13, %v1188_v15 }
  0xbd   : > { %v955_v10 = vpop.eup %954  ;;  %v510_v11 = vmul.f32 %v490_v3, %v1213_v57  ;;  %v486_v28 = vmul.f32 %v1230_v8, %v1230_v8  ;;  %v637_v44 = vmul.f32 %v617_v12, %v1120_v22  ;;  %v501_v48 = vmul.f32 %v481_v21, %v1223_v30 }
  0xbe   : > { %v514_v16 = vmul.f32 %v494_v7, %v1218_v63  ;;  %v607_v17 = vadd.f32 1.0, %v955_v10  ;;  %v573_v18 = vmul.f32 0.7978846, %v553_v9  ;;  %v642_v54 = vmul.f32 %v622_v25, %v1141_v35 }
  0xbf   : > { %v530_v23 = vmul.f32 0.044715, %v510_v11  ;;  %v957_v33 = vpop.eup %956  ;;  %v506_v52 = vmul.f32 %v486_v28, %v1230_v8  ;;  %v565_v61 = vmul.f32 0.7978846, %v545_v39  ;;  %v598_v6 = vadd.f32 1.0, %v1220_v2 }
  0xc0   : > { %v534_v27 = vmul.f32 0.044715, %v514_v16  ;;  %v445_v31 = vpop.f32.mrf.mxu3  ;;  %v627_v32 = vmul.f32 0.5, %v607_v17  ;;  %960 = vtanh.f32 %v573_v18  ;;  %v959_v47 = vpop.eup %958  ;;  %v608_v55 = vadd.f32 1.0, %v957_v33 }
  0xc1   : > { %v550_v37 = vadd.f32 %v530_v23, %v1213_v57  ;;  %v1242_v38 = vadd.f32 %v445_v31, %v1127_v26  ;;  %962 = vtanh.f32 %v569_v20  ;;  %v526_v4 = vmul.f32 0.044715, %v506_v52 }
  0xc2   : > { %v554_v40 = vadd.f32 %v534_v27, %v1218_v63  ;;  %v471_v42 = vpop.f32.mrf.mxu0  ;;  %v647_v43 = vmul.f32 %v627_v32, %v1164_v56  ;;  %964 = vtanh.f32 %v564_v19  ;;  %v560_v7 = vmul.f32 0.7978846, %v540_v36  ;;  %v658_v19 = vld [vmem:[%s1325_s4] sm:$0x3] }
  0xc3   : > { %v495_v49 = vmul.f32 %v1242_v38, %v1242_v38  ;;  %v1252_v50 = vadd.f32 %v471_v42, %v1153_v46  ;;  %966 = vtanh.f32 %v1206_v45  ;;  %v570_v58 = vmul.f32 0.7978846, %v550_v37  ;;  %661 = vperm.xlu2 %945, %v658_v19  }
  0xc4   : > { %v574_v51 = vmul.f32 0.7978846, %v554_v40  ;;  %681 = vmatpush.msrb.mxu1 %v647_v43  ;;  %v603_v46 = vadd.f32 1.0, %v959_v47  ;;  %v628_v45 = vmul.f32 0.5, %v608_v55  ;;  %v521_v20 = vmul.f32 0.044715, %v501_v48 }
  0xc5   : > { %v515_v56 = vmul.f32 %v495_v49, %v1242_v38  ;;  %v491_v22 = vmul.f32 %v1252_v50, %v1252_v50  ;;  %v546_v28 = vadd.f32 %v526_v4, %v1230_v8  ;;  %v618_v31 = vmul.f32 0.5, %v598_v6 }
  0xc6   : > { %v961_v59 = vpop.eup %960  ;;  %968 = vtanh.f32 %v574_v51  ;;  %682 = vmatpush.msrb.mxu1 %v642_v54  ;;  %v623_v16 = vmul.f32 0.5, %v603_v46 }
  0xc7   : > { %v963_v35 = vpop.eup %962  ;;  %v535_v0 = vmul.f32 0.044715, %v515_v56  ;;  %v511_v1 = vmul.f32 %v491_v22, %v1252_v50  ;;  %v613_v3 = vadd.f32 1.0, %v961_v59  ;;  %970 = vtanh.f32 %v570_v58 }
  0xc8   : > { %683 = vmatpush.msrb.mxu1 %v637_v44  ;;  %v965_v9 = vpop.eup %964  ;;  %v609_v17 = vadd.f32 1.0, %v963_v35  ;;  %972 = vtanh.f32 %v565_v61  ;;  %v643_v37 = vmul.f32 %v623_v16, %v1148_v41  ;;  %v638_v49 = vmul.f32 %v618_v31, %v1123_v24 }
  0xc9   : > { %v555_v10 = vadd.f32 %v535_v0, %v1242_v38  ;;  %v531_v11 = vmul.f32 0.044715, %v511_v1  ;;  %v633_v12 = vmul.f32 0.5, %v613_v3  ;;  %908 = vmatmul.msk.f32.vlgmr.msrb.gmra.mxu1 %vm664_vm2, %v1263_v62  ;;  %v967_v18 = vpop.eup %966  ;;  %v604_v32 = vadd.f32 1.0, %v965_v9 }
  0xca   : > { %v474_v13 = vpop.f32.mrf.mxu0  ;;  %974 = vtanh.f32 %v560_v7  ;;  %v599_v39 = vadd.f32 1.0, %v967_v18  ;;  %v629_v44 = vmul.f32 0.5, %v609_v17  ;;  %v566_v54 = vmul.f32 0.7978846, %v546_v28 }
  0xcb   : > { %v575_v21 = vmul.f32 0.7978846, %v555_v10  ;;  %v551_v23 = vadd.f32 %v531_v11, %v1252_v50  ;;  %v1272_v2 = vadd.f32 %v474_v13, %v1127_v26  ;;  %v653_v25 = vmul.f32 %v633_v12, %v1197_v29 }
  0xcc   : > { %v969_v27 = vpop.eup %968  ;;  %v648_v26 = vmul.f32 %v628_v45, %v1168_v60  ;;  %v541_v29 = vadd.f32 %v521_v20, %v1223_v30  ;;  %v624_v52 = vmul.f32 0.5, %v604_v32  ;;  %v649_v59 = vmul.f32 %v629_v44, %v1185_v14 }
  0xcd   : > { %976 = vtanh.f32 %v575_v21  ;;  %v496_v33 = vmul.f32 %v1272_v2, %v1272_v2  ;;  %700 = vmatpush.msrb.mxu2 %v653_v25  ;;  %v614_v36 = vadd.f32 1.0, %v969_v27  ;;  %v971_v40 = vpop.eup %970  ;;  %v571_v47 = vmul.f32 0.7978846, %v551_v23 }
  0xce   : > { %v973_v48 = vpop.eup %972  ;;  %v610_v56 = vadd.f32 1.0, %v971_v40  ;;  %v561_v41 = vmul.f32 0.7978846, %v541_v29  ;;  %v619_v46 = vmul.f32 0.5, %v599_v39  ;;  %v644_v35 = vmul.f32 %v624_v52, %v1160_v53 }
  0xcf   : > { %v516_v42 = vmul.f32 %v496_v33, %v1272_v2  ;;  %701 = vmatpush.msrb.mxu2 %v648_v26  ;;  %v634_v43 = vmul.f32 0.5, %v614_v36  ;;  %978 = vtanh.f32 %v571_v47  ;;  %v605_v24 = vadd.f32 1.0, %v973_v48 }
  0xd0   : > { %v975_v55 = vpop.eup %974  ;;  %980 = vtanh.f32 %v566_v54  ;;  %v630_v1 = vmul.f32 0.5, %v610_v56  ;;  %v639_v14 = vmul.f32 %v619_v46, %v1138_v34 }
  0xd1   : > { %v536_v51 = vmul.f32 0.044715, %v516_v42  ;;  %702 = vmatpush.msrb.mxu2 %v643_v37  ;;  %v654_v60 = vmul.f32 %v634_v43, %v1218_v63  ;;  %v600_v3 = vadd.f32 1.0, %v975_v55  ;;  %982 = vtanh.f32 %v561_v41 }
  0xd2   : > { %v625_v45 = vmul.f32 0.5, %v605_v24  ;;  %v650_v7 = vmul.f32 %v630_v1, %v1213_v57 }
  0xd3   : > { %v977_v22 = vpop.eup %976  ;;  %v556_v58 = vadd.f32 %v536_v51, %v1272_v2  ;;  %703 = vmatpush.msrb.mxu2 %v638_v49  ;;  %720 = vmatpush.msra.mxu3 %v654_v60  ;;  %v620_v9 = vmul.f32 0.5, %v600_v3 }
  0xd4   : > { %v615_v61 = vadd.f32 1.0, %v977_v22  ;;  %909 = vmatmul.msk.f32.vlgmr.msrb.gmra.mxu2 %vm664_vm2, %v1263_v62  ;;  %v645_v11 = vmul.f32 %v625_v45, %v1188_v15 }
  0xd5   : > { %v576_v63 = vmul.f32 0.7978846, %v556_v58  ;;  %721 = vmatpush.msra.mxu3 %v649_v59  ;;  %v979_v6 = vpop.eup %978  ;;  %v640_v34 = vmul.f32 %v620_v9, %v1179_v5 }
  0xd6   : > { %v635_v0 = vmul.f32 0.5, %v615_v61  ;;  %v981_v53 = vpop.eup %980  ;;  %v611_v12 = vadd.f32 1.0, %v979_v6 }
  0xd7   : > { %984 = vtanh.f32 %v576_v63  ;;  %722 = vmatpush.msra.mxu3 %v644_v35  ;;  %v983_v10 = vpop.eup %982  ;;  %v606_v13 = vadd.f32 1.0, %v981_v53 }
  0xd8   : > { %v655_v4 = vmul.f32 %v635_v0, %v1242_v38  ;;  %v631_v17 = vmul.f32 0.5, %v611_v12  ;;  %v601_v57 = vadd.f32 1.0, %v983_v10 }
  0xd9   : > { %723 = vmatpush.msra.mxu3 %v639_v14  ;;  %v626_v21 = vmul.f32 0.5, %v606_v13 }
  0xda   : > { %740 = vmatpush.msra.mxu1 %v655_v4  ;;  %910 = vmatmul.msk.f32.vlgmr.msra.gmra.mxu3 %vm664_vm2, %v1263_v62  ;;  %v651_v15 = vmul.f32 %v631_v17, %v1252_v50  ;;  %v621_v23 = vmul.f32 0.5, %v601_v57 }
  0xdb   : > { %v646_v25 = vmul.f32 %v626_v21, %v1230_v8 }
  0xdc   : > { %741 = vmatpush.msra.mxu1 %v650_v7  ;;  %v641_v5 = vmul.f32 %v621_v23, %v1223_v30 }
  0xdd   : > { %v985_v20 = vpop.eup %984 }
  0xde   : > { %742 = vmatpush.msra.mxu1 %v645_v11  ;;  %v616_v38 = vadd.f32 1.0, %v985_v20 }
  0xe0   : > { %743 = vmatpush.msra.mxu1 %v640_v34  ;;  %v636_v16 = vmul.f32 0.5, %v616_v38 }
  0xe1   : > { %911 = vmatmul.msk.f32.vlgmr.msra.gmra.mxu1 %vm664_vm2, %v1263_v62 }
  0xe2   : > { %v656_v18 = vmul.f32 %v636_v16, %v1272_v2 }
  0xe4   : > { %760 = vmatpush.msra.mxu2 %v656_v18 }
  0xe6   : > { %761 = vmatpush.msra.mxu2 %v651_v15 }
  0xe8   : > { %762 = vmatpush.msra.mxu2 %v646_v25 }
  0xea   : > { %763 = vmatpush.msra.mxu2 %v641_v5 }
  0xeb   : > { %912 = vmatmul.msk.f32.vlgmr.msra.gmra.mxu2 %vm664_vm2, %v1263_v62 }
 0x11d   : > { %v662_v28 = vpop.permute.xlu2 %661 }
 0x146   : > { %v685_v19 = vpop.f32.mrf.mxu1 }
 0x147   : > { %v686_v2 = vadd.f32 %v685_v19, %v662_v28 }
 0x157   : > { %v705_v27 = vpop.f32.mrf.mxu2 }
 0x158   : > { %v706_v31 = vadd.f32 %v705_v27, %v662_v28 }
 0x15a   : > { %v768_v36 = vpack.c.bf16 %v706_v31, %v686_v2 }
 0x15c   : > { %v774_v37 = vrot.slane %v768_v36, 3 }
 0x15d   : > { %v725_v32 = vpop.f32.mrf.mxu3 }
 0x15e   : > { %v745_v33 = vpop.f32.mrf.mxu1  ;;  %v726_v50 = vadd.f32 %v725_v32, %v662_v28  ;;  %v782_v42 = vsel %vm779_vm3, %v768_v36, %v774_v37 }
 0x15f   : > { %v746_v26 = vadd.f32 %v745_v33, %v662_v28 }
 0x161   : > { %v769_v29 = vpack.c.bf16 %v746_v26, %v726_v50 }
 0x163   : > { %v776_v30 = vrot.slane %v769_v29, 1  ;;  %v775_v62 = vrot.slane %v769_v29, 6 }
 0x165   : > { %v785_v48 = vsel %vm783_vm4, %v782_v42, %v775_v62 }
 0x16e   : > { %v765_v8 = vpop.f32.mrf.mxu2 }
 0x16f   : > { %v766_v39 = vadd.f32 %v765_v8, %v662_v28 }
 0x171   : > { %v770_v40 = vpack.c.bf16 %v766_v39, %v766_v39 }
 0x173   : > { %v777_v43 = vrot.slane %v770_v40, 4  ;;  %v778_v44 = vrot.slane %v770_v40, 7 }
 0x175   : > { %v789_v47 = vsel %vm786_vm5, %v776_v30, %v777_v43 }
 0x176   : > { %v792_v49 = vsel %vm790_vm6, %v789_v47, %v778_v44 }
 0x177   : > { %v793_v51 = vsel %vm321_vm0, %v785_v48, %v792_v49 }
 0x178   : > { %795 = vst [vmem:[%s260_s28] sm:$0x1f] %v793_v51 }
 0x179 PF: > { %s15_s20 = sadd.s32 1, %s1008_s20   ;;  %s1327_s18 = smov %s1004_s19 }
 0x17a   : > { %p12_p5 = scmp.ge.s32.totalorder %s15_s20, 4   ;;  %s1328_s19 = smov %s1330_s21 }
 0x17c   :  { %14 = sbr.rel (!%p12_p5) target bundleno = 2 (0x2), region = 72 }

// kernel: three_model_forward.11
= control target key start
LH: loop header
LB: loop body
LE: loop exit
PB: predicated region body
PF: predicated region fallthrough
CT: control target
= control target key end

     0   :  { %s1953_s0 = inlined_call_operand.vmem [shape: f32[2,2,16,16], index: 0, kind: input, shape index: {}]   ;;  %s1954_s1 = inlined_call_operand.vmem [shape: bf16[2,2,11,11], index: 1, kind: input, shape index: {}]   ;;  %s1955_s2 = inlined_call_operand.vmem [shape: bf16[2,2,24,24], index: 2, kind: input, shape index: {}]   ;;  %s1956_s3 = inlined_call_operand.vmem [shape: bf16[16,11], index: 3, kind: input, shape index: {}]   ;;  %s1957_s4 = inlined_call_operand.vmem [shape: bf16[11,16], index: 4, kind: input, shape index: {}]   ;;  %s1958_s5 = inlined_call_operand.vmem [shape: bf16[16,24], index: 5, kind: input, shape index: {}]   ;;  %s1959_s6 = inlined_call_operand.vmem [shape: bf16[24,16], index: 6, kind: input, shape index: {}]   ;;  %s1960_s7 = inlined_call_operand.vmem [shape: f32[6,3], index: 7, kind: input, shape index: {}]   ;;  %s1961_s8 = inlined_call_operand.vmem [shape: f32[3], index: 8, kind: input, shape index: {}]   ;;  %s1962_s9 = inlined_call_operand.hbm [shape: f32[2,2,16,16], index: 9, kind: output, shape index: {0}]   ;;  %s1963_s10 = inlined_call_operand.hbm [shape: f32[2,2,16,16], index: 10, kind: output, shape index: {1}]   ;;  %s1964_s11 = inlined_call_operand.vmem [shape: f32[2,3,16,16], index: 11, kind: output, shape index: {2}]  }
   0x1   :  { %1972 = sst [smem:[#allocation22_spill]] %s1953_s0 }
   0x2   :  { %1973 = sst [smem:[#allocation23_spill]] %s1954_s1 }
   0x3   :  { %1974 = sst [smem:[#allocation24_spill]] %s1955_s2 }
   0x4   :  { %1975 = sst [smem:[#allocation25_spill]] %s1956_s3 }
   0x5   :  { %1976 = sst [smem:[#allocation26_spill]] %s1957_s4 }
   0x6   :  { %1977 = sst [smem:[#allocation27_spill]] %s1958_s5 }
   0x7   :  { %1978 = sst [smem:[#allocation28_spill]] %s1959_s6 }
   0x8   :  { %1979 = sst [smem:[#allocation29_spill]] %s1960_s7 }
   0x9   :  { %1980 = sst [smem:[#allocation30_spill]] %s1961_s8 }
   0xa   :  { %1981 = sst [smem:[#allocation31_spill]] %s1963_s10 }
   0xb   :  { %1982 = sst [smem:[#allocation32_spill]] %s1964_s11 }
   0xc   :  { %17 = vsyncpa [#allocation5], 0 }
   0xd   :  { %18 = vsyncpa [#allocation7], 0 }
   0xe   :  { %19 = vsyncpa [#allocation4], 0 }
   0xf   :  { %21 = vsyncpa [#allocation4 + $0x1], 0 }
  0x10   :  { %22 = vsyncpa [#allocation10], 0 }
  0x11   :  { %24 = vsyncpa [#allocation10 + $0x1], 0  ;;  %s1619_s17 = smov 0   ;;  %s1621_s18 = smov 0  }
  0x12   :  { %s1623_s19 = smov 0   ;;  %s1625_s20 = smov 0  }
  0x13   :  { %s1627_s21 = smov 0   ;;  %s1629_s22 = smov 0  }
  0x14   :  { %s1631_s23 = smov 0   ;;  %s1633_s24 = smov 0  }
  0x15 LB: > { %1983 = sst [smem:[#allocation16_spill]] %s1523_s17  ;;  %s1180_s25 = sadd.s32 4294967295, %s1551_s24   ;;  %s1551_s24 = sphi %s1633_s24, %s30_s24   ;;  %s1547_s23 = sphi %s1631_s23, %s2013_s23   ;;  %s1543_s22 = sphi %s1629_s22, %s2012_s22   ;;  %s1539_s21 = sphi %s1627_s21, %s2011_s21   ;;  %s1535_s20 = sphi %s1625_s20, %s2010_s20   ;;  %s1531_s19 = sphi %s1623_s19, %s2016_s19   ;;  %s1527_s18 = sphi %s1621_s18, %s2015_s18   ;;  %s1523_s17 = sphi %s1619_s17, %s2014_s17  }
  0x16   : > { %1984 = sst [smem:[#allocation17_spill]] %s1543_s22  ;;  %s1181_s26 = sadd.s32 4294967294, %s1551_s24  }
  0x17   : > { %1985 = sst [smem:[#allocation18_spill]] %s1547_s23  ;;  %s39_s27 = sadd.s32 1, %s1543_s22 }
  0x18   : > { %s42_s28 = sadd.s32 1, %s1547_s23  ;;  %p40_p0 = scmp.ge.s32.totalorder %s39_s27, 2 }
  0x19   : > { %s51_s29 = sadd.s32 1, %s1531_s19  ;;  %p58_p1 = scmp.ne.s32.totalorder %s1531_s19, %s1527_s18 }
  0x1a   : > { %p59_p2 = scmp.eq.s32.totalorder %s1551_s24, 0  ;;  %s2018_s27 = smov (%p40_p0, %s39_s27), 0 }
  0x1b   : > { %1986 = sst [smem:[#allocation19_spill]] %s2018_s27  ;;  %s2020_s28 = smov (!%p40_p0, %s42_s28), %s1547_s23 }
  0x1c   : > { %s47_s30 = ssub.s32 %s1543_s22, %s2018_s27  ;;  %p1672_p3 = por %p59_p2, %p58_p1 }
  0x1d   : > { %p44_p4 = scmp.ge.s32.totalorder %s2020_s28, 2  ;;  %p278_p5 = scmp.eq.s32.totalorder %s1180_s25, 3 }
  0x1e   : > { %p283_p6 = scmp.ne.s32.totalorder %s1527_s18, %s1523_s17  ;;  %p284_p7 = scmp.eq.s32.totalorder %s1181_s26, 3 }
  0x1f   : > { %s2022_s28 = smov (%p44_p4, %s2020_s28), 0  ;;  %p1680_p8 = por %p278_p5, %p58_p1 }
  0x20   : > { %1988 = sst [smem:[#allocation20_spill]] %s2022_s28  ;;  %p1684_p9 = por %p284_p7, %p283_p6 }
  0x21   : > { %s46_s15 = ssub.s32 %s1547_s23, %s2022_s28  ;;  %p1182_p10 = scmp.ge.s32.totalorder %s1551_s24, 1 }
  0x22   : > { %s1990_s14 = scalar_select %p1684_p9, 1, 0 }
  0x23   : > { %s48_s16 = sor.u32 %s47_s30, %s46_s15  ;;  %p347_p11 = scmp.lt.s32.totalorder %s1551_s24, 5 }
  0x24   : > { %1991 = sst [smem:[#allocation21_spill]] %s1990_s14  ;;  %p49_p12 = scmp.eq.s32.totalorder %s48_s16, 0 }
  0x25   : > { %p1692_p13 = pnand %p1182_p10, %p347_p11  ;;  %p1696_p0 = scmp.eq.s32.totalorder %s1180_s25, 0 }
  0x26   : > { %s1701_s17 = scalar_select %p49_p12, %s1531_s19, %s51_s29  }
  0x27   : > { %p1290_p1 = pneg %p1692_p13  ;;  %s1994_s7 = sld [smem:[#allocation29_spill]] }
  0x28   : > { %s1995_s8 = sld [smem:[#allocation30_spill]]  ;;  %s1553_s25 = smov [#allocation3]  }
  0x29   : > { %p1291_p2 = pnand %p1696_p0, %p1290_p1  ;;  %s1554_s10 = smov [#allocation6]  }
  0x2a   : > { %p1185_p4 = scmp.ge.s32.totalorder %s1551_s24, 4 }
  0x2c   : > { %382 = sbr.rel (%p1185_p4) target bundleno = 61 (0x3d), region = 32 }
  0x2d   : > { %s365_s30 = sshll.u32 %s1994_s7, 4  ;;  %s366_s30 = int_to_ptr.vmem [resolvable:$true] %s365_s30 }
  0x2e   : > { %s375_s11 = sshll.u32 %s1995_s8, 4  ;;  %s376_s11 = int_to_ptr.vmem [resolvable:$true] %s375_s11 }
  0x2f   : > { %1293 = dma.vmem_to_smem (!%p1291_p2), %s366_s30, 128, %s1553_s25, [#allocation5]  }
  0x30   : > { %1296 = dma.vmem_to_smem (!%p1291_p2), %s376_s11, 16, %s1554_s10, [#allocation7]  }
  0x31   : > { %385 = sbr.rel (!%p1672_p3) target bundleno = 61 (0x3d), region = 36  ;;  %s387_s28 = sand.u32 (%p1672_p3), 1, %s1531_s19  }
  0x32   : > { %s1187_s29 = sshll.u32 (%p1672_p3), %s1547_s23, 2  ;;  %s1186_s14 = sshll.u32 (%p1672_p3), %s387_s28, 4 }
  0x33   : > { %s391_s7 = sadd.s32 (%p1672_p3), %s1543_s22, %s1187_s29  ;;  %s1996_s0 = sld [smem:[#allocation22_spill]] (%p1672_p3) }
  0x34   : > { %s1188_s15 = sshll.u32 (%p1672_p3), %s391_s7, 3  ;;  %s389_s10 = scalar_lea.vmem (%p1672_p3), [#allocation2], %s1186_s14 }
  0x39   : > { %s393_s30 = scalar_lea.vmem %s1996_s0, %s1188_s15 }
  0x3a   : > { %v424_v0 = vld [vmem:[%s393_s30] sm:$0xff]  ;;  %v426_v1 = vld [vmem:[%s393_s30 + $0x10] sm:$0xff] }
  0x3b   : > { %425 = vst [vmem:[%s389_s10] sm:$0xff] %v424_v0 }
  0x3c   : > { %427 = vst [vmem:[%s389_s10 + $0x8] sm:$0xff] %v426_v1 }
  0x3d PF: > { %466 = sbr.rel (%p1692_p13) target bundleno = 427 (0x1ab), region = 90  ;;  %s1725_s11 = sand.u32 (!%p1692_p13), 1, %s1527_s18  }
  0x3e   : > { %s1728_s7 = sshll.u32 (!%p1692_p13), %s1725_s11, 4 }
  0x42   : > { %1506 = dma.done.wait (%p1696_p0), [#allocation5], 128  }
  0x43   : > { %1508 = vsyncadd (%p1696_p0), [#allocation5], 4294967168 }
  0x44   : > { %1510 = dma.done.wait (%p1696_p0), [#allocation7], 16  }
  0x45   : > { %1512 = vsyncadd (%p1696_p0), [#allocation7], 4294967280 }
  0x46   : > { %485 = sfence }
  0x47   : > { %p546_p3 = scmp.lt.s32.totalorder %s1539_s21, 1  ;;  %vm577_vm0 = vcmask 1044480   ;;  %p556_p5 = scmp.lt.s32.totalorder %s1535_s20, 1  ;;  %vm578_vm1 = vcmask 1045504   ;;  %v1555_v2 = vmov 65535   ;;  %vm626_vm2 = vcmask 1043456  }
  0x48   : > { %v579_v3 = vsel %vm577_vm0, 4294967295, %v1555_v2  ;;  %s1997_s1 = sld [smem:[#allocation23_spill]]  ;;  %vm573_vm3 = vcmask 89088   ;;  %vm669_vm4 = vcmask 195584   ;;  %s1261_s29 = sshll.u32 %s1539_s21, 2  ;;  %vm757_vm5 = vcmask 130048  }
  0x49   : > { %s547_s27 = scalar_select %p546_p3, %s1539_s21, 1  ;;  %v580_v4 = vsel %vm578_vm1, %v579_v3, 0 }
  0x4a   : > { %s1743_s12 = scalar_select %p556_p5, %s1535_s20, 1 }
  0x4b   : > { %s1268_s25 = sshll.u32 %s547_s27, 4  ;;  %s1276_s28 = smul.u32 24, %s547_s27 }
  0x4c   : > { %s1198_s15 = sshll.u32 %s1743_s12, 2  ;;  %s1998_s2 = sld [smem:[#allocation24_spill]] }
  0x4d   : > { %s1999_s3 = sld [smem:[#allocation25_spill]]  ;;  %s1799_s16 = sadd.s32 %s1535_s20, %s1261_s29 }
  0x4e   : > { %s550_s14 = scalar_lea.vmem %s1997_s1, %s1268_s25  ;;  %s2000_s5 = sld [smem:[#allocation27_spill]] }
  0x4f   : > { %v1202_v5 = vld [vmem:[%s550_s14] sm:$0xf]  ;;  %v1269_v6 = vld [vmem:[%s550_s14] sm:$0x30]  ;;  %v1209_v7 = vld [vmem:[%s550_s14 + $0x8] sm:$0xf] }
  0x50   : > { %v1203_v8 = vor.u32 %v1269_v6, %v1202_v5  ;;  %v1270_v9 = vld [vmem:[%s550_s14 + $0x8] sm:$0x30]  ;;  %s2001_s4 = sld [smem:[#allocation26_spill]]  ;;  %s2003_s1 = scalar_lea.vmem [#allocation2], %s1728_s7 }
  0x51   : > { %v1210_v11 = vor.u32 %v1270_v9, %v1209_v7  ;;  %s2002_s6 = sld [smem:[#allocation28_spill]]  ;;  %v764_v52 = vld [vmem:[%s2003_s1] sm:$0xff] }
  0x52   : > { %s555_s10 = scalar_lea.vmem %s1998_s2, %s1276_s28  ;;  %v582_v14 = vand.u32 %v1203_v8, %v580_v4  ;;  %s1243_s27 = sld [smem:[#allocation3 + $0x1]] }
  0x53   : > { %v659_v10 = vld [vmem:[%s555_s10 + $0x8] sm:$0xf]  ;;  %s559_s0 = scalar_lea.vmem %s1999_s3, %s1198_s15  ;;  %v1224_v13 = vld [vmem:[%s555_s10 + $0x14] sm:$0xf]  ;;  %v607_v16 = vand.u32 %v1210_v11, %v580_v4  ;;  %v1272_v22 = vld [vmem:[%s555_s10] sm:$0xff]  ;;  %s1781_s8 = sld [smem:[#allocation6]] }
  0x54   : > { %v665_v12 = vunpack.c.l.b16 %v659_v10  ;;  %v699_v15 = vunpack.c.l.b16 %v1224_v13  ;;  %591 = vmatpush.bf16.msra.mxu0 %v582_v14  ;;  %v565_v18 = vld [vmem:[%s559_s0] sm:$0xf]  ;;  %s563_s25 = scalar_lea.vmem %s2000_s5, %s1198_s15  ;;  %v1273_v23 = vld [vmem:[%s555_s10 + $0xc] sm:$0xff]  ;;  %s767_s10 = sld [smem:[#allocation3]] }
  0x55   : > { %616 = vmatpush.bf16.msra.mxu1 %v607_v16  ;;  %v656_v24 = vld [vmem:[%s563_s25] sm:$0xf]  ;;  %s1783_s12 = sld [smem:[#allocation3 + $0x80]]  ;;  %s1814_s5 = scalar_lea.vmem [#allocation8], %s1728_s7 }
  0x56   : > { %v667_v17 = vpack.c.b16 %v665_v12, %v665_v12  ;;  %v701_v19 = vpack.c.b16 %v699_v15, %v699_v15  ;;  %v1214_v25 = vld [vmem:[%s2001_s4] sm:$0xf]  ;;  %v1271_v26 = vld [vmem:[%s2001_s4] sm:$0x30]  ;;  %s1785_s25 = sld [smem:[#allocation3 + $0x2]]  ;;  %s1262_s4 = sshll.u32 %s1799_s16, 3 }
  0x57   : > { %1204 = vmatmul.msk.bf16.vlgmr.msra.gmra.mxu0 %vm573_vm3, %v565_v18  ;;  %v1215_v27 = vor.u32 %v1271_v26, %v1214_v25  ;;  %v728_v29 = vld [vmem:[%s2002_s6 + $0x8] sm:$0xf]  ;;  %v1274_v33 = vld [vmem:[%s2002_s6] sm:$0xff]  ;;  %s1787_s0 = sld [smem:[#allocation6 + $0x1]]  ;;  %s893_s1 = sshll.u32 %s1814_s5, 4  ;;  %s1838_s1 = int_to_ptr.vmem [resolvable:$true] %s893_s1 }
  0x58   : > { %v674_v20 = vsel %vm626_vm2, %v667_v17, 0  ;;  %v704_v21 = vsel %vm626_vm2, %v701_v19, 0  ;;  %1211 = vmatmul.msk.bf16.vlgmr.msra.gmra.mxu1 %vm573_vm3, %v565_v18  ;;  %v734_v30 = vunpack.c.l.b16 %v728_v29  ;;  %s1789_s28 = sld [smem:[#allocation3 + $0x81]]  ;;  %v794_v54 = vstv %s1243_s27  ;;  %s892_s22 = scalar_lea.hbm %s1962_s9, %s1262_s4 }
  0x59   : > { %682 = vmatpush.bf16.msra.mxu3 %v674_v20  ;;  %712 = vmatpush.bf16.msrb.mxu0 %v704_v21  ;;  %v640_v28 = vand.u32 %v1215_v27, %v580_v4  ;;  %s1792_s26 = sld [smem:[#allocation6 + $0x2]]  ;;  %v771_v59 = vstv %s1781_s8  ;;  %v795_v61 = vmul.f32 %v794_v54, %v764_v52  ;;  %s895_s6 = sshll.u32 %s892_s22, 4  ;;  %s1853_s6 = int_to_ptr.hbm [resolvable:$true] %s895_s6 }
  0x5a   : > { %v736_v31 = vpack.c.b16 %v734_v30, %v734_v30  ;;  %s1794_s14 = sld [smem:[#allocation3 + $0x82]]  ;;  %v768_v53 = vstv %s767_s10  ;;  %s2004_s10 = scalar_lea.vmem [#allocation2], %s1728_s7 }
  0x5b   : > { %649 = vmatpush.bf16.msra.mxu2 %v640_v28  ;;  %s1796_s15 = sld [smem:[#allocation3 + $0x100]]  ;;  %v769_v56 = vmul.f32 %v768_v53, %v764_v52  ;;  %v1237_v58 = vld [vmem:[%s2004_s10 + $0x8] sm:$0xff]  ;;  %v774_v60 = vstv %s1783_s12  ;;  %s1437_s10 = scalar_lea.hbm %s1962_s9, 64 }
  0x5c   : > { %v741_v32 = vsel %vm626_vm2, %v736_v31, 0  ;;  %s1801_s30 = sld [smem:[#allocation3 + $0x101]]  ;;  %v820_v55 = vstv %s1785_s25  ;;  %v775_v4 = vmul.f32 %v1237_v58, %v774_v60 }
  0x5d   : > { %683 = vmatpush.bf16.msra.mxu3 %v1272_v22  ;;  %713 = vmatpush.bf16.msrb.mxu0 %v1273_v23  ;;  %s1805_s2 = sld [smem:[#allocation3 + $0x102]]  ;;  %v797_v62 = vstv %s1787_s0  ;;  %v821_v0 = vmul.f32 %v820_v55, %v764_v52  ;;  %v772_v3 = vadd.f32 %v771_v59, %v769_v56 }
  0x5e   : > { %749 = vmatpush.bf16.msrb.mxu1 %v741_v32  ;;  %s1807_s3 = sld [smem:[#allocation3 + $0x180]]  ;;  %v800_v63 = vstv %s1789_s28  ;;  %v798_v6 = vadd.f32 %v797_v62, %v795_v61 }
  0x5f   : > { %s1811_s29 = sld [smem:[#allocation3 + $0x181]]  ;;  %v823_v1 = vstv %s1792_s26  ;;  %v801_v7 = vmul.f32 %v1237_v58, %v800_v63  ;;  %v776_v14 = vadd.f32 %v775_v4, %v772_v3 }
  0x60   : > { %1221 = vmatmul.msk.bf16.vlgmr.msra.gmra.mxu3 %vm669_vm4, %v656_v24  ;;  %s1821_s27 = sld [smem:[#allocation3 + $0x182]]  ;;  %v826_v2 = vstv %s1794_s14  ;;  %v824_v9 = vadd.f32 %v823_v1, %v821_v0 }
  0x61   : > { %s1827_s25 = sld [smem:[#allocation3 + $0x200]]  ;;  %v778_v5 = vstv %s1796_s15  ;;  %v827_v10 = vmul.f32 %v1237_v58, %v826_v2  ;;  %v802_v18 = vadd.f32 %v801_v7, %v798_v6  ;;  %s1431_s15 = sshra.s32 %s1853_s6, 4  ;;  %s1432_s15 = int_to_ptr.hbm [resolvable:$true] %s1431_s15 }
  0x62   : > { %750 = vmatpush.bf16.msrb.mxu1 %v1274_v33  ;;  %s1836_s8 = sld [smem:[#allocation3 + $0x201]]  ;;  %v804_v8 = vstv %s1801_s30  ;;  %s1433_s30 = scalar_lea.hbm %s1432_s15, 16 }
  0x63   : > { %s1840_s12 = sld [smem:[#allocation3 + $0x202]]  ;;  %v830_v13 = vstv %s1805_s2  ;;  %v828_v20 = vadd.f32 %v827_v10, %v824_v9  ;;  %s1859_s2 = scalar_lea.vmem [#allocation9], %s1728_s7 }
  0x64   : > { %s1843_s0 = sld [smem:[#allocation3 + $0x280]]  ;;  %v782_v11 = vstv %s1807_s3  ;;  %p1434_p6 = scmp.ne.s32.totalorder %s1432_s15, %s1433_s30 }
  0x65   : > { %s1846_s23 = sld [smem:[#allocation3 + $0x281]]  ;;  %v808_v15 = vstv %s1811_s29  ;;  %p1438_p11 = scmp.lt.s32.totalorder %s1432_s15, %s1962_s9 }
  0x66   : > { %s1849_s28 = sld [smem:[#allocation3 + $0x282]]  ;;  %v834_v21 = vstv %s1821_s27  ;;  %p1435_p7 = pnand %p1434_p6, %p1680_p8 }
  0x67   : > { %1229 = vmatmul.msk.bf16.vlgmr.msrb.gmra.mxu0 %vm669_vm4, %v656_v24  ;;  %v786_v25 = vstv %s1827_s25  ;;  %s2005_s26 = sld [smem:[#allocation31_spill]]  ;;  %p1439_p12 = scmp.lt.s32.totalorder %s1437_s10, %s1433_s30 }
  0x68   : > { %v812_v26 = vstv %s1836_s8  ;;  %p1436_p10 = pneg %p1435_p7 }
  0x69   : > { %p1440_p13 = por %p1439_p12, %p1438_p11 }
  0x6b   : > { %p1441_p0 = pnand %p1440_p13, %p1436_p10 }
  0x6d   : > { %s1870_s14 = scalar_lea.hbm %s2005_s26, %s1262_s4 }
  0xd4   : > { %v593_v34 = vpop.f32.mrf.mxu0 }
  0xd5   : > { %v618_v35 = vpop.f32.mrf.mxu1  ;;  %v597_v38 = vpack.c.bf16 %v593_v34, %v593_v34 }
  0xd6   : > { %v622_v36 = vpack.c.bf16 %v618_v35, %v618_v35 }
  0xd8   : > { %v624_v37 = vunpack.c.l.b16 %v622_v36 }
  0xda   : > { %v625_v39 = vpack.c.b16 %v624_v37, %v624_v37 }
  0xdc   : > { %v595_v40 = vpop.f32.mrf.mxu0  ;;  %v629_v41 = vsel %vm626_vm2, %v597_v38, %v625_v39 }
  0xdd   : > { %v620_v42 = vpop.f32.mrf.mxu1  ;;  %1216 = vmatmul.msk.bf16.vlgmr.msra.gmra.mxu2 %vm573_vm3, %v629_v41 }
  0xe3   : > { %v685_v43 = vpop.f32.mrf.mxu3 }
  0xe4   : > { %v715_v44 = vpop.f32.mrf.mxu0  ;;  %v689_v46 = vpack.c.bf16 %v685_v43, %v685_v43 }
  0xe5   : > { %v719_v45 = vpack.c.bf16 %v715_v44, %v715_v44 }
  0xe7   : > { %v721_v47 = vunpack.c.l.b16 %v719_v45 }
  0xe9   : > { %v722_v49 = vpack.c.b16 %v721_v47, %v721_v47 }
  0xeb   : > { %v687_v48 = vpop.f32.mrf.mxu3  ;;  %v725_v50 = vsel %vm626_vm2, %v689_v46, %v722_v49 }
  0xec   : > { %v717_v51 = vpop.f32.mrf.mxu0  ;;  %1234 = vmatmul.msk.bf16.vlgmr.msrb.gmra.mxu1 %vm669_vm4, %v725_v50 }
 0x160   : > { %v651_v57 = vpop.f32.mrf.mxu2 }
 0x161   : > { %758 = vst.msk [vmem:[%s1814_s5] sm:$0xff] %vm757_vm5, %v651_v57  ;;  %v779_v12 = vmul.f32 %v778_v5, %v651_v57  ;;  %v805_v16 = vmul.f32 %v804_v8, %v651_v57  ;;  %v831_v23 = vmul.f32 %v830_v13, %v651_v57 }
 0x163   : > { %v780_v27 = vadd.f32 %v779_v12, %v776_v14 }
 0x168   : > { %v653_v17 = vpop.f32.mrf.mxu2 }
 0x169   : > { %1235 = vst.msk [vmem:[%s1814_s5 + $0x8] sm:$0xff] %vm757_vm5, %v653_v17  ;;  %v783_v19 = vmul.f32 %v782_v11, %v653_v17  ;;  %v752_v22 = vpop.f32.mrf.mxu1  ;;  %v809_v24 = vmul.f32 %v808_v15, %v653_v17  ;;  %s871_s5 = scalar_lea.sflag [#allocation4], %s1725_s11 }
 0x16a   : > { %759 = vst.msk [vmem:[%s1859_s2] sm:$0xff] %vm757_vm5, %v752_v22 }
 0x16b   : > { %1444 = shalt.err (!%p1441_p0)
}
 0x16c   : > { %s1556_s4 = smov 128   ;;  %s1557_s25 = smov 256   ;;  %v806_v28 = vadd.f32 %v805_v16, %v802_v18  ;;  %v835_v29 = vmul.f32 %v834_v21, %v653_v17  ;;  %v784_v30 = vadd.f32 %v783_v19, %v780_v27  ;;  %v787_v31 = vmul.f32 %v786_v25, %v752_v22 }
 0x16d   : > { %s1558_s8 = smov 8   ;;  %s911_s3 = sshll.u32 %s1859_s2, 4  ;;  %v838_v32 = vstv %s1840_s12  ;;  %v832_v34 = vadd.f32 %v831_v23, %v828_v20  ;;  %v813_v35 = vmul.f32 %v812_v26, %v752_v22  ;;  %v790_v36 = vstv %s1843_s0  ;;  %s1892_s3 = int_to_ptr.vmem [resolvable:$true] %s911_s3 }
 0x16e   : > { %1286 = dma.vmem_to_hbm [thread:$0]  (%p1680_p8), %s1838_s1, 256, %s1853_s6, %s871_s5, %s1556_s4, %s1557_s25, %s1558_s8   ;;  %v810_v33 = vadd.f32 %v809_v24, %v806_v28  ;;  %v839_v40 = vmul.f32 %v838_v32, %v752_v22  ;;  %v788_v42 = vadd.f32 %v787_v31, %v784_v30 }
 0x16f   : > { %s913_s22 = sshll.u32 %s1870_s14, 4  ;;  %v816_v37 = vstv %s1846_s23  ;;  %v842_v38 = vstv %s1849_s28  ;;  %v836_v39 = vadd.f32 %v835_v29, %v832_v34  ;;  %s876_s1 = scalar_lea.sflag [#allocation10], %s1725_s11  ;;  %s914_s22 = int_to_ptr.hbm [resolvable:$true] %s913_s22 }
 0x170   : > { %v814_v44 = vadd.f32 %v813_v35, %v810_v33  ;;  %s1459_s12 = sshra.s32 %s914_s22, 4  ;;  %s1465_s28 = scalar_lea.hbm %s2005_s26, 64  ;;  %s1460_s12 = int_to_ptr.hbm [resolvable:$true] %s1459_s12 }
 0x171   : > { %v754_v41 = vpop.f32.mrf.mxu1  ;;  %s1461_s6 = scalar_lea.hbm %s1460_s12, 16  ;;  %p1466_p3 = scmp.lt.s32.totalorder %s1460_s12, %s2005_s26 }
 0x172   : > { %1236 = vst.msk [vmem:[%s1859_s2 + $0x8] sm:$0xff] %vm757_vm5, %v754_v41  ;;  %v791_v43 = vmul.f32 %v790_v36, %v754_v41  ;;  %v817_v45 = vmul.f32 %v816_v37, %v754_v41  ;;  %v843_v46 = vmul.f32 %v842_v38, %v754_v41  ;;  %p1462_p1 = scmp.ne.s32.totalorder %s1460_s12, %s1461_s6  ;;  %p1467_p5 = scmp.lt.s32.totalorder %s1465_s28, %s1461_s6 }
 0x174   : > { %p1463_p2 = pnand %p1462_p1, %p1680_p8  ;;  %p1468_p6 = por %p1467_p5, %p1466_p3 }
 0x176   : > { %p1464_p4 = pneg %p1463_p2 }
 0x178   : > { %p1469_p7 = pnand %p1468_p6, %p1464_p4 }
 0x17a   : > { %1472 = shalt.err (!%p1469_p7)
}
 0x17b   : > { %1287 = dma.vmem_to_hbm [thread:$0]  (%p1680_p8), %s1892_s3, 256, %s914_s22, %s876_s1, %s1556_s4, %s1557_s25, %s1558_s8   ;;  %v792_v47 = vadd.f32 %v791_v43, %v788_v42  ;;  %v818_v48 = vadd.f32 %v817_v45, %v814_v44  ;;  %v840_v49 = vadd.f32 %v839_v40, %v836_v39 }
 0x17c   : > { %s1275_s2 = smul.u32 24, %s1725_s11  ;;  %s2006_s27 = sld [smem:[#allocation32_spill]] (%p1680_p8) }
 0x17d   : > { %v844_v50 = vadd.f32 %v843_v46, %v840_v49  ;;  %v845_v51 = vmax.f32 %v792_v47, %v818_v48  ;;  %s1277_s30 = smul.u32 (%p1680_p8), 6, %s1539_s21 }
 0x17e   : > { %s545_s15 = scalar_lea.vmem [#allocation11], %s1275_s2 }
 0x17f   : > { %v846_v52 = vmax.f32 %v845_v51, %v844_v50  ;;  %s924_s7 = sadd.s32 (%p1680_p8), %s1535_s20, %s1277_s30 }
 0x180   : > { %s1265_s11 = sshll.u32 (%p1680_p8), %s924_s7, 3 }
 0x181   : > { %v847_v53 = vsub.f32 %v792_v47, %v846_v52  ;;  %v850_v54 = vsub.f32 %v818_v48, %v846_v52  ;;  %v853_v55 = vsub.f32 %v844_v50, %v846_v52 }
 0x182   : > { %s926_s16 = scalar_lea.vmem (%p1680_p8), %s2006_s27, %s1265_s11 }
 0x183   : > { %v848_v56 = vmul.f32 1.442695, %v847_v53  ;;  %v851_v57 = vmul.f32 1.442695, %v850_v54  ;;  %v854_v58 = vmul.f32 1.442695, %v853_v55 }
 0x185   : > { %1379 = vpow2.f32 %v848_v56 }
 0x186   : > { %1381 = vpow2.f32 %v851_v57 }
 0x187   : > { %1383 = vpow2.f32 %v854_v58 }
 0x18b   : > { %v1380_v59 = vpop.eup %1379 }
 0x18c   : > { %v1382_v60 = vpop.eup %1381 }
 0x18d   : > { %v856_v61 = vadd.f32 %v1382_v60, %v1380_v59  ;;  %v1384_v62 = vpop.eup %1383 }
 0x18f   : > { %v857_v63 = vadd.f32 %v1384_v62, %v856_v61 }
 0x191   : > { %1385 = vrcp.f32 %v857_v63 }
 0x197   : > { %v1386_v0 = vpop.eup %1385 }
 0x198   : > { %v859_v1 = vmul.f32 %v1386_v0, %v857_v63 }
 0x19a   : > { %v860_v2 = vsub.f32 2.0, %v859_v1 }
 0x19c   : > { %v861_v3 = vmul.f32 %v1386_v0, %v860_v2 }
 0x19e   : > { %v862_v4 = vmul.f32 %v1380_v59, %v861_v3  ;;  %v864_v5 = vmul.f32 %v1382_v60, %v861_v3  ;;  %v867_v6 = vmul.f32 %v1384_v62, %v861_v3  ;;  %922 = sbr.rel (!%p1680_p8) target bundleno = 427 (0x1ab), region = 114 }
 0x1a0   : > { %863 = vst.msk [vmem:[%s545_s15] sm:$0xff] %vm757_vm5, %v862_v4 }
 0x1a1   : > { %1257 = vst.msk [vmem:[%s545_s15 + $0x8] sm:$0xff] %vm757_vm5, %v864_v5 }
 0x1a2   : > { %1258 = vst.msk [vmem:[%s545_s15 + $0x10] sm:$0xff] %vm757_vm5, %v867_v6 }
 0x1a7   : > { %v959_v7 = vld [vmem:[%s545_s15] sm:$0xff] }
 0x1a8   : > { %v961_v8 = vld [vmem:[%s545_s15 + $0x8] sm:$0xff]  ;;  %960 = vst [vmem:[%s926_s16] sm:$0xff] %v959_v7 }
 0x1a9   : > { %v963_v9 = vld [vmem:[%s545_s15 + $0x10] sm:$0xff]  ;;  %962 = vst [vmem:[%s926_s16 + $0x10] sm:$0xff] %v961_v8 }
 0x1aa   : > { %964 = vst [vmem:[%s926_s16 + $0x20] sm:$0xff] %v963_v9 }
 0x1ab PF: > { %s2007_s13 = sld [smem:[#allocation16_spill]]  ;;  %p1308_p8 = scmp.ge.s32.totalorder %s1551_s24, 2 }
 0x1ad   : > { %p1298_p10 = pnand %p1308_p8, %p1684_p9 }
 0x1af   : > { %p1299_p11 = pneg %p1298_p10 }
 0x1b1   : > { %s976_s25 = sand.u32 1, %s2007_s13  }
 0x1b2   : > { %s977_s20 = scalar_lea.sflag [#allocation4], %s976_s25 }
 0x1b3   : > { %1514 = dma.done.wait (%p1299_p11), %s977_s20, 256  }
 0x1b4   : > { %1516 = vsyncadd (%p1299_p11), %s977_s20, 4294967040  ;;  %s987_s21 = scalar_lea.sflag [#allocation10], %s976_s25 }
 0x1b5   : > { %1518 = dma.done.wait (%p1299_p11), %s987_s21, 256  }
 0x1b6   : > { %1520 = vsyncadd (%p1299_p11), %s987_s21, 4294967040  ;;  %s30_s24 = sadd.s32 1, %s1551_s24   ;;  %s2009_s8 = smov %s1701_s17 }
 0x1b7   : > { %p27_p12 = scmp.ge.s32.totalorder %s30_s24, 6   ;;  %s2010_s20 = sld [smem:[#allocation17_spill]] }
 0x1b8   : > { %s2011_s21 = sld [smem:[#allocation18_spill]]  ;;  %s2014_s17 = smov %s1527_s18 }
 0x1b9   : > { %s2012_s22 = sld [smem:[#allocation19_spill]]  ;;  %s2015_s18 = smov %s1531_s19 }
 0x1ba   : > { %s2013_s23 = sld [smem:[#allocation20_spill]]  ;;  %s2016_s19 = smov %s2009_s8 }
 0x1bb   :  { %29 = sbr.rel (!%p27_p12) target bundleno = 21 (0x15), region = 229 }
 0x1c0   :  { %1000 = vsyncpa [#allocation4], 1 }
 0x1c1   :  { %1002 = vsyncpa [#allocation4 + $0x1], 1 }
 0x1c2   :  { %1003 = vsyncpa [#allocation10], 1 }
 0x1c3   :  { %1005 = vsyncpa [#allocation10 + $0x1], 1 }
 0x1c4   :  { %1006 = vsyncpa [#allocation5], 1 }
 0x1c5   :  { %1008 = vsyncpa [#allocation5 + $0x1], 1 }
 0x1c6   :  { %1009 = vsyncpa [#allocation7], 1 }

</bundles_post_ra>
